<compile_context>
chip_gen: v6e
topology: v6e:2x2x1
jax: 0.10.0
libtpu: 0.0.40
codegen_flags: <defaults>
</compile_context>

<pallas_src>
import jax
import jax.numpy as jnp
from jax.experimental import pallas as pl
from jax.experimental.pallas import tpu as pltpu

IN_FEATURES = 28 * 28 * 3      # 2352
HIDDEN = 512
OUT_FEATURES = 10
OUT_PAD = 128                  # lane-dense output block width (cols 10..127 are zero)


def _round_up(x, m):
    return (x + m - 1) // m * m


def mlp_kernel(x_ref, w1_ref, b1_ref, w2_ref, b2_ref, w3_ref, b3_ref, o_ref):
    # f32 -> bf16 cast happens here (VPU), so x only crosses HBM once as f32.
    x = x_ref[...].astype(jnp.bfloat16)
    # Layer 1: (TM, 2352)bf16 @ (2352, 512)bf16 -> f32 accumulate; bias+ReLU in f32.
    h1 = jnp.dot(x, w1_ref[...], preferred_element_type=jnp.float32)
    h1 = jnp.maximum(h1 + b1_ref[...], 0.0)
    # Layer 2: (TM, 512) @ (512, 512)
    h2 = jnp.dot(h1.astype(jnp.bfloat16), w2_ref[...],
                 preferred_element_type=jnp.float32)
    h2 = jnp.maximum(h2 + b2_ref[...], 0.0)
    # Layer 3: (TM, 512) @ (512, 128) -- lane-padded output, padded cols are zero.
    o_ref[...] = (jnp.dot(h2.astype(jnp.bfloat16), w3_ref[...],
                          preferred_element_type=jnp.float32)
                  + b3_ref[...]).astype(o_ref.dtype)


def pack_params(raw_params):
    """Pad + cast raw (PyTorch-shaped) f32 params for the kernel.

    w1: (2352,512) -> bf16 (K kept at 2352, no padding)
    w2: (512,512)  -> bf16
    w3: (512,10)   -> (512,128) bf16 (zero cols)
    biases: f32, shape (1, N); b3 padded to (1, 128).
    """
    w1, b1, w2, b2, w3, b3 = raw_params
    w3p = jnp.zeros((HIDDEN, OUT_PAD), jnp.float32).at[:, :OUT_FEATURES].set(w3)
    b3p = jnp.zeros((1, OUT_PAD), jnp.float32).at[:, :OUT_FEATURES].set(
        b3.reshape(1, -1))
    return (w1.astype(jnp.bfloat16), b1.reshape(1, -1).astype(jnp.float32),
            w2.astype(jnp.bfloat16), b2.reshape(1, -1).astype(jnp.float32),
            w3p.astype(jnp.bfloat16), b3p)


def _pick_tile(B, tm):
    """Batch tile: tiny batches get one small tile; B > 128 always gets >=2
    tiles so both v7x TensorCores receive work under ("parallel",)."""
    if B <= 128:
        return _round_up(B, 8)
    return min(tm, _round_up(pl.cdiv(B, 2), 8))


def mlp_forward(x_nchw, packed_params, *, tm=512):
    """x_nchw: (B, 3, 28, 28) f32 -> logits (B, 10) f32."""
    w1, b1, w2, b2, w3, b3 = packed_params
    B = x_nchw.shape[0]
    # nn.Flatten: (B, C, H, W) -> (B, C*H*W) row-major; reshape is free.
    x_flat = x_nchw.reshape(B, IN_FEATURES).astype(jnp.float32)

    TM = _pick_tile(B, tm)
    B_pad = _round_up(B, TM)
    if B_pad != B:
        # Only pads batch rows (and only when needed); no feature-dim pad, no cast.
        x_flat = jnp.pad(x_flat, ((0, B_pad - B), (0, 0)))

    grid = (B_pad // TM,)
    const = lambda i: (0, 0)   # weights/biases resident across batch tiles

    flops = 2 * B_pad * (IN_FEATURES * HIDDEN + HIDDEN * HIDDEN + HIDDEN * OUT_PAD)
    bytes_accessed = (x_flat.size * 4
                      + (w1.size + w2.size + w3.size) * 2
                      + (b1.size + b2.size + b3.size) * 4
                      + B_pad * OUT_PAD * 4)

    out = pl.pallas_call(
        mlp_kernel,
        out_shape=jax.ShapeDtypeStruct((B_pad, OUT_PAD), jnp.float32),
        grid_spec=pltpu.PrefetchScalarGridSpec(
            num_scalar_prefetch=0,
            grid=grid,
            in_specs=[
                # x tile: last dim is the full 2352 extent (legal full-dim block).
                pl.BlockSpec((TM, IN_FEATURES), lambda i: (i, 0)),
                pl.BlockSpec((IN_FEATURES, HIDDEN), const),   # w1 (resident)
                pl.BlockSpec((1, HIDDEN), const),             # b1
                pl.BlockSpec((HIDDEN, HIDDEN), const),        # w2
                pl.BlockSpec((1, HIDDEN), const),             # b2
                pl.BlockSpec((HIDDEN, OUT_PAD), const),       # w3
                pl.BlockSpec((1, OUT_PAD), const),            # b3
            ],
            out_specs=pl.BlockSpec((TM, OUT_PAD), lambda i: (i, 0)),
        ),
        compiler_params=pltpu.CompilerParams(
            dimension_semantics=("parallel",),
            vmem_limit_bytes=48 * 1024 * 1024,
        ),
        cost_estimate=pl.CostEstimate(flops=flops, transcendentals=0,
                                      bytes_accessed=bytes_accessed),
    )(x_flat, w1, b1, w2, b2, w3, b3)

    return out[:B, :OUT_FEATURES]


def init_params(key):
    # Deterministic init mirroring nn.Linear's U(-1/sqrt(fan_in), 1/sqrt(fan_in)).
    k = jax.random.split(key, 6)

    def lin(kw, kb, fan_in, fan_out):
        bound = 1.0 / jnp.sqrt(fan_in)
        w = jax.random.uniform(kw, (fan_in, fan_out), jnp.float32, -bound, bound)
        b = jax.random.uniform(kb, (fan_out,), jnp.float32, -bound, bound)
        return w, b

    w1, b1 = lin(k[0], k[1], IN_FEATURES, HIDDEN)
    w2, b2 = lin(k[2], k[3], HIDDEN, HIDDEN)
    w3, b3 = lin(k[4], k[5], HIDDEN, OUT_FEATURES)
    return (w1, b1, w2, b2, w3, b3)


if __name__ == "__main__":
    key = jax.random.PRNGKey(0)
    kx, kp = jax.random.split(key)
    # Small input consistent with 28*28*3 flatten: (batch=2, C=3, H=28, W=28).
    x = jax.random.normal(kx, (2, 3, 28, 28), dtype=jnp.float32)
    raw_params = init_params(kp)
    packed = pack_params(raw_params)

    logits = mlp_forward(x, packed)
    jax.block_until_ready(logits)
    assert logits.shape == (2, OUT_FEATURES)

    # Reference 1: bf16-matched math (same casts as the kernel) -- tight check.
    w1, b1, w2, b2, w3, b3 = raw_params
    xf = x.reshape(2, -1)
    bf = jnp.bfloat16
    r = jnp.dot(xf.astype(bf), w1.astype(bf), preferred_element_type=jnp.float32)
    r = jnp.maximum(r + b1[None, :], 0.0)
    r = jnp.dot(r.astype(bf), w2.astype(bf), preferred_element_type=jnp.float32)
    r = jnp.maximum(r + b2[None, :], 0.0)
    ref_bf16 = jnp.dot(r.astype(bf), w3.astype(bf),
                       preferred_element_type=jnp.float32) + b3[None, :]
    assert jnp.allclose(logits, ref_bf16, atol=2e-3, rtol=2e-3), \
        float(jnp.max(jnp.abs(logits - ref_bf16)))

    # Reference 2: full f32 math (PyTorch-equivalent) -- loose check covering
    # the intentional bf16 weight/activation quantization inside the kernel.
    ref = jnp.maximum(xf @ w1 + b1[None, :], 0.0)
    ref = jnp.maximum(ref @ w2 + b2[None, :], 0.0)
    ref = ref @ w3 + b3[None, :]
    assert jnp.allclose(logits, ref, atol=5e-2, rtol=5e-2), \
        float(jnp.max(jnp.abs(logits - ref)))

    print("KERNEL_OK")
</pallas_src>

<mosaic_0001>
module attributes {stable_mosaic.version = 11 : i64} {
  func.func @mlp_kernel(%arg0: i32, %arg1: memref<8x2352xf32, #tpu.memory_space<vmem>>, %arg2: memref<2352x512xbf16, #tpu.memory_space<vmem>>, %arg3: memref<1x512xf32, #tpu.memory_space<vmem>>, %arg4: memref<512x512xbf16, #tpu.memory_space<vmem>>, %arg5: memref<1x512xf32, #tpu.memory_space<vmem>>, %arg6: memref<512x128xbf16, #tpu.memory_space<vmem>>, %arg7: memref<1x128xf32, #tpu.memory_space<vmem>>, %arg8: memref<8x128xf32, #tpu.memory_space<vmem>>) attributes {dimension_semantics = [#tpu.dimension_semantics<parallel>], iteration_bounds = array<i64: 1>, scalar_prefetch = 0 : i64, scratch_operands = 0 : i64, tpu.core_type = #tpu.core_type<tc>, window_params = [{transform_indices = @transform_0, window_bounds = array<i64: 8, 2352>}, {pipeline_mode = #tpu.pipeline_mode<synchronous>, transform_indices = @transform_1, window_bounds = array<i64: 2352, 512>}, {pipeline_mode = #tpu.pipeline_mode<synchronous>, transform_indices = @transform_2, window_bounds = array<i64: 1, 512>}, {pipeline_mode = #tpu.pipeline_mode<synchronous>, transform_indices = @transform_3, window_bounds = array<i64: 512, 512>}, {pipeline_mode = #tpu.pipeline_mode<synchronous>, transform_indices = @transform_4, window_bounds = array<i64: 1, 512>}, {pipeline_mode = #tpu.pipeline_mode<synchronous>, transform_indices = @transform_5, window_bounds = array<i64: 512, 128>}, {pipeline_mode = #tpu.pipeline_mode<synchronous>, transform_indices = @transform_6, window_bounds = array<i64: 1, 128>}, {transform_indices = @transform_7, window_bounds = array<i64: 8, 128>}]} {
    %c0 = arith.constant 0 : index
    %c0_0 = arith.constant 0 : index
    %0 = vector.load %arg1[%c0, %c0_0] : memref<8x2352xf32, #tpu.memory_space<vmem>>, vector<8x2352xf32>
    %1 = arith.truncf %0 : vector<8x2352xf32> to vector<8x2352xbf16>
    %c0_1 = arith.constant 0 : index
    %c0_2 = arith.constant 0 : index
    %2 = vector.load %arg2[%c0_1, %c0_2] : memref<2352x512xbf16, #tpu.memory_space<vmem>>, vector<2352x512xbf16>
    %cst = arith.constant dense<0.000000e+00> : vector<8x512xf32>
    %3 = tpu.matmul %1, %2, %cst {dimension_numbers = #tpu.dot_dimension_numbers<[1], [0], [0], [1], [0, 0, 1, 1], [], []>} : vector<8x2352xbf16>, vector<2352x512xbf16>, vector<8x512xf32> -> vector<8x512xf32>
    %c0_3 = arith.constant 0 : index
    %c0_4 = arith.constant 0 : index
    %4 = vector.load %arg3[%c0_3, %c0_4] : memref<1x512xf32, #tpu.memory_space<vmem>>, vector<1x512xf32>
    %5 = vector.broadcast %4 : vector<1x512xf32> to vector<8x512xf32>
    %6 = arith.addf %3, %5 : vector<8x512xf32>
    %cst_5 = arith.constant 0.000000e+00 : f32
    %7 = vector.broadcast %cst_5 : f32 to vector<8x512xf32>
    %8 = arith.maximumf %6, %7 : vector<8x512xf32>
    %9 = arith.truncf %8 : vector<8x512xf32> to vector<8x512xbf16>
    %c0_6 = arith.constant 0 : index
    %c0_7 = arith.constant 0 : index
    %10 = vector.load %arg4[%c0_6, %c0_7] : memref<512x512xbf16, #tpu.memory_space<vmem>>, vector<512x512xbf16>
    %cst_8 = arith.constant dense<0.000000e+00> : vector<8x512xf32>
    %11 = tpu.matmul %9, %10, %cst_8 {dimension_numbers = #tpu.dot_dimension_numbers<[1], [0], [0], [1], [0, 0, 1, 1], [], []>} : vector<8x512xbf16>, vector<512x512xbf16>, vector<8x512xf32> -> vector<8x512xf32>
    %c0_9 = arith.constant 0 : index
    %c0_10 = arith.constant 0 : index
    %12 = vector.load %arg5[%c0_9, %c0_10] : memref<1x512xf32, #tpu.memory_space<vmem>>, vector<1x512xf32>
    %13 = vector.broadcast %12 : vector<1x512xf32> to vector<8x512xf32>
    %14 = arith.addf %11, %13 : vector<8x512xf32>
    %cst_11 = arith.constant 0.000000e+00 : f32
    %15 = vector.broadcast %cst_11 : f32 to vector<8x512xf32>
    %16 = arith.maximumf %14, %15 : vector<8x512xf32>
    %17 = arith.truncf %16 : vector<8x512xf32> to vector<8x512xbf16>
    %c0_12 = arith.constant 0 : index
    %c0_13 = arith.constant 0 : index
    %18 = vector.load %arg6[%c0_12, %c0_13] : memref<512x128xbf16, #tpu.memory_space<vmem>>, vector<512x128xbf16>
    %cst_14 = arith.constant dense<0.000000e+00> : vector<8x128xf32>
    %19 = tpu.matmul %17, %18, %cst_14 {dimension_numbers = #tpu.dot_dimension_numbers<[1], [0], [0], [1], [0, 0, 1, 1], [], []>} : vector<8x512xbf16>, vector<512x128xbf16>, vector<8x128xf32> -> vector<8x128xf32>
    %c0_15 = arith.constant 0 : index
    %c0_16 = arith.constant 0 : index
    %20 = vector.load %arg7[%c0_15, %c0_16] : memref<1x128xf32, #tpu.memory_space<vmem>>, vector<1x128xf32>
    %21 = vector.broadcast %20 : vector<1x128xf32> to vector<8x128xf32>
    %22 = arith.addf %19, %21 : vector<8x128xf32>
    %c0_17 = arith.constant 0 : index
    %c0_18 = arith.constant 0 : index
    %23 = vector.load %arg8[%c0_17, %c0_18] : memref<8x128xf32, #tpu.memory_space<vmem>>, vector<8x128xf32>
    tpu.vector_store %arg8[%c0_17, %c0_18], %22 {strides = array<i32>} : memref<8x128xf32, #tpu.memory_space<vmem>>, vector<8x128xf32>,
    return
  }
  func.func @transform_0(%arg0: i32) -> (i32, i32) {
    %c0_i32 = arith.constant 0 : i32
    %c0_i32_0 = arith.constant 0 : i32
    return %arg0, %c0_i32 : i32, i32
  }
  func.func @transform_1(%arg0: i32) -> (i32, i32) {
    %c0_i32 = arith.constant 0 : i32
    %c0_i32_0 = arith.constant 0 : i32
    %c0_i32_1 = arith.constant 0 : i32
    return %c0_i32, %c0_i32_0 : i32, i32
  }
  func.func @transform_2(%arg0: i32) -> (i32, i32) {
    %c0_i32 = arith.constant 0 : i32
    %c0_i32_0 = arith.constant 0 : i32
    %c0_i32_1 = arith.constant 0 : i32
    return %c0_i32, %c0_i32_0 : i32, i32
  }
  func.func @transform_3(%arg0: i32) -> (i32, i32) {
    %c0_i32 = arith.constant 0 : i32
    %c0_i32_0 = arith.constant 0 : i32
    %c0_i32_1 = arith.constant 0 : i32
    return %c0_i32, %c0_i32_0 : i32, i32
  }
  func.func @transform_4(%arg0: i32) -> (i32, i32) {
    %c0_i32 = arith.constant 0 : i32
    %c0_i32_0 = arith.constant 0 : i32
    %c0_i32_1 = arith.constant 0 : i32
    return %c0_i32, %c0_i32_0 : i32, i32
  }
  func.func @transform_5(%arg0: i32) -> (i32, i32) {
    %c0_i32 = arith.constant 0 : i32
    %c0_i32_0 = arith.constant 0 : i32
    %c0_i32_1 = arith.constant 0 : i32
    return %c0_i32, %c0_i32_0 : i32, i32
  }
  func.func @transform_6(%arg0: i32) -> (i32, i32) {
    %c0_i32 = arith.constant 0 : i32
    %c0_i32_0 = arith.constant 0 : i32
    %c0_i32_1 = arith.constant 0 : i32
    return %c0_i32, %c0_i32_0 : i32, i32
  }
  func.func @transform_7(%arg0: i32) -> (i32, i32) {
    %c0_i32 = arith.constant 0 : i32
    %c0_i32_0 = arith.constant 0 : i32
    return %arg0, %c0_i32 : i32, i32
  }
}

</mosaic_0001>

<bundles_post_ra>
// kernel: tpu_custom_call.1
= control target key start
LH: loop header
LB: loop body
LE: loop exit
PB: predicated region body
PF: predicated region fallthrough
CT: control target
= control target key end

     0   :  { %12 = vsyncpa [#allocation3], 0  ;;  %s8189_s0 = inlined_call_operand.hbm [shape: f32[8,2352], index: 0, kind: input, shape index: {}]   ;;  %s8190_s1 = inlined_call_operand.hbm [shape: bf16[2352,512], index: 1, kind: input, shape index: {}]   ;;  %s8191_s2 = inlined_call_operand.hbm [shape: f32[1,512], index: 2, kind: input, shape index: {}]   ;;  %s8192_s3 = inlined_call_operand.hbm [shape: bf16[512,512], index: 3, kind: input, shape index: {}]   ;;  %s8193_s4 = inlined_call_operand.hbm [shape: f32[1,512], index: 4, kind: input, shape index: {}]   ;;  %s8194_s5 = inlined_call_operand.hbm [shape: bf16[512,128], index: 5, kind: input, shape index: {}]   ;;  %s8195_s6 = inlined_call_operand.hbm [shape: f32[1,128], index: 6, kind: input, shape index: {}]   ;;  %s8196_s7 = inlined_call_operand.hbm [shape: f32[8,128], index: 7, kind: output, shape index: {}]  }
   0x1   :  { %13 = vsyncpa [#allocation6], 0 }
   0x2   :  { %14 = vsyncpa [#allocation9], 0 }
   0x3   :  { %15 = vsyncpa [#allocation12], 0 }
   0x4   :  { %16 = vsyncpa [#allocation4], 0  ;;  %s7944_s24 = smov [#allocation5]  }
   0x5   :  { %s32_s25 = sshll.u32 %s7944_s24, 4  ;;  %s33_s25 = int_to_ptr.vmem [resolvable:$true] %s32_s25 }
   0x6   :  { %s7782_s26 = scalar_lea.vmem %s33_s25, 75264  ;;  %p7787_p1 = scmp.lt.s32.totalorder %s33_s25, %s33_s25 }
   0x7   :  { %p7783_p0 = scmp.ne.s32.totalorder %s33_s25, %s7782_s26  ;;  %p7788_p2 = scmp.lt.s32.totalorder %s7782_s26, %s7782_s26 }
   0x9   :  { %p7789_p3 = por %p7788_p2, %p7787_p1 }
   0xb   :  { %p7790_p4 = pnand %p7789_p3, %p7783_p0 }
   0xd   :  { %7793 = shalt.err (!%p7790_p4)
}
   0xe   :  { %s7945_s27 = smov 256   ;;  %s7946_s28 = smov 16  }
   0xf   :  { %38 = dma.hbm_to_vmem [thread:$0]  %s8190_s1, 75264, %s33_s25, [#allocation6], %s7945_s27, %s7945_s27, %s7946_s28  }
  0x10   :  { %s7947_s8 = smov [#allocation8]   ;;  %s7948_s10 = smov [#allocation11]  }
  0x11   :  { %s54_s9 = sshll.u32 %s7947_s8, 4  ;;  %s76_s11 = sshll.u32 %s7948_s10, 4  ;;  %s55_s9 = int_to_ptr.vmem [resolvable:$true] %s54_s9  ;;  %s77_s11 = int_to_ptr.vmem [resolvable:$true] %s76_s11 }
  0x12   :  { %s7802_s12 = scalar_lea.vmem %s55_s9, 16384  ;;  %p7807_p6 = scmp.lt.s32.totalorder %s55_s9, %s55_s9 }
  0x13   :  { %p7803_p5 = scmp.ne.s32.totalorder %s55_s9, %s7802_s12  ;;  %p7808_p7 = scmp.lt.s32.totalorder %s7802_s12, %s7802_s12 }
  0x15   :  { %p7809_p8 = por %p7808_p7, %p7807_p6 }
  0x17   :  { %p7810_p9 = pnand %p7809_p8, %p7803_p5 }
  0x19   :  { %7813 = shalt.err (!%p7810_p9)
}
  0x1a   :  { %60 = dma.hbm_to_vmem [thread:$0]  %s8192_s3, 16384, %s55_s9, [#allocation9], %s7945_s27, %s7945_s27, %s7946_s28  }
  0x1b   :  { %s7822_s15 = scalar_lea.vmem %s77_s11, 4096  ;;  %p7827_p11 = scmp.lt.s32.totalorder %s77_s11, %s77_s11 }
  0x1c   :  { %p7823_p10 = scmp.ne.s32.totalorder %s77_s11, %s7822_s15  ;;  %p7828_p12 = scmp.lt.s32.totalorder %s7822_s15, %s7822_s15 }
  0x1e   :  { %p7829_p13 = por %p7828_p12, %p7827_p11 }
  0x20   :  { %p7830_p0 = pnand %p7829_p13, %p7823_p10 }
  0x22   :  { %7833 = shalt.err (!%p7830_p0)
}
  0x23   :  { %s7949_s1 = smov 64   ;;  %s7950_s16 = smov 4  }
  0x24   :  { %82 = dma.hbm_to_vmem [thread:$0]  %s8194_s5, 4096, %s77_s11, [#allocation12], %s7949_s1, %s7949_s1, %s7950_s16  }
  0x25   :  { %s7951_s19 = smov [#allocation2]   ;;  %s7952_s21 = smov [#allocation7]  }
  0x26   :  { %s23_s20 = sshll.u32 %s7951_s19, 4  ;;  %s45_s22 = sshll.u32 %s7952_s21, 4  ;;  %s24_s20 = int_to_ptr.vmem [resolvable:$true] %s23_s20  ;;  %s46_s22 = int_to_ptr.vmem [resolvable:$true] %s45_s22 }
  0x27   :  { %s7842_s3 = scalar_lea.vmem %s24_s20, 2432  ;;  %p7847_p2 = scmp.lt.s32.totalorder %s24_s20, %s24_s20 }
  0x28   :  { %p7843_p1 = scmp.ne.s32.totalorder %s24_s20, %s7842_s3  ;;  %p7848_p3 = scmp.lt.s32.totalorder %s7842_s3, %s7842_s3 }
  0x2a   :  { %p7849_p4 = por %p7848_p3, %p7847_p2 }
  0x2c   :  { %p7850_p5 = pnand %p7849_p4, %p7843_p1 }
  0x2e   :  { %7853 = shalt.err (!%p7850_p5)
}
  0x2f   :  { %26 = dma.hbm_to_vmem [thread:$0]  %s8189_s0, 2432, %s24_s20, [#allocation3]  }
  0x30   :  { %s7862_s25 = scalar_lea.vmem %s46_s22, 64  ;;  %p7867_p7 = scmp.lt.s32.totalorder %s46_s22, %s46_s22 }
  0x31   :  { %p7863_p6 = scmp.ne.s32.totalorder %s46_s22, %s7862_s25  ;;  %p7868_p8 = scmp.lt.s32.totalorder %s7862_s25, %s7862_s25 }
  0x33   :  { %p7869_p9 = por %p7868_p8, %p7867_p7 }
  0x35   :  { %p7870_p10 = pnand %p7869_p9, %p7863_p6 }
  0x37   :  { %7873 = shalt.err (!%p7870_p10)
}
  0x38   :  { %48 = dma.hbm_to_vmem [thread:$0]  %s8191_s2, 64, %s46_s22, [#allocation6]  }
  0x39   :  { %s7953_s27 = smov [#allocation10]   ;;  %s7954_s29 = smov [#allocation13]  }
  0x3a   :  { %s67_s28 = sshll.u32 %s7953_s27, 4  ;;  %s89_s30 = sshll.u32 %s7954_s29, 4  ;;  %s68_s28 = int_to_ptr.vmem [resolvable:$true] %s67_s28  ;;  %s90_s30 = int_to_ptr.vmem [resolvable:$true] %s89_s30 }
  0x3b   :  { %s7882_s8 = scalar_lea.vmem %s68_s28, 64  ;;  %p7887_p12 = scmp.lt.s32.totalorder %s68_s28, %s68_s28 }
  0x3c   :  { %p7883_p11 = scmp.ne.s32.totalorder %s68_s28, %s7882_s8  ;;  %p7888_p13 = scmp.lt.s32.totalorder %s7882_s8, %s7882_s8 }
  0x3e   :  { %p7889_p0 = por %p7888_p13, %p7887_p12 }
  0x40   :  { %p7890_p1 = pnand %p7889_p0, %p7883_p11 }
  0x42   :  { %7893 = shalt.err (!%p7890_p1)
}
  0x43   :  { %70 = dma.hbm_to_vmem [thread:$0]  %s8193_s4, 64, %s68_s28, [#allocation9]  }
  0x44   :  { %s7902_s10 = scalar_lea.vmem %s90_s30, 16  ;;  %s7906_s2 = scalar_lea.vmem %s90_s30, 32 }
  0x45   :  { %p7903_p2 = scmp.ne.s32.totalorder %s90_s30, %s7902_s10  ;;  %p7907_p3 = scmp.lt.s32.totalorder %s90_s30, %s90_s30 }
  0x46   :  { %p7908_p4 = scmp.lt.s32.totalorder %s7906_s2, %s7902_s10 }
  0x48   :  { %p7909_p5 = por %p7908_p4, %p7907_p3 }
  0x4a   :  { %p7910_p6 = pnand %p7909_p5, %p7903_p2 }
  0x4c   :  { %7913 = shalt.err (!%p7910_p6)
}
  0x4d   :  { %92 = dma.hbm_to_vmem [thread:$0]  %s8195_s6, 16, %s90_s30, [#allocation12]  }
  0x4e   :  { %7934 = dma.done.wait [#allocation3], 2432  }
  0x4f   :  { %7935 = vsyncadd [#allocation3], 4294964864 }
  0x50   :  { %7936 = dma.done.wait [#allocation6], 75328  }
  0x51   :  { %7937 = vsyncadd [#allocation6], 4294891968 }
  0x52   :  { %7938 = dma.done.wait [#allocation9], 16448  }
  0x53   :  { %7939 = vsyncadd [#allocation9], 4294950848 }
  0x54   :  { %7940 = dma.done.wait [#allocation12], 4112  }
  0x55   :  { %7941 = vsyncadd [#allocation12], 4294963184  ;;  %v6667_v0 = vld [vmem:[#allocation5 + $0xe4] ss:$16 sps:$4 sm:$0xff]   ;;  %v6671_v2 = vld [vmem:[#allocation5 + $0xe0] ss:$16 sps:$4 sm:$0xff]  }
  0x56   :  { %v6669_v1 = vld [vmem:[#allocation5 + $0x2e4] ss:$16 sps:$4 sm:$0xff]   ;;  %3707 = vmatprep.subr.bf16.mxu0 %v6667_v0  ;;  %v6672_v3 = vld [vmem:[#allocation5 + $0x2e0] ss:$16 sps:$4 sm:$0xff]   ;;  %vm3703_vm0 = vcmask 392192   ;;  %s7956_s4 = smov [#allocation14]  }
  0x57   :  { %3748 = vmatprep.subr.bf16.mxu1 %v6669_v1  ;;  %v6673_v4 = vld [vmem:[#allocation5 + $0xc4] ss:$16 sps:$4 sm:$0xff]   ;;  %3708 = vmatpush1.bf16.msra.mxu0 %v6671_v2  ;;  %v6677_v6 = vld [vmem:[#allocation5 + $0xc0] ss:$16 sps:$4 sm:$0xff]   ;;  %s5847_s6 = sshll.u32 %s7956_s4, 4  ;;  %s5848_s6 = int_to_ptr.vmem [resolvable:$true] %s5847_s6 }
  0x58   :  { %3749 = vmatpush1.bf16.msra.mxu1 %v6672_v3  ;;  %v6675_v5 = vld [vmem:[#allocation5 + $0x2c4] ss:$16 sps:$4 sm:$0xff]   ;;  %3709 = vmatprep.subr.bf16.mxu0 %v6673_v4  ;;  %v6678_v7 = vld [vmem:[#allocation5 + $0x2c0] ss:$16 sps:$4 sm:$0xff]   ;;  %v115_v4 = vld [vmem:[#allocation2] sm:$0xff]  ;;  %s7914_s13 = scalar_lea.vmem %s5848_s6, 128  ;;  %p7919_p8 = scmp.lt.s32.totalorder %s5848_s6, %s5848_s6 }
  0x59   :  { %3750 = vmatprep.subr.bf16.mxu1 %v6675_v5  ;;  %v6679_v8 = vld [vmem:[#allocation5 + $0xa4] ss:$16 sps:$4 sm:$0xff]   ;;  %v6683_v10 = vld [vmem:[#allocation5 + $0xa0] ss:$16 sps:$4 sm:$0xff]   ;;  %v117_v5 = vld [vmem:[#allocation2 + $0x10] sm:$0xff]  ;;  %p7915_p7 = scmp.ne.s32.totalorder %s5848_s6, %s7914_s13  ;;  %p7920_p9 = scmp.lt.s32.totalorder %s7914_s13, %s7914_s13 }
  0x5a   :  { %v6681_v9 = vld [vmem:[#allocation5 + $0x2a4] ss:$16 sps:$4 sm:$0xff]   ;;  %v6684_v11 = vld [vmem:[#allocation5 + $0x2a0] ss:$16 sps:$4 sm:$0xff]  }
  0x5b   :  { %3710 = vmatpush1.bf16.msra.mxu0 %v6677_v6  ;;  %v6685_v12 = vld [vmem:[#allocation5 + $0x84] ss:$16 sps:$4 sm:$0xff]   ;;  %v6689_v14 = vld [vmem:[#allocation5 + $0x80] ss:$16 sps:$4 sm:$0xff]   ;;  %p7921_p10 = por %p7920_p9, %p7919_p8 }
  0x5c   :  { %3751 = vmatpush1.bf16.msra.mxu1 %v6678_v7  ;;  %3711 = vmatprep.subr.bf16.mxu0 %v6679_v8  ;;  %v6687_v13 = vld [vmem:[#allocation5 + $0x284] ss:$16 sps:$4 sm:$0xff]   ;;  %v6690_v15 = vld [vmem:[#allocation5 + $0x280] ss:$16 sps:$4 sm:$0xff]   ;;  %v8024_v8 = vpack.c.bf16 %v115_v4, %v115_v4 }
  0x5d   :  { %3752 = vmatprep.subr.bf16.mxu1 %v6681_v9  ;;  %v6691_v16 = vld [vmem:[#allocation5 + $0x64] ss:$16 sps:$4 sm:$0xff]   ;;  %v6695_v18 = vld [vmem:[#allocation5 + $0x60] ss:$16 sps:$4 sm:$0xff]   ;;  %v8026_v9 = vpack.c.bf16 %v117_v5, %v117_v5  ;;  %p7922_p11 = pnand %p7921_p10, %p7915_p7 }
  0x5e   :  { %v6693_v17 = vld [vmem:[#allocation5 + $0x264] ss:$16 sps:$4 sm:$0xff]   ;;  %v6696_v19 = vld [vmem:[#allocation5 + $0x260] ss:$16 sps:$4 sm:$0xff]  }
  0x5f   :  { %3712 = vmatpush1.bf16.msra.mxu0 %v6683_v10  ;;  %v6697_v20 = vld [vmem:[#allocation5 + $0x44] ss:$16 sps:$4 sm:$0xff]   ;;  %v6701_v22 = vld [vmem:[#allocation5 + $0x40] ss:$16 sps:$4 sm:$0xff]  }
  0x60   :  { %3753 = vmatpush1.bf16.msra.mxu1 %v6684_v11  ;;  %3713 = vmatprep.subr.bf16.mxu0 %v6685_v12  ;;  %v6699_v21 = vld [vmem:[#allocation5 + $0x244] ss:$16 sps:$4 sm:$0xff]   ;;  %v6702_v23 = vld [vmem:[#allocation5 + $0x240] ss:$16 sps:$4 sm:$0xff]  }
  0x61   :  { %3754 = vmatprep.subr.bf16.mxu1 %v6687_v13  ;;  %v6703_v24 = vld [vmem:[#allocation5 + $0x24] ss:$16 sps:$4 sm:$0xff]   ;;  %v6707_v26 = vld [vmem:[#allocation5 + $0x20] ss:$16 sps:$4 sm:$0xff]  }
  0x62   :  { %v6705_v25 = vld [vmem:[#allocation5 + $0x224] ss:$16 sps:$4 sm:$0xff]   ;;  %v6708_v27 = vld [vmem:[#allocation5 + $0x220] ss:$16 sps:$4 sm:$0xff]  }
  0x63   :  { %3714 = vmatpush1.bf16.msra.mxu0 %v6689_v14  ;;  %v6709_v28 = vld [vmem:[#allocation5 + $0x4] ss:$16 sps:$4 sm:$0xff]   ;;  %v6713_v30 = vld [vmem:[#allocation5] ss:$16 sps:$4 sm:$0xff]  }
  0x64   :  { %3755 = vmatpush1.bf16.msra.mxu1 %v6690_v15  ;;  %3715 = vmatprep.subr.bf16.mxu0 %v6691_v16  ;;  %v6711_v29 = vld [vmem:[#allocation5 + $0x204] ss:$16 sps:$4 sm:$0xff]   ;;  %v6714_v31 = vld [vmem:[#allocation5 + $0x200] ss:$16 sps:$4 sm:$0xff]  }
  0x65   :  { %3756 = vmatprep.subr.bf16.mxu1 %v6693_v17  ;;  %v6715_v32 = vld [vmem:[#allocation5 + $0x1e4] ss:$16 sps:$4 sm:$0xff]   ;;  %v6719_v34 = vld [vmem:[#allocation5 + $0x1e0] ss:$16 sps:$4 sm:$0xff]  }
  0x66   :  { %v6717_v33 = vld [vmem:[#allocation5 + $0x3e4] ss:$16 sps:$4 sm:$0xff]   ;;  %v6720_v35 = vld [vmem:[#allocation5 + $0x3e0] ss:$16 sps:$4 sm:$0xff]  }
  0x67   :  { %3716 = vmatpush1.bf16.msra.mxu0 %v6695_v18  ;;  %v6721_v36 = vld [vmem:[#allocation5 + $0x1c4] ss:$16 sps:$4 sm:$0xff]   ;;  %v6725_v38 = vld [vmem:[#allocation5 + $0x1c0] ss:$16 sps:$4 sm:$0xff]  }
  0x68   :  { %3757 = vmatpush1.bf16.msra.mxu1 %v6696_v19  ;;  %3717 = vmatprep.subr.bf16.mxu0 %v6697_v20  ;;  %v6723_v37 = vld [vmem:[#allocation5 + $0x3c4] ss:$16 sps:$4 sm:$0xff]   ;;  %v6726_v39 = vld [vmem:[#allocation5 + $0x3c0] ss:$16 sps:$4 sm:$0xff]  }
  0x69   :  { %3758 = vmatprep.subr.bf16.mxu1 %v6699_v21  ;;  %v6727_v40 = vld [vmem:[#allocation5 + $0x1a4] ss:$16 sps:$4 sm:$0xff]   ;;  %v6731_v42 = vld [vmem:[#allocation5 + $0x1a0] ss:$16 sps:$4 sm:$0xff]  }
  0x6a   :  { %v6729_v41 = vld [vmem:[#allocation5 + $0x3a4] ss:$16 sps:$4 sm:$0xff]   ;;  %v6732_v43 = vld [vmem:[#allocation5 + $0x3a0] ss:$16 sps:$4 sm:$0xff]  }
  0x6b   :  { %3718 = vmatpush1.bf16.msra.mxu0 %v6701_v22  ;;  %v6733_v44 = vld [vmem:[#allocation5 + $0x184] ss:$16 sps:$4 sm:$0xff]   ;;  %v6737_v47 = vld [vmem:[#allocation5 + $0x180] ss:$16 sps:$4 sm:$0xff]  }
  0x6c   :  { %3759 = vmatpush1.bf16.msra.mxu1 %v6702_v23  ;;  %3719 = vmatprep.subr.bf16.mxu0 %v6703_v24  ;;  %v6735_v45 = vld [vmem:[#allocation5 + $0x384] ss:$16 sps:$4 sm:$0xff]   ;;  %v6738_v48 = vld [vmem:[#allocation5 + $0x380] ss:$16 sps:$4 sm:$0xff]  }
  0x6d   :  { %3760 = vmatprep.subr.bf16.mxu1 %v6705_v25  ;;  %v116_v46 = vld [vmem:[#allocation2 + $0x8] sm:$0xff]  ;;  %v118_v50 = vld [vmem:[#allocation2 + $0x18] sm:$0xff] }
  0x6e   :  { %v8018_v49 = vpack.c.bf16 %v116_v46, %v116_v46  ;;  %v6739_v51 = vld [vmem:[#allocation5 + $0x164] ss:$16 sps:$4 sm:$0xff]   ;;  %v8020_v52 = vpack.c.bf16 %v118_v50, %v118_v50  ;;  %v6743_v54 = vld [vmem:[#allocation5 + $0x160] ss:$16 sps:$4 sm:$0xff]  }
  0x6f   :  { %3720 = vmatpush1.bf16.msra.mxu0 %v6707_v26  ;;  %v6741_v53 = vld [vmem:[#allocation5 + $0x364] ss:$16 sps:$4 sm:$0xff]   ;;  %v6744_v55 = vld [vmem:[#allocation5 + $0x360] ss:$16 sps:$4 sm:$0xff]  }
  0x70   :  { %3761 = vmatpush1.bf16.msra.mxu1 %v6708_v27  ;;  %3721 = vmatprep.subr.bf16.mxu0 %v6709_v28  ;;  %v6745_v56 = vld [vmem:[#allocation5 + $0x144] ss:$16 sps:$4 sm:$0xff]   ;;  %v6749_v58 = vld [vmem:[#allocation5 + $0x140] ss:$16 sps:$4 sm:$0xff]  }
  0x71   :  { %3762 = vmatprep.subr.bf16.mxu1 %v6711_v29  ;;  %3739 = vmatprep.mubr.bf16.mxu0 %v8018_v49  ;;  %v6747_v57 = vld [vmem:[#allocation5 + $0x344] ss:$16 sps:$4 sm:$0xff]   ;;  %v6750_v59 = vld [vmem:[#allocation5 + $0x340] ss:$16 sps:$4 sm:$0xff]  }
  0x72   :  { %3780 = vmatprep.mubr.bf16.mxu1 %v8020_v52  ;;  %v6751_v60 = vld [vmem:[#allocation5 + $0x124] ss:$16 sps:$4 sm:$0xff]   ;;  %v6755_v62 = vld [vmem:[#allocation5 + $0x120] ss:$16 sps:$4 sm:$0xff]  }
  0x73   :  { %3722 = vmatpush1.bf16.msra.mxu0 %v6713_v30  ;;  %v6753_v61 = vld [vmem:[#allocation5 + $0x324] ss:$16 sps:$4 sm:$0xff]   ;;  %v6756_v63 = vld [vmem:[#allocation5 + $0x320] ss:$16 sps:$4 sm:$0xff]  }
  0x74   :  { %3763 = vmatpush1.bf16.msra.mxu1 %v6714_v31  ;;  %3723 = vmatprep.subr.bf16.mxu0 %v6715_v32  ;;  %v6757_v0 = vld [vmem:[#allocation5 + $0x104] ss:$16 sps:$4 sm:$0xff]   ;;  %v6761_v2 = vld [vmem:[#allocation5 + $0x100] ss:$16 sps:$4 sm:$0xff]  }
  0x75   :  { %3764 = vmatprep.subr.bf16.mxu1 %v6717_v33  ;;  %v6759_v1 = vld [vmem:[#allocation5 + $0x304] ss:$16 sps:$4 sm:$0xff]   ;;  %v6762_v3 = vld [vmem:[#allocation5 + $0x300] ss:$16 sps:$4 sm:$0xff]  }
  0x76   :  { %v6765_v6 = vld [vmem:[#allocation5 + $0x4e4] ss:$16 sps:$4 sm:$0xff]   ;;  %v6763_v10 = vld [vmem:[#allocation5 + $0x4e0] ss:$16 sps:$4 sm:$0xff]  }
  0x77   :  { %3724 = vmatpush2.bf16.msra.mxu0 %v6719_v34  ;;  %v6768_v7 = vld [vmem:[#allocation5 + $0x6e4] ss:$16 sps:$4 sm:$0xff]   ;;  %v6766_v11 = vld [vmem:[#allocation5 + $0x6e0] ss:$16 sps:$4 sm:$0xff]  }
  0x78   :  { %3765 = vmatpush2.bf16.msra.mxu1 %v6720_v35  ;;  %3725 = vmatprep.subr.bf16.mxu0 %v6721_v36  ;;  %v6771_v12 = vld [vmem:[#allocation5 + $0x4c4] ss:$16 sps:$4 sm:$0xff]   ;;  %v6769_v14 = vld [vmem:[#allocation5 + $0x4c0] ss:$16 sps:$4 sm:$0xff]  }
  0x79   :  { %3766 = vmatprep.subr.bf16.mxu1 %v6723_v37  ;;  %v6774_v13 = vld [vmem:[#allocation5 + $0x6c4] ss:$16 sps:$4 sm:$0xff]   ;;  %v6772_v15 = vld [vmem:[#allocation5 + $0x6c0] ss:$16 sps:$4 sm:$0xff]  }
  0x7a   :  { %v6777_v16 = vld [vmem:[#allocation5 + $0x4a4] ss:$16 sps:$4 sm:$0xff]   ;;  %v6775_v18 = vld [vmem:[#allocation5 + $0x4a0] ss:$16 sps:$4 sm:$0xff]  }
  0x7b   :  { %3726 = vmatpush2.bf16.msra.mxu0 %v6725_v38  ;;  %v6780_v17 = vld [vmem:[#allocation5 + $0x6a4] ss:$16 sps:$4 sm:$0xff]   ;;  %v6778_v19 = vld [vmem:[#allocation5 + $0x6a0] ss:$16 sps:$4 sm:$0xff]  }
  0x7c   :  { %3767 = vmatpush2.bf16.msra.mxu1 %v6726_v39  ;;  %3727 = vmatprep.subr.bf16.mxu0 %v6727_v40  ;;  %v6783_v20 = vld [vmem:[#allocation5 + $0x484] ss:$16 sps:$4 sm:$0xff]   ;;  %v6781_v22 = vld [vmem:[#allocation5 + $0x480] ss:$16 sps:$4 sm:$0xff]  }
  0x7d   :  { %3768 = vmatprep.subr.bf16.mxu1 %v6729_v41  ;;  %v6786_v21 = vld [vmem:[#allocation5 + $0x684] ss:$16 sps:$4 sm:$0xff]   ;;  %v6784_v23 = vld [vmem:[#allocation5 + $0x680] ss:$16 sps:$4 sm:$0xff]  }
  0x7e   :  { %v6789_v24 = vld [vmem:[#allocation5 + $0x464] ss:$16 sps:$4 sm:$0xff]   ;;  %v6787_v26 = vld [vmem:[#allocation5 + $0x460] ss:$16 sps:$4 sm:$0xff]  }
  0x7f   :  { %3728 = vmatpush2.bf16.msra.mxu0 %v6731_v42  ;;  %v6792_v25 = vld [vmem:[#allocation5 + $0x664] ss:$16 sps:$4 sm:$0xff]   ;;  %v6790_v27 = vld [vmem:[#allocation5 + $0x660] ss:$16 sps:$4 sm:$0xff]  }
  0x80   :  { %3769 = vmatpush2.bf16.msra.mxu1 %v6732_v43  ;;  %3729 = vmatprep.subr.bf16.mxu0 %v6733_v44  ;;  %v6795_v28 = vld [vmem:[#allocation5 + $0x444] ss:$16 sps:$4 sm:$0xff]   ;;  %v6793_v30 = vld [vmem:[#allocation5 + $0x440] ss:$16 sps:$4 sm:$0xff]  }
  0x81   :  { %3770 = vmatprep.subr.bf16.mxu1 %v6735_v45  ;;  %v6798_v29 = vld [vmem:[#allocation5 + $0x644] ss:$16 sps:$4 sm:$0xff]   ;;  %v6796_v31 = vld [vmem:[#allocation5 + $0x640] ss:$16 sps:$4 sm:$0xff]  }
  0x82   :  { %v6801_v32 = vld [vmem:[#allocation5 + $0x424] ss:$16 sps:$4 sm:$0xff]   ;;  %v6799_v35 = vld [vmem:[#allocation5 + $0x420] ss:$16 sps:$4 sm:$0xff]  }
  0x83   :  { %3730 = vmatpush2.bf16.msra.mxu0 %v6737_v47  ;;  %v6804_v33 = vld [vmem:[#allocation5 + $0x624] ss:$16 sps:$4 sm:$0xff]   ;;  %v6802_v36 = vld [vmem:[#allocation5 + $0x620] ss:$16 sps:$4 sm:$0xff]  }
  0x84   :  { %3771 = vmatpush2.bf16.msra.mxu1 %v6738_v48  ;;  %3731 = vmatprep.subr.bf16.mxu0 %v6739_v51  ;;  %v120_v34 = vld [vmem:[#allocation2 + $0x28] sm:$0xff]  ;;  %v122_v38 = vld [vmem:[#allocation2 + $0x38] sm:$0xff] }
  0x85   :  { %3772 = vmatprep.subr.bf16.mxu1 %v6741_v53  ;;  %v8030_v37 = vpack.c.bf16 %v120_v34, %v120_v34  ;;  %v6807_v39 = vld [vmem:[#allocation5 + $0x404] ss:$16 sps:$4 sm:$0xff]   ;;  %v8032_v40 = vpack.c.bf16 %v122_v38, %v122_v38  ;;  %v6805_v42 = vld [vmem:[#allocation5 + $0x400] ss:$16 sps:$4 sm:$0xff]  }
  0x86   :  { %v6810_v41 = vld [vmem:[#allocation5 + $0x604] ss:$16 sps:$4 sm:$0xff]   ;;  %v6808_v43 = vld [vmem:[#allocation5 + $0x600] ss:$16 sps:$4 sm:$0xff]  }
  0x87   :  { %3732 = vmatpush2.bf16.msra.mxu0 %v6743_v54  ;;  %v6813_v44 = vld [vmem:[#allocation5 + $0x5e4] ss:$16 sps:$4 sm:$0xff]   ;;  %v6811_v46 = vld [vmem:[#allocation5 + $0x5e0] ss:$16 sps:$4 sm:$0xff]  }
  0x88   :  { %3773 = vmatpush2.bf16.msra.mxu1 %v6744_v55  ;;  %3733 = vmatprep.subr.bf16.mxu0 %v6745_v56  ;;  %v6816_v45 = vld [vmem:[#allocation5 + $0x7e4] ss:$16 sps:$4 sm:$0xff]   ;;  %v6814_v47 = vld [vmem:[#allocation5 + $0x7e0] ss:$16 sps:$4 sm:$0xff]  }
  0x89   :  { %3774 = vmatprep.subr.bf16.mxu1 %v6747_v57  ;;  %v6819_v48 = vld [vmem:[#allocation5 + $0x5c4] ss:$16 sps:$4 sm:$0xff]   ;;  %v6817_v51 = vld [vmem:[#allocation5 + $0x5c0] ss:$16 sps:$4 sm:$0xff]  }
  0x8a   :  { %v6822_v50 = vld [vmem:[#allocation5 + $0x7c4] ss:$16 sps:$4 sm:$0xff]   ;;  %v6820_v53 = vld [vmem:[#allocation5 + $0x7c0] ss:$16 sps:$4 sm:$0xff]  }
  0x8b   :  { %3734 = vmatpush2.bf16.msra.mxu0 %v6749_v58  ;;  %v6825_v54 = vld [vmem:[#allocation5 + $0x5a4] ss:$16 sps:$4 sm:$0xff]   ;;  %v6823_v56 = vld [vmem:[#allocation5 + $0x5a0] ss:$16 sps:$4 sm:$0xff]  }
  0x8c   :  { %3775 = vmatpush2.bf16.msra.mxu1 %v6750_v59  ;;  %3735 = vmatprep.subr.bf16.mxu0 %v6751_v60  ;;  %v6828_v55 = vld [vmem:[#allocation5 + $0x7a4] ss:$16 sps:$4 sm:$0xff]   ;;  %v6826_v57 = vld [vmem:[#allocation5 + $0x7a0] ss:$16 sps:$4 sm:$0xff]  }
  0x8d   :  { %3776 = vmatprep.subr.bf16.mxu1 %v6753_v61  ;;  %v6831_v58 = vld [vmem:[#allocation5 + $0x584] ss:$16 sps:$4 sm:$0xff]   ;;  %v6829_v60 = vld [vmem:[#allocation5 + $0x580] ss:$16 sps:$4 sm:$0xff]  }
  0x8e   :  { %v6834_v59 = vld [vmem:[#allocation5 + $0x784] ss:$16 sps:$4 sm:$0xff]   ;;  %v6832_v61 = vld [vmem:[#allocation5 + $0x780] ss:$16 sps:$4 sm:$0xff]  }
  0x8f   :  { %3736 = vmatpush2.bf16.msra.mxu0 %v6755_v62  ;;  %v6837_v62 = vld [vmem:[#allocation5 + $0x564] ss:$16 sps:$4 sm:$0xff]   ;;  %v6841_v4 = vld [vmem:[#allocation5 + $0x540] ss:$16 sps:$4 sm:$0xff]  }
  0x90   :  { %3777 = vmatpush2.bf16.msra.mxu1 %v6756_v63  ;;  %3737 = vmatprep.subr.bf16.mxu0 %v6757_v0  ;;  %v6840_v63 = vld [vmem:[#allocation5 + $0x764] ss:$16 sps:$4 sm:$0xff]   ;;  %v6835_v0 = vld [vmem:[#allocation5 + $0x560] ss:$16 sps:$4 sm:$0xff]  }
  0x91   :  { %3778 = vmatprep.subr.bf16.mxu1 %v6759_v1  ;;  %v6838_v1 = vld [vmem:[#allocation5 + $0x760] ss:$16 sps:$4 sm:$0xff]   ;;  %v6882_v38 = vld [vmem:[#allocation5 + $0xa84] ss:$16 sps:$4 sm:$0xff]  }
  0x92   :  { %v6844_v5 = vld [vmem:[#allocation5 + $0x740] ss:$16 sps:$4 sm:$0xff]  }
  0x93   :  { %3738 = vmatpush2.bf16.msra.mxu0 %v6761_v2  ;;  %v6843_v2 = vld [vmem:[#allocation5 + $0x544] ss:$16 sps:$4 sm:$0xff]   ;;  %v6871_v34 = vld [vmem:[#allocation5 + $0x8a0] ss:$16 sps:$4 sm:$0xff]  }
  0x94   :  { %3779 = vmatpush2.bf16.msra.mxu1 %v6762_v3  ;;  %3789 = vmatprep.subr.bf16.mxu0 %v6765_v6  ;;  %v6846_v3 = vld [vmem:[#allocation5 + $0x744] ss:$16 sps:$4 sm:$0xff]  }
  0x95   :  { %3830 = vmatprep.subr.bf16.mxu1 %v6768_v7  ;;  %v6849_v6 = vld [vmem:[#allocation5 + $0x524] ss:$16 sps:$4 sm:$0xff]  }
  0x96   :  { %3740 = vmatmul.mubr.bf16.vlgmr.msra.gmra.mxu0 %v8024_v8  ;;  %v6852_v7 = vld [vmem:[#allocation5 + $0x724] ss:$16 sps:$4 sm:$0xff]  }
  0x97   :  { %3781 = vmatmul.mubr.bf16.vlgmr.msra.gmra.mxu1 %v8026_v9  ;;  %3790 = vmatpush1.bf16.msra.mxu0 %v6763_v10  ;;  %v6847_v10 = vld [vmem:[#allocation5 + $0x520] ss:$16 sps:$4 sm:$0xff]  }
  0x98   :  { %3831 = vmatpush1.bf16.msra.mxu1 %v6766_v11  ;;  %3791 = vmatprep.subr.bf16.mxu0 %v6771_v12  ;;  %v6850_v11 = vld [vmem:[#allocation5 + $0x720] ss:$16 sps:$4 sm:$0xff]   ;;  %v6855_v12 = vld [vmem:[#allocation5 + $0x504] ss:$16 sps:$4 sm:$0xff]  }
  0x99   :  { %3832 = vmatprep.subr.bf16.mxu1 %v6774_v13  ;;  %3821 = vmatprep.mubr.bf16.mxu0 %v8030_v37  ;;  %v6858_v13 = vld [vmem:[#allocation5 + $0x704] ss:$16 sps:$4 sm:$0xff]  }
  0x9a   :  { %3862 = vmatprep.mubr.bf16.mxu1 %v8032_v40 }
  0x9b   :  { %3792 = vmatpush1.bf16.msra.mxu0 %v6769_v14  ;;  %v6853_v14 = vld [vmem:[#allocation5 + $0x500] ss:$16 sps:$4 sm:$0xff]  }
  0x9c   :  { %3833 = vmatpush1.bf16.msra.mxu1 %v6772_v15  ;;  %3793 = vmatprep.subr.bf16.mxu0 %v6777_v16  ;;  %v6856_v15 = vld [vmem:[#allocation5 + $0x700] ss:$16 sps:$4 sm:$0xff]   ;;  %v119_v16 = vld [vmem:[#allocation2 + $0x20] sm:$0xff] }
  0x9d   :  { %3834 = vmatprep.subr.bf16.mxu1 %v6780_v17  ;;  %v121_v17 = vld [vmem:[#allocation2 + $0x30] sm:$0xff] }
  0x9f   :  { %3794 = vmatpush1.bf16.msra.mxu0 %v6775_v18  ;;  %v6861_v18 = vld [vmem:[#allocation5 + $0x8e4] ss:$16 sps:$4 sm:$0xff]  }
  0xa0   :  { %3835 = vmatpush1.bf16.msra.mxu1 %v6778_v19  ;;  %3795 = vmatprep.subr.bf16.mxu0 %v6783_v20  ;;  %v6864_v19 = vld [vmem:[#allocation5 + $0xae4] ss:$16 sps:$4 sm:$0xff]   ;;  %v8036_v20 = vpack.c.bf16 %v119_v16, %v119_v16  ;;  %v6931_v16 = vld [vmem:[#allocation5 + $0x960] ss:$16 sps:$4 sm:$0xff]  }
  0xa1   :  { %3836 = vmatprep.subr.bf16.mxu1 %v6786_v21  ;;  %v8038_v21 = vpack.c.bf16 %v121_v17, %v121_v17  ;;  %v6934_v17 = vld [vmem:[#allocation5 + $0xb60] ss:$16 sps:$4 sm:$0xff]  }
  0xa3   :  { %3796 = vmatpush1.bf16.msra.mxu0 %v6781_v22  ;;  %v6859_v22 = vld [vmem:[#allocation5 + $0x8e0] ss:$16 sps:$4 sm:$0xff]  }
  0xa4   :  { %3837 = vmatpush1.bf16.msra.mxu1 %v6784_v23  ;;  %3797 = vmatprep.subr.bf16.mxu0 %v6789_v24  ;;  %v6862_v23 = vld [vmem:[#allocation5 + $0xae0] ss:$16 sps:$4 sm:$0xff]   ;;  %v6867_v24 = vld [vmem:[#allocation5 + $0x8c4] ss:$16 sps:$4 sm:$0xff]  }
  0xa5   :  { %3838 = vmatprep.subr.bf16.mxu1 %v6792_v25  ;;  %v6870_v25 = vld [vmem:[#allocation5 + $0xac4] ss:$16 sps:$4 sm:$0xff]  }
  0xa7   :  { %3798 = vmatpush1.bf16.msra.mxu0 %v6787_v26  ;;  %v124_v26 = vld [vmem:[#allocation2 + $0x48] sm:$0xff] }
  0xa8   :  { %3839 = vmatpush1.bf16.msra.mxu1 %v6790_v27  ;;  %3799 = vmatprep.subr.bf16.mxu0 %v6795_v28  ;;  %v6865_v27 = vld [vmem:[#allocation5 + $0x8c0] ss:$16 sps:$4 sm:$0xff]  }
  0xa9   :  { %3840 = vmatprep.subr.bf16.mxu1 %v6798_v29  ;;  %v6868_v28 = vld [vmem:[#allocation5 + $0xac0] ss:$16 sps:$4 sm:$0xff]   ;;  %v8042_v29 = vpack.c.bf16 %v124_v26, %v124_v26 }
  0xaa   :  { %v6943_v26 = vld [vmem:[#allocation5 + $0x920] ss:$16 sps:$4 sm:$0xff]  }
  0xab   :  { %3800 = vmatpush1.bf16.msra.mxu0 %v6793_v30  ;;  %v126_v30 = vld [vmem:[#allocation2 + $0x58] sm:$0xff] }
  0xac   :  { %3841 = vmatpush1.bf16.msra.mxu1 %v6796_v31  ;;  %3801 = vmatprep.subr.bf16.mxu0 %v6801_v32  ;;  %v6873_v31 = vld [vmem:[#allocation5 + $0x8a4] ss:$16 sps:$4 sm:$0xff]   ;;  %v8044_v32 = vpack.c.bf16 %v126_v30, %v126_v30 }
  0xad   :  { %3842 = vmatprep.subr.bf16.mxu1 %v6804_v33  ;;  %v6876_v33 = vld [vmem:[#allocation5 + $0xaa4] ss:$16 sps:$4 sm:$0xff]  }
  0xae   :  { %v6954_v30 = vld [vmem:[#allocation5 + $0xb04] ss:$16 sps:$4 sm:$0xff]  }
  0xaf   :  { %3802 = vmatpush1.bf16.msra.mxu0 %v6799_v35  ;;  %v6874_v35 = vld [vmem:[#allocation5 + $0xaa0] ss:$16 sps:$4 sm:$0xff]  }
  0xb0   :  { %3843 = vmatpush1.bf16.msra.mxu1 %v6802_v36  ;;  %3803 = vmatprep.subr.bf16.mxu0 %v6807_v39  ;;  %v6879_v36 = vld [vmem:[#allocation5 + $0x884] ss:$16 sps:$4 sm:$0xff]   ;;  %v6877_v39 = vld [vmem:[#allocation5 + $0x880] ss:$16 sps:$4 sm:$0xff]  }
  0xb1   :  { %3844 = vmatprep.subr.bf16.mxu1 %v6810_v41  ;;  %v6880_v41 = vld [vmem:[#allocation5 + $0xa80] ss:$16 sps:$4 sm:$0xff]  }
  0xb3   :  { %3804 = vmatpush1.bf16.msra.mxu0 %v6805_v42  ;;  %v6885_v42 = vld [vmem:[#allocation5 + $0x864] ss:$16 sps:$4 sm:$0xff]  }
  0xb4   :  { %3845 = vmatpush1.bf16.msra.mxu1 %v6808_v43  ;;  %3805 = vmatprep.subr.bf16.mxu0 %v6813_v44  ;;  %v6888_v43 = vld [vmem:[#allocation5 + $0xa64] ss:$16 sps:$4 sm:$0xff]   ;;  %v6883_v44 = vld [vmem:[#allocation5 + $0x860] ss:$16 sps:$4 sm:$0xff]  }
  0xb5   :  { %3846 = vmatprep.subr.bf16.mxu1 %v6816_v45  ;;  %v6886_v45 = vld [vmem:[#allocation5 + $0xa60] ss:$16 sps:$4 sm:$0xff]  }
  0xb7   :  { %3806 = vmatpush2.bf16.msra.mxu0 %v6811_v46  ;;  %v6891_v46 = vld [vmem:[#allocation5 + $0x844] ss:$16 sps:$4 sm:$0xff]  }
  0xb8   :  { %3847 = vmatpush2.bf16.msra.mxu1 %v6814_v47  ;;  %3807 = vmatprep.subr.bf16.mxu0 %v6819_v48  ;;  %v6894_v47 = vld [vmem:[#allocation5 + $0xa44] ss:$16 sps:$4 sm:$0xff]   ;;  %v6889_v48 = vld [vmem:[#allocation5 + $0x840] ss:$16 sps:$4 sm:$0xff]  }
  0xb9   :  { %3848 = vmatprep.subr.bf16.mxu1 %v6822_v50  ;;  %v6892_v50 = vld [vmem:[#allocation5 + $0xa40] ss:$16 sps:$4 sm:$0xff]  }
  0xbb   :  { %3808 = vmatpush2.bf16.msra.mxu0 %v6817_v51  ;;  %v6897_v51 = vld [vmem:[#allocation5 + $0x824] ss:$16 sps:$4 sm:$0xff]  }
  0xbc   :  { %3849 = vmatpush2.bf16.msra.mxu1 %v6820_v53  ;;  %3809 = vmatprep.subr.bf16.mxu0 %v6825_v54  ;;  %v6900_v53 = vld [vmem:[#allocation5 + $0xa24] ss:$16 sps:$4 sm:$0xff]   ;;  %v6895_v54 = vld [vmem:[#allocation5 + $0x820] ss:$16 sps:$4 sm:$0xff]  }
  0xbd   :  { %3850 = vmatprep.subr.bf16.mxu1 %v6828_v55  ;;  %v6898_v55 = vld [vmem:[#allocation5 + $0xa20] ss:$16 sps:$4 sm:$0xff]  }
  0xbf   :  { %3810 = vmatpush2.bf16.msra.mxu0 %v6823_v56  ;;  %v6903_v56 = vld [vmem:[#allocation5 + $0x804] ss:$16 sps:$4 sm:$0xff]  }
  0xc0   :  { %3851 = vmatpush2.bf16.msra.mxu1 %v6826_v57  ;;  %3811 = vmatprep.subr.bf16.mxu0 %v6831_v58  ;;  %v6906_v57 = vld [vmem:[#allocation5 + $0xa04] ss:$16 sps:$4 sm:$0xff]   ;;  %v6901_v58 = vld [vmem:[#allocation5 + $0x800] ss:$16 sps:$4 sm:$0xff]  }
  0xc1   :  { %3852 = vmatprep.subr.bf16.mxu1 %v6834_v59  ;;  %v6904_v59 = vld [vmem:[#allocation5 + $0xa00] ss:$16 sps:$4 sm:$0xff]  }
  0xc3   :  { %3812 = vmatpush2.bf16.msra.mxu0 %v6829_v60  ;;  %v6909_v60 = vld [vmem:[#allocation5 + $0x9e4] ss:$16 sps:$4 sm:$0xff]  }
  0xc4   :  { %3853 = vmatpush2.bf16.msra.mxu1 %v6832_v61  ;;  %3813 = vmatprep.subr.bf16.mxu0 %v6837_v62  ;;  %v6912_v61 = vld [vmem:[#allocation5 + $0xbe4] ss:$16 sps:$4 sm:$0xff]   ;;  %v6907_v62 = vld [vmem:[#allocation5 + $0x9e0] ss:$16 sps:$4 sm:$0xff]  }
  0xc5   :  { %3854 = vmatprep.subr.bf16.mxu1 %v6840_v63  ;;  %v6910_v63 = vld [vmem:[#allocation5 + $0xbe0] ss:$16 sps:$4 sm:$0xff]  }
  0xc7   :  { %3814 = vmatpush2.bf16.msra.mxu0 %v6835_v0  ;;  %v6915_v0 = vld [vmem:[#allocation5 + $0x9c4] ss:$16 sps:$4 sm:$0xff]  }
  0xc8   :  { %3855 = vmatpush2.bf16.msra.mxu1 %v6838_v1  ;;  %3815 = vmatprep.subr.bf16.mxu0 %v6843_v2  ;;  %v6918_v1 = vld [vmem:[#allocation5 + $0xbc4] ss:$16 sps:$4 sm:$0xff]   ;;  %v6913_v2 = vld [vmem:[#allocation5 + $0x9c0] ss:$16 sps:$4 sm:$0xff]  }
  0xc9   :  { %3856 = vmatprep.subr.bf16.mxu1 %v6846_v3  ;;  %v6916_v3 = vld [vmem:[#allocation5 + $0xbc0] ss:$16 sps:$4 sm:$0xff]  }
  0xcb   :  { %3816 = vmatpush2.bf16.msra.mxu0 %v6841_v4  ;;  %v6921_v4 = vld [vmem:[#allocation5 + $0x9a4] ss:$16 sps:$4 sm:$0xff]  }
  0xcc   :  { %3857 = vmatpush2.bf16.msra.mxu1 %v6844_v5  ;;  %3817 = vmatprep.subr.bf16.mxu0 %v6849_v6  ;;  %v6924_v5 = vld [vmem:[#allocation5 + $0xba4] ss:$16 sps:$4 sm:$0xff]   ;;  %v6919_v6 = vld [vmem:[#allocation5 + $0x9a0] ss:$16 sps:$4 sm:$0xff]  }
  0xcd   :  { %3858 = vmatprep.subr.bf16.mxu1 %v6852_v7  ;;  %v6922_v7 = vld [vmem:[#allocation5 + $0xba0] ss:$16 sps:$4 sm:$0xff]  }
  0xcf   :  { %3818 = vmatpush2.bf16.msra.mxu0 %v6847_v10  ;;  %v6927_v10 = vld [vmem:[#allocation5 + $0x984] ss:$16 sps:$4 sm:$0xff]  }
  0xd0   :  { %3859 = vmatpush2.bf16.msra.mxu1 %v6850_v11  ;;  %3819 = vmatprep.subr.bf16.mxu0 %v6855_v12  ;;  %v6930_v11 = vld [vmem:[#allocation5 + $0xb84] ss:$16 sps:$4 sm:$0xff]   ;;  %v6925_v12 = vld [vmem:[#allocation5 + $0x980] ss:$16 sps:$4 sm:$0xff]  }
  0xd1   :  { %3860 = vmatprep.subr.bf16.mxu1 %v6858_v13  ;;  %v6928_v13 = vld [vmem:[#allocation5 + $0xb80] ss:$16 sps:$4 sm:$0xff]  }
  0xd3   :  { %3820 = vmatpush2.bf16.msra.mxu0 %v6853_v14  ;;  %v6933_v14 = vld [vmem:[#allocation5 + $0x964] ss:$16 sps:$4 sm:$0xff]  }
  0xd4   :  { %3861 = vmatpush2.bf16.msra.mxu1 %v6856_v15  ;;  %3871 = vmatprep.subr.bf16.mxu0 %v6861_v18  ;;  %v6936_v15 = vld [vmem:[#allocation5 + $0xb64] ss:$16 sps:$4 sm:$0xff]  }
  0xd5   :  { %3912 = vmatprep.subr.bf16.mxu1 %v6864_v19  ;;  %v6939_v18 = vld [vmem:[#allocation5 + $0x944] ss:$16 sps:$4 sm:$0xff]  }
  0xd6   :  { %3822 = vmatmul.mubr.bf16.vlgmr.msra.gmra.mxu0 %v8036_v20  ;;  %v6942_v19 = vld [vmem:[#allocation5 + $0xb44] ss:$16 sps:$4 sm:$0xff]  }
  0xd7   :  { %3863 = vmatmul.mubr.bf16.vlgmr.msra.gmra.mxu1 %v8038_v21  ;;  %3872 = vmatpush1.bf16.msra.mxu0 %v6859_v22  ;;  %v6937_v22 = vld [vmem:[#allocation5 + $0x940] ss:$16 sps:$4 sm:$0xff]  }
  0xd8   :  { %3913 = vmatpush1.bf16.msra.mxu1 %v6862_v23  ;;  %3873 = vmatprep.subr.bf16.mxu0 %v6867_v24  ;;  %v6940_v23 = vld [vmem:[#allocation5 + $0xb40] ss:$16 sps:$4 sm:$0xff]   ;;  %v6945_v24 = vld [vmem:[#allocation5 + $0x924] ss:$16 sps:$4 sm:$0xff]  }
  0xd9   :  { %3914 = vmatprep.subr.bf16.mxu1 %v6870_v25  ;;  %3903 = vmatprep.mubr.bf16.mxu0 %v8042_v29  ;;  %v6948_v25 = vld [vmem:[#allocation5 + $0xb24] ss:$16 sps:$4 sm:$0xff]  }
  0xda   :  { %3944 = vmatprep.mubr.bf16.mxu1 %v8044_v32 }
  0xdb   :  { %3874 = vmatpush1.bf16.msra.mxu0 %v6865_v27  ;;  %v6946_v27 = vld [vmem:[#allocation5 + $0xb20] ss:$16 sps:$4 sm:$0xff]  }
  0xdc   :  { %3915 = vmatpush1.bf16.msra.mxu1 %v6868_v28  ;;  %3875 = vmatprep.subr.bf16.mxu0 %v6873_v31  ;;  %v6951_v28 = vld [vmem:[#allocation5 + $0x904] ss:$16 sps:$4 sm:$0xff]   ;;  %v6949_v31 = vld [vmem:[#allocation5 + $0x900] ss:$16 sps:$4 sm:$0xff]  }
  0xdd   :  { %3916 = vmatprep.subr.bf16.mxu1 %v6876_v33  ;;  %v6952_v33 = vld [vmem:[#allocation5 + $0xb00] ss:$16 sps:$4 sm:$0xff]  }
  0xdf   :  { %3876 = vmatpush1.bf16.msra.mxu0 %v6871_v34  ;;  %v123_v34 = vld [vmem:[#allocation2 + $0x40] sm:$0xff] }
  0xe0   :  { %3917 = vmatpush1.bf16.msra.mxu1 %v6874_v35  ;;  %3877 = vmatprep.subr.bf16.mxu0 %v6879_v36  ;;  %v125_v35 = vld [vmem:[#allocation2 + $0x50] sm:$0xff]  ;;  %v6957_v36 = vld [vmem:[#allocation5 + $0xce4] ss:$16 sps:$4 sm:$0xff]  }
  0xe1   :  { %3918 = vmatprep.subr.bf16.mxu1 %v6882_v38  ;;  %v6960_v38 = vld [vmem:[#allocation5 + $0xee4] ss:$16 sps:$4 sm:$0xff]  }
  0xe3   :  { %3878 = vmatpush1.bf16.msra.mxu0 %v6877_v39  ;;  %v128_v39 = vld [vmem:[#allocation2 + $0x68] sm:$0xff] }
  0xe4   :  { %3919 = vmatpush1.bf16.msra.mxu1 %v6880_v41  ;;  %3879 = vmatprep.subr.bf16.mxu0 %v6885_v42  ;;  %v8048_v41 = vpack.c.bf16 %v123_v34, %v123_v34  ;;  %v8050_v42 = vpack.c.bf16 %v125_v35, %v125_v35  ;;  %v7021_v34 = vld [vmem:[#allocation5 + $0xd80] ss:$16 sps:$4 sm:$0xff]  }
  0xe5   :  { %3920 = vmatprep.subr.bf16.mxu1 %v6888_v43  ;;  %v130_v43 = vld [vmem:[#allocation2 + $0x78] sm:$0xff] }
  0xe6   :  { %v7024_v35 = vld [vmem:[#allocation5 + $0xf80] ss:$16 sps:$4 sm:$0xff]  }
  0xe7   :  { %3880 = vmatpush1.bf16.msra.mxu0 %v6883_v44  ;;  %v6955_v44 = vld [vmem:[#allocation5 + $0xce0] ss:$16 sps:$4 sm:$0xff]  }
  0xe8   :  { %3921 = vmatpush1.bf16.msra.mxu1 %v6886_v45  ;;  %3881 = vmatprep.subr.bf16.mxu0 %v6891_v46  ;;  %v6958_v45 = vld [vmem:[#allocation5 + $0xee0] ss:$16 sps:$4 sm:$0xff]   ;;  %v6963_v46 = vld [vmem:[#allocation5 + $0xcc4] ss:$16 sps:$4 sm:$0xff]  }
  0xe9   :  { %3922 = vmatprep.subr.bf16.mxu1 %v6894_v47  ;;  %v6966_v47 = vld [vmem:[#allocation5 + $0xec4] ss:$16 sps:$4 sm:$0xff]  }
  0xeb   :  { %3882 = vmatpush1.bf16.msra.mxu0 %v6889_v48  ;;  %v8052_v48 = vpack.c.bf16 %v128_v39, %v128_v39  ;;  %v7027_v39 = vld [vmem:[#allocation5 + $0xd60] ss:$16 sps:$4 sm:$0xff]  }
  0xec   :  { %3923 = vmatpush1.bf16.msra.mxu1 %v6892_v50  ;;  %3883 = vmatprep.subr.bf16.mxu0 %v6897_v51  ;;  %v8054_v50 = vpack.c.bf16 %v130_v43, %v130_v43  ;;  %v6961_v51 = vld [vmem:[#allocation5 + $0xcc0] ss:$16 sps:$4 sm:$0xff]  }
  0xed   :  { %3924 = vmatprep.subr.bf16.mxu1 %v6900_v53  ;;  %v6964_v53 = vld [vmem:[#allocation5 + $0xec0] ss:$16 sps:$4 sm:$0xff]  }
  0xee   :  { %v7030_v43 = vld [vmem:[#allocation5 + $0xf60] ss:$16 sps:$4 sm:$0xff]  }
  0xef   :  { %3884 = vmatpush1.bf16.msra.mxu0 %v6895_v54  ;;  %v6969_v54 = vld [vmem:[#allocation5 + $0xca4] ss:$16 sps:$4 sm:$0xff]  }
  0xf0   :  { %3925 = vmatpush1.bf16.msra.mxu1 %v6898_v55  ;;  %3885 = vmatprep.subr.bf16.mxu0 %v6903_v56  ;;  %v6972_v55 = vld [vmem:[#allocation5 + $0xea4] ss:$16 sps:$4 sm:$0xff]   ;;  %v6967_v56 = vld [vmem:[#allocation5 + $0xca0] ss:$16 sps:$4 sm:$0xff]  }
  0xf1   :  { %3926 = vmatprep.subr.bf16.mxu1 %v6906_v57  ;;  %v6970_v57 = vld [vmem:[#allocation5 + $0xea0] ss:$16 sps:$4 sm:$0xff]  }
  0xf3   :  { %3886 = vmatpush1.bf16.msra.mxu0 %v6901_v58  ;;  %v6975_v58 = vld [vmem:[#allocation5 + $0xc84] ss:$16 sps:$4 sm:$0xff]  }
  0xf4   :  { %3927 = vmatpush1.bf16.msra.mxu1 %v6904_v59  ;;  %3887 = vmatprep.subr.bf16.mxu0 %v6909_v60  ;;  %v6978_v59 = vld [vmem:[#allocation5 + $0xe84] ss:$16 sps:$4 sm:$0xff]   ;;  %v6973_v60 = vld [vmem:[#allocation5 + $0xc80] ss:$16 sps:$4 sm:$0xff]  }
  0xf5   :  { %3928 = vmatprep.subr.bf16.mxu1 %v6912_v61  ;;  %v6976_v61 = vld [vmem:[#allocation5 + $0xe80] ss:$16 sps:$4 sm:$0xff]  }
  0xf7   :  { %3888 = vmatpush2.bf16.msra.mxu0 %v6907_v62  ;;  %v6981_v62 = vld [vmem:[#allocation5 + $0xc64] ss:$16 sps:$4 sm:$0xff]  }
  0xf8   :  { %3929 = vmatpush2.bf16.msra.mxu1 %v6910_v63  ;;  %3889 = vmatprep.subr.bf16.mxu0 %v6915_v0  ;;  %v6984_v63 = vld [vmem:[#allocation5 + $0xe64] ss:$16 sps:$4 sm:$0xff]   ;;  %v6979_v0 = vld [vmem:[#allocation5 + $0xc60] ss:$16 sps:$4 sm:$0xff]  }
  0xf9   :  { %3930 = vmatprep.subr.bf16.mxu1 %v6918_v1  ;;  %v6982_v1 = vld [vmem:[#allocation5 + $0xe60] ss:$16 sps:$4 sm:$0xff]  }
  0xfb   :  { %3890 = vmatpush2.bf16.msra.mxu0 %v6913_v2  ;;  %v6987_v2 = vld [vmem:[#allocation5 + $0xc44] ss:$16 sps:$4 sm:$0xff]  }
  0xfc   :  { %3931 = vmatpush2.bf16.msra.mxu1 %v6916_v3  ;;  %3891 = vmatprep.subr.bf16.mxu0 %v6921_v4  ;;  %v6990_v3 = vld [vmem:[#allocation5 + $0xe44] ss:$16 sps:$4 sm:$0xff]   ;;  %v6985_v4 = vld [vmem:[#allocation5 + $0xc40] ss:$16 sps:$4 sm:$0xff]  }
  0xfd   :  { %3932 = vmatprep.subr.bf16.mxu1 %v6924_v5  ;;  %v6988_v5 = vld [vmem:[#allocation5 + $0xe40] ss:$16 sps:$4 sm:$0xff]  }
  0xff   :  { %3892 = vmatpush2.bf16.msra.mxu0 %v6919_v6  ;;  %v6993_v6 = vld [vmem:[#allocation5 + $0xc24] ss:$16 sps:$4 sm:$0xff]  }
 0x100   :  { %3933 = vmatpush2.bf16.msra.mxu1 %v6922_v7  ;;  %3893 = vmatprep.subr.bf16.mxu0 %v6927_v10  ;;  %v6996_v7 = vld [vmem:[#allocation5 + $0xe24] ss:$16 sps:$4 sm:$0xff]   ;;  %v6991_v10 = vld [vmem:[#allocation5 + $0xc20] ss:$16 sps:$4 sm:$0xff]  }
 0x101   :  { %3934 = vmatprep.subr.bf16.mxu1 %v6930_v11  ;;  %v6994_v11 = vld [vmem:[#allocation5 + $0xe20] ss:$16 sps:$4 sm:$0xff]  }
 0x103   :  { %3894 = vmatpush2.bf16.msra.mxu0 %v6925_v12  ;;  %v6999_v12 = vld [vmem:[#allocation5 + $0xc04] ss:$16 sps:$4 sm:$0xff]  }
 0x104   :  { %3935 = vmatpush2.bf16.msra.mxu1 %v6928_v13  ;;  %3895 = vmatprep.subr.bf16.mxu0 %v6933_v14  ;;  %v7002_v13 = vld [vmem:[#allocation5 + $0xe04] ss:$16 sps:$4 sm:$0xff]   ;;  %v6997_v14 = vld [vmem:[#allocation5 + $0xc00] ss:$16 sps:$4 sm:$0xff]  }
 0x105   :  { %3936 = vmatprep.subr.bf16.mxu1 %v6936_v15  ;;  %v7000_v15 = vld [vmem:[#allocation5 + $0xe00] ss:$16 sps:$4 sm:$0xff]  }
 0x107   :  { %3896 = vmatpush2.bf16.msra.mxu0 %v6931_v16  ;;  %v7005_v16 = vld [vmem:[#allocation5 + $0xde4] ss:$16 sps:$4 sm:$0xff]  }
 0x108   :  { %3937 = vmatpush2.bf16.msra.mxu1 %v6934_v17  ;;  %3897 = vmatprep.subr.bf16.mxu0 %v6939_v18  ;;  %v7008_v17 = vld [vmem:[#allocation5 + $0xfe4] ss:$16 sps:$4 sm:$0xff]   ;;  %v7003_v18 = vld [vmem:[#allocation5 + $0xde0] ss:$16 sps:$4 sm:$0xff]  }
 0x109   :  { %3938 = vmatprep.subr.bf16.mxu1 %v6942_v19  ;;  %v7006_v19 = vld [vmem:[#allocation5 + $0xfe0] ss:$16 sps:$4 sm:$0xff]  }
 0x10b   :  { %3898 = vmatpush2.bf16.msra.mxu0 %v6937_v22  ;;  %v7011_v22 = vld [vmem:[#allocation5 + $0xdc4] ss:$16 sps:$4 sm:$0xff]  }
 0x10c   :  { %3939 = vmatpush2.bf16.msra.mxu1 %v6940_v23  ;;  %3899 = vmatprep.subr.bf16.mxu0 %v6945_v24  ;;  %v7014_v23 = vld [vmem:[#allocation5 + $0xfc4] ss:$16 sps:$4 sm:$0xff]   ;;  %v7009_v24 = vld [vmem:[#allocation5 + $0xdc0] ss:$16 sps:$4 sm:$0xff]  }
 0x10d   :  { %3940 = vmatprep.subr.bf16.mxu1 %v6948_v25  ;;  %v7012_v25 = vld [vmem:[#allocation5 + $0xfc0] ss:$16 sps:$4 sm:$0xff]  }
 0x10f   :  { %3900 = vmatpush2.bf16.msra.mxu0 %v6943_v26  ;;  %v7017_v26 = vld [vmem:[#allocation5 + $0xda4] ss:$16 sps:$4 sm:$0xff]  }
 0x110   :  { %3941 = vmatpush2.bf16.msra.mxu1 %v6946_v27  ;;  %3901 = vmatprep.subr.bf16.mxu0 %v6951_v28  ;;  %v7020_v27 = vld [vmem:[#allocation5 + $0xfa4] ss:$16 sps:$4 sm:$0xff]   ;;  %v7015_v28 = vld [vmem:[#allocation5 + $0xda0] ss:$16 sps:$4 sm:$0xff]  }
 0x111   :  { %3942 = vmatprep.subr.bf16.mxu1 %v6954_v30  ;;  %v7018_v30 = vld [vmem:[#allocation5 + $0xfa0] ss:$16 sps:$4 sm:$0xff]  }
 0x113   :  { %3902 = vmatpush2.bf16.msra.mxu0 %v6949_v31  ;;  %v7023_v31 = vld [vmem:[#allocation5 + $0xd84] ss:$16 sps:$4 sm:$0xff]  }
 0x114   :  { %3943 = vmatpush2.bf16.msra.mxu1 %v6952_v33  ;;  %3953 = vmatprep.subr.bf16.mxu0 %v6957_v36  ;;  %v7026_v33 = vld [vmem:[#allocation5 + $0xf84] ss:$16 sps:$4 sm:$0xff]  }
 0x115   :  { %3994 = vmatprep.subr.bf16.mxu1 %v6960_v38  ;;  %v7029_v36 = vld [vmem:[#allocation5 + $0xd64] ss:$16 sps:$4 sm:$0xff]  }
 0x116   :  { %3904 = vmatmul.mubr.bf16.vlgmr.msra.gmra.mxu0 %v8048_v41  ;;  %v7032_v38 = vld [vmem:[#allocation5 + $0xf64] ss:$16 sps:$4 sm:$0xff]  }
 0x117   :  { %3945 = vmatmul.mubr.bf16.vlgmr.msra.gmra.mxu1 %v8050_v42  ;;  %3954 = vmatpush1.bf16.msra.mxu0 %v6955_v44  ;;  %v7035_v44 = vld [vmem:[#allocation5 + $0xd44] ss:$16 sps:$4 sm:$0xff]  }
 0x118   :  { %3995 = vmatpush1.bf16.msra.mxu1 %v6958_v45  ;;  %3955 = vmatprep.subr.bf16.mxu0 %v6963_v46  ;;  %v7038_v45 = vld [vmem:[#allocation5 + $0xf44] ss:$16 sps:$4 sm:$0xff]   ;;  %v7033_v46 = vld [vmem:[#allocation5 + $0xd40] ss:$16 sps:$4 sm:$0xff]  }
 0x119   :  { %3996 = vmatprep.subr.bf16.mxu1 %v6966_v47  ;;  %3985 = vmatprep.mubr.bf16.mxu0 %v8052_v48  ;;  %v7036_v47 = vld [vmem:[#allocation5 + $0xf40] ss:$16 sps:$4 sm:$0xff]  }
 0x11a   :  { %4026 = vmatprep.mubr.bf16.mxu1 %v8054_v50 }
 0x11b   :  { %3956 = vmatpush1.bf16.msra.mxu0 %v6961_v51  ;;  %v7041_v51 = vld [vmem:[#allocation5 + $0xd24] ss:$16 sps:$4 sm:$0xff]  }
 0x11c   :  { %3997 = vmatpush1.bf16.msra.mxu1 %v6964_v53  ;;  %3957 = vmatprep.subr.bf16.mxu0 %v6969_v54  ;;  %v743_v53 = vlaneseq  ;;  %v7044_v54 = vld [vmem:[#allocation5 + $0xf24] ss:$16 sps:$4 sm:$0xff]  }
 0x11d   :  { %3998 = vmatprep.subr.bf16.mxu1 %v6972_v55  ;;  %v7039_v55 = vld [vmem:[#allocation5 + $0xd20] ss:$16 sps:$4 sm:$0xff]  }
 0x11f   :  { %3958 = vmatpush1.bf16.msra.mxu0 %v6967_v56  ;;  %v7042_v56 = vld [vmem:[#allocation5 + $0xf20] ss:$16 sps:$4 sm:$0xff]  }
 0x120   :  { %3999 = vmatpush1.bf16.msra.mxu1 %v6970_v57  ;;  %3959 = vmatprep.subr.bf16.mxu0 %v6975_v58  ;;  %v7047_v57 = vld [vmem:[#allocation5 + $0xd04] ss:$16 sps:$4 sm:$0xff]   ;;  %v8060_v58 = vshrl.u32 %v743_v53, 7  ;;  %v7072_v53 = vld [vmem:[#allocation5 + $0xe8] ss:$16 sps:$4 sm:$0xff]  }
 0x121   :  { %4000 = vmatprep.subr.bf16.mxu1 %v6978_v59  ;;  %v7050_v59 = vld [vmem:[#allocation5 + $0xf04] ss:$16 sps:$4 sm:$0xff]  }
 0x123   :  { %3960 = vmatpush1.bf16.msra.mxu0 %v6973_v60  ;;  %v7045_v60 = vld [vmem:[#allocation5 + $0xd00] ss:$16 sps:$4 sm:$0xff]  }
 0x124   :  { %4001 = vmatpush1.bf16.msra.mxu1 %v6976_v61  ;;  %3961 = vmatprep.subr.bf16.mxu0 %v6981_v62  ;;  %v7048_v61 = vld [vmem:[#allocation5 + $0xf00] ss:$16 sps:$4 sm:$0xff]  }
 0x125   :  { %4002 = vmatprep.subr.bf16.mxu1 %v6984_v63  ;;  %v741_v62 = vld [vmem:[#allocation7] sm:$0xf]  ;;  %v127_v63 = vld [vmem:[#allocation2 + $0x60] sm:$0xff] }
 0x127   :  { %3962 = vmatpush1.bf16.msra.mxu0 %v6979_v0  ;;  %v129_v0 = vld [vmem:[#allocation2 + $0x70] sm:$0xff] }
 0x128   :  { %4003 = vmatpush1.bf16.msra.mxu1 %v6982_v1  ;;  %3963 = vmatprep.subr.bf16.mxu0 %v6987_v2  ;;  %v745_v1 = vsub.s32 0, %v8060_v58  ;;  %v7053_v2 = vld [vmem:[#allocation5 + $0x10e4] ss:$16 sps:$4 sm:$0xff]  }
 0x129   :  { %4004 = vmatprep.subr.bf16.mxu1 %v6990_v3  ;;  %v7056_v3 = vld [vmem:[#allocation5 + $0x1244] ss:$16 sps:$4 sm:$0xff]  }
 0x12b   :  { %3964 = vmatpush1.bf16.msra.mxu0 %v6985_v4  ;;  %v7051_v4 = vld [vmem:[#allocation5 + $0x10e0] ss:$16 sps:$4 sm:$0xff]  }
 0x12c   :  { %4005 = vmatpush1.bf16.msra.mxu1 %v6988_v5  ;;  %3965 = vmatprep.subr.bf16.mxu0 %v6993_v6  ;;  %v749_v5 = vsub.s32 1, %v8060_v58  ;;  %v8064_v6 = vpack.c.bf16 %v127_v63, %v127_v63  ;;  %v7089_v63 = vld [vmem:[#allocation5 + $0x1024] ss:$16 sps:$4 sm:$0xff]  }
 0x12d   :  { %4006 = vmatprep.subr.bf16.mxu1 %v6996_v7  ;;  %v8066_v7 = vpack.c.bf16 %v129_v0, %v129_v0  ;;  %v7092_v0 = vld [vmem:[#allocation5 + $0x8c] ss:$16 sps:$4 sm:$0xff]  }
 0x12f   :  { %3966 = vmatpush1.bf16.msra.mxu0 %v6991_v10  ;;  %v7054_v10 = vld [vmem:[#allocation5 + $0x1240] ss:$16 sps:$4 sm:$0xff]  }
 0x130   :  { %4007 = vmatpush1.bf16.msra.mxu1 %v6994_v11  ;;  %3967 = vmatprep.subr.bf16.mxu0 %v6999_v12  ;;  %v132_v11 = vld [vmem:[#allocation2 + $0x88] sm:$0xff]  ;;  %v746_v12 = vrot.slane %v741_v62, %v745_v1 }
 0x131   :  { %4008 = vmatprep.subr.bf16.mxu1 %v7002_v13  ;;  %v7059_v13 = vld [vmem:[#allocation5 + $0x10c4] ss:$16 sps:$4 sm:$0xff]  }
 0x133   :  { %3968 = vmatpush1.bf16.msra.mxu0 %v6997_v14  ;;  %v7062_v14 = vld [vmem:[#allocation5 + $0x1224] ss:$16 sps:$4 sm:$0xff]  }
 0x134   :  { %4009 = vmatpush1.bf16.msra.mxu1 %v7000_v15  ;;  %3969 = vmatprep.subr.bf16.mxu0 %v7005_v16  ;;  %v750_v15 = vrot.slane %v741_v62, %v749_v5  ;;  %v8072_v16 = vpack.c.bf16 %v132_v11, %v132_v11  ;;  %v7084_v62 = vld [vmem:[#allocation5 + $0xa8] ss:$16 sps:$4 sm:$0xff]   ;;  %v7093_v11 = vld [vmem:[#allocation5 + $0x1000] ss:$16 sps:$4 sm:$0xff]  }
 0x135   :  { %4010 = vmatprep.subr.bf16.mxu1 %v7008_v17 }
 0x137   :  { %3970 = vmatpush2.bf16.msra.mxu0 %v7003_v18 }
 0x138   :  { %4011 = vmatpush2.bf16.msra.mxu1 %v7006_v19  ;;  %3971 = vmatprep.subr.bf16.mxu0 %v7011_v22  ;;  %v7057_v19 = vld [vmem:[#allocation5 + $0x10c0] ss:$16 sps:$4 sm:$0xff]  }
 0x139   :  { %4012 = vmatprep.subr.bf16.mxu1 %v7014_v23  ;;  %v7060_v22 = vld [vmem:[#allocation5 + $0x1220] ss:$16 sps:$4 sm:$0xff]  }
 0x13b   :  { %3972 = vmatpush2.bf16.msra.mxu0 %v7009_v24  ;;  %v7065_v24 = vld [vmem:[#allocation5 + $0x10a4] ss:$16 sps:$4 sm:$0xff]  }
 0x13c   :  { %4013 = vmatpush2.bf16.msra.mxu1 %v7012_v25  ;;  %3973 = vmatprep.subr.bf16.mxu0 %v7017_v26 }
 0x13d   :  { %4014 = vmatprep.subr.bf16.mxu1 %v7020_v27  ;;  %v7068_v27 = vld [vmem:[#allocation5 + $0x1204] ss:$16 sps:$4 sm:$0xff]  }
 0x13f   :  { %3974 = vmatpush2.bf16.msra.mxu0 %v7015_v28 }
 0x140   :  { %4015 = vmatpush2.bf16.msra.mxu1 %v7018_v30  ;;  %3975 = vmatprep.subr.bf16.mxu0 %v7023_v31  ;;  %v7063_v31 = vld [vmem:[#allocation5 + $0x10a0] ss:$16 sps:$4 sm:$0xff]  }
 0x141   :  { %4016 = vmatprep.subr.bf16.mxu1 %v7026_v33  ;;  %v7955_v33 = vmov 0  }
 0x143   :  { %3976 = vmatpush2.bf16.msra.mxu0 %v7021_v34 }
 0x144   :  { %4017 = vmatpush2.bf16.msra.mxu1 %v7024_v35  ;;  %3977 = vmatprep.subr.bf16.mxu0 %v7029_v36  ;;  %v7066_v36 = vld [vmem:[#allocation5 + $0x1200] ss:$16 sps:$4 sm:$0xff]  }
 0x145   :  { %4018 = vmatprep.subr.bf16.mxu1 %v7032_v38  ;;  %v7071_v38 = vld [vmem:[#allocation5 + $0x1084] ss:$16 sps:$4 sm:$0xff]  }
 0x147   :  { %3978 = vmatpush2.bf16.msra.mxu0 %v7027_v39 }
 0x148   :  { %4019 = vmatpush2.bf16.msra.mxu1 %v7030_v43  ;;  %3979 = vmatprep.subr.bf16.mxu0 %v7035_v44  ;;  %v133_v43 = vld [vmem:[#allocation2 + $0x90] sm:$0xff] }
 0x149   :  { %4020 = vmatprep.subr.bf16.mxu1 %v7038_v45 }
 0x14b   :  { %3980 = vmatpush2.bf16.msra.mxu0 %v7033_v46  ;;  %v7074_v46 = vld [vmem:[#allocation5 + $0xec] ss:$16 sps:$4 sm:$0xff]  }
 0x14c   :  { %4021 = vmatpush2.bf16.msra.mxu1 %v7036_v47  ;;  %3981 = vmatprep.subr.bf16.mxu0 %v7041_v51  ;;  %v7069_v47 = vld [vmem:[#allocation5 + $0x1080] ss:$16 sps:$4 sm:$0xff]   ;;  %v8082_v51 = vpack.c.bf16 %v133_v43, %v133_v43  ;;  %v7126_v43 = vld [vmem:[#allocation5 + $0x1c8] ss:$16 sps:$4 sm:$0xff]  }
 0x14d   :  { %4022 = vmatprep.subr.bf16.mxu1 %v7044_v54  ;;  %v7077_v54 = vld [vmem:[#allocation5 + $0x1064] ss:$16 sps:$4 sm:$0xff]  }
 0x14f   :  { %3982 = vmatpush2.bf16.msra.mxu0 %v7039_v55  ;;  %v7080_v55 = vld [vmem:[#allocation5 + $0xcc] ss:$16 sps:$4 sm:$0xff]  }
 0x150   :  { %4023 = vmatpush2.bf16.msra.mxu1 %v7042_v56  ;;  %3983 = vmatprep.subr.bf16.mxu0 %v7047_v57  ;;  %v7075_v56 = vld [vmem:[#allocation5 + $0x1060] ss:$16 sps:$4 sm:$0xff]   ;;  %v7078_v57 = vld [vmem:[#allocation5 + $0xc8] ss:$16 sps:$4 sm:$0xff]  }
 0x151   :  { %4024 = vmatprep.subr.bf16.mxu1 %v7050_v59  ;;  %v7083_v59 = vld [vmem:[#allocation5 + $0x1044] ss:$16 sps:$4 sm:$0xff]  }
 0x153   :  { %3984 = vmatpush2.bf16.msra.mxu0 %v7045_v60  ;;  %v7086_v60 = vld [vmem:[#allocation5 + $0xac] ss:$16 sps:$4 sm:$0xff]  }
 0x154   :  { %4025 = vmatpush2.bf16.msra.mxu1 %v7048_v61  ;;  %4035 = vmatprep.subr.bf16.mxu0 %v7053_v2  ;;  %v7081_v61 = vld [vmem:[#allocation5 + $0x1040] ss:$16 sps:$4 sm:$0xff]  }
 0x155   :  { %4086 = vmatprep.subr.bf16.mxu1 %v7056_v3  ;;  %v7087_v2 = vld [vmem:[#allocation5 + $0x1020] ss:$16 sps:$4 sm:$0xff]   ;;  %v7090_v3 = vld [vmem:[#allocation5 + $0x88] ss:$16 sps:$4 sm:$0xff]  }
 0x156   :  { %v3741_v17 = vpop.f32.mrf.mxu0  ;;  %3986 = vmatmul.mubr.bf16.vlgmr.msra.gmra.mxu0 %v8064_v6 }
 0x157   :  { %v3782_v18 = vpop.f32.mrf.mxu1  ;;  %4027 = vmatmul.mubr.bf16.vlgmr.msra.gmra.mxu1 %v8066_v7  ;;  %v3742_v23 = vadd.f32 %v3741_v17, %v746_v12  ;;  %4036 = vmatpush1.bf16.msra.mxu0 %v7051_v4  ;;  %v7095_v4 = vld [vmem:[#allocation5 + $0x1004] ss:$16 sps:$4 sm:$0xff]  }
 0x158   :  { %4087 = vmatpush1.bf16.msra.mxu1 %v7054_v10  ;;  %v3743_v25 = vpop.f32.mrf.mxu0  ;;  %4037 = vmatprep.subr.bf16.mxu0 %v7059_v13  ;;  %v7098_v10 = vld [vmem:[#allocation5 + $0x6c] ss:$16 sps:$4 sm:$0xff]   ;;  %v7101_v12 = vld [vmem:[#allocation5 + $0x11e4] ss:$16 sps:$4 sm:$0xff]  }
 0x159   :  { %v3784_v26 = vpop.f32.mrf.mxu1  ;;  %4088 = vmatprep.subr.bf16.mxu1 %v7062_v14  ;;  %v8076_v28 = vadd.f32 %v3782_v18, %v3742_v23  ;;  %v3744_v30 = vadd.f32 %v3743_v25, %v750_v15  ;;  %4108 = vmatprep.mubr.bf16.mxu1 %v7955_v33  ;;  %v7104_v13 = vld [vmem:[#allocation5 + $0x4c] ss:$16 sps:$4 sm:$0xff]   ;;  %v7099_v14 = vld [vmem:[#allocation5 + $0x11e0] ss:$16 sps:$4 sm:$0xff]   ;;  %v7102_v15 = vld [vmem:[#allocation5 + $0x48] ss:$16 sps:$4 sm:$0xff]  }
 0x15a   :  { %4067 = vmatprep.mubr.bf16.mxu0 %v8072_v16  ;;  %v3745_v34 = vpop.f32.mrf.mxu0  ;;  %v7107_v17 = vld [vmem:[#allocation5 + $0x11c4] ss:$16 sps:$4 sm:$0xff]   ;;  %v7110_v18 = vld [vmem:[#allocation5 + $0x2c] ss:$16 sps:$4 sm:$0xff]   ;;  %v7111_v25 = vld [vmem:[#allocation5 + $0x11a0] ss:$16 sps:$4 sm:$0xff]  }
 0x15b   :  { %v3786_v35 = vpop.f32.mrf.mxu1  ;;  %v8080_v39 = vadd.f32 %v3784_v26, %v3744_v30  ;;  %4038 = vmatpush1.bf16.msra.mxu0 %v7057_v19  ;;  %v7105_v19 = vld [vmem:[#allocation5 + $0x11c0] ss:$16 sps:$4 sm:$0xff]   ;;  %v7113_v23 = vld [vmem:[#allocation5 + $0x11a4] ss:$16 sps:$4 sm:$0xff]   ;;  %v7114_v26 = vld [vmem:[#allocation5 + $0x8] ss:$16 sps:$4 sm:$0xff]  }
 0x15c   :  { %4089 = vmatpush1.bf16.msra.mxu1 %v7060_v22  ;;  %v3746_v44 = vpop.f32.mrf.mxu0  ;;  %4039 = vmatprep.subr.bf16.mxu0 %v7065_v24  ;;  %v7108_v22 = vld [vmem:[#allocation5 + $0x28] ss:$16 sps:$4 sm:$0xff]   ;;  %v7116_v24 = vld [vmem:[#allocation5 + $0xc] ss:$16 sps:$4 sm:$0xff]   ;;  %v7125_v35 = vld [vmem:[#allocation5 + $0x1164] ss:$16 sps:$4 sm:$0xff]  }
 0x15d   :  { %v3787_v45 = vpop.f32.mrf.mxu1  ;;  %4090 = vmatprep.subr.bf16.mxu1 %v7068_v27  ;;  %v7119_v27 = vld [vmem:[#allocation5 + $0x1184] ss:$16 sps:$4 sm:$0xff]   ;;  %v7122_v30 = vld [vmem:[#allocation5 + $0x1ec] ss:$16 sps:$4 sm:$0xff]   ;;  %v7120_v34 = vld [vmem:[#allocation5 + $0x1e8] ss:$16 sps:$4 sm:$0xff]  }
 0x15e   :  { %v7131_v44 = vld [vmem:[#allocation5 + $0x1144] ss:$16 sps:$4 sm:$0xff]   ;;  %v7134_v45 = vld [vmem:[#allocation5 + $0x1ac] ss:$16 sps:$4 sm:$0xff]  }
 0x15f   :  { %4040 = vmatpush1.bf16.msra.mxu0 %v7063_v31  ;;  %v7117_v31 = vld [vmem:[#allocation5 + $0x1180] ss:$16 sps:$4 sm:$0xff]  }
 0x160   :  { %4091 = vmatpush1.bf16.msra.mxu1 %v7066_v36  ;;  %4041 = vmatprep.subr.bf16.mxu0 %v7071_v38  ;;  %v7128_v36 = vld [vmem:[#allocation5 + $0x1cc] ss:$16 sps:$4 sm:$0xff]   ;;  %v7123_v38 = vld [vmem:[#allocation5 + $0x1160] ss:$16 sps:$4 sm:$0xff]  }
 0x161   :  { %4117 = vmatprep.subr.bf16.mxu1 %v7074_v46  ;;  %v7129_v46 = vld [vmem:[#allocation5 + $0x1140] ss:$16 sps:$4 sm:$0xff]  }
 0x163   :  { %6447 = vmatmul.mubr.msk.bf16.vlgmr.msra.gmra.mxu1 %vm3703_vm0, %v8082_v51  ;;  %4042 = vmatpush1.bf16.msra.mxu0 %v7069_v47  ;;  %v7132_v47 = vld [vmem:[#allocation5 + $0x1a8] ss:$16 sps:$4 sm:$0xff]  }
 0x164   :  { %4118 = vmatpush1.bf16.msra.mxu1 %v7072_v53  ;;  %4043 = vmatprep.subr.bf16.mxu0 %v7077_v54  ;;  %v7137_v53 = vld [vmem:[#allocation5 + $0x1124] ss:$16 sps:$4 sm:$0xff]   ;;  %v7140_v54 = vld [vmem:[#allocation5 + $0x18c] ss:$16 sps:$4 sm:$0xff]  }
 0x165   :  { %4119 = vmatprep.subr.bf16.mxu1 %v7080_v55  ;;  %4149 = vmatprep.mubr.bf16.mxu1 %v8018_v49  ;;  %v7096_v49 = vld [vmem:[#allocation5 + $0x68] ss:$16 sps:$4 sm:$0xff]   ;;  %v7135_v55 = vld [vmem:[#allocation5 + $0x1120] ss:$16 sps:$4 sm:$0xff]  }
 0x167   :  { %4044 = vmatpush1.bf16.msra.mxu0 %v7075_v56  ;;  %v7138_v56 = vld [vmem:[#allocation5 + $0x188] ss:$16 sps:$4 sm:$0xff]  }
 0x168   :  { %4120 = vmatpush1.bf16.msra.mxu1 %v7078_v57  ;;  %4045 = vmatprep.subr.bf16.mxu0 %v7083_v59  ;;  %v7143_v57 = vld [vmem:[#allocation5 + $0x1104] ss:$16 sps:$4 sm:$0xff]   ;;  %v7146_v59 = vld [vmem:[#allocation5 + $0x16c] ss:$16 sps:$4 sm:$0xff]  }
 0x169   :  { %4121 = vmatprep.subr.bf16.mxu1 %v7086_v60  ;;  %v7141_v60 = vld [vmem:[#allocation5 + $0x1100] ss:$16 sps:$4 sm:$0xff]  }
 0x16b   :  { %4046 = vmatpush1.bf16.msra.mxu0 %v7081_v61  ;;  %v7144_v61 = vld [vmem:[#allocation5 + $0x168] ss:$16 sps:$4 sm:$0xff]  }
 0x16c   :  { %4122 = vmatpush1.bf16.msra.mxu1 %v7084_v62  ;;  %4047 = vmatprep.subr.bf16.mxu0 %v7089_v63  ;;  %v131_v62 = vld [vmem:[#allocation2 + $0x80] sm:$0xff] }
 0x16d   :  { %4123 = vmatprep.subr.bf16.mxu1 %v7092_v0  ;;  %v7149_v63 = vld [vmem:[#allocation5 + $0x14c] ss:$16 sps:$4 sm:$0xff]  }
 0x16e   :  { %v7152_v0 = vld [vmem:[#allocation5 + $0x2ec] ss:$16 sps:$4 sm:$0xff]  }
 0x16f   :  { %4048 = vmatpush1.bf16.msra.mxu0 %v7087_v2  ;;  %v7147_v2 = vld [vmem:[#allocation5 + $0x148] ss:$16 sps:$4 sm:$0xff]  }
 0x170   :  { %4124 = vmatpush1.bf16.msra.mxu1 %v7090_v3  ;;  %4049 = vmatprep.subr.bf16.mxu0 %v7095_v4  ;;  %v7150_v3 = vld [vmem:[#allocation5 + $0x2e8] ss:$16 sps:$4 sm:$0xff]   ;;  %v8087_v4 = vpack.c.bf16 %v131_v62, %v131_v62 }
 0x171   :  { %4125 = vmatprep.subr.bf16.mxu1 %v7098_v10  ;;  %v7155_v10 = vld [vmem:[#allocation5 + $0x12c] ss:$16 sps:$4 sm:$0xff]   ;;  %v7192_v62 = vld [vmem:[#allocation5 + $0x468] ss:$16 sps:$4 sm:$0xff]  }
 0x173   :  { %4050 = vmatpush1.bf16.msra.mxu0 %v7093_v11  ;;  %v7158_v11 = vld [vmem:[#allocation5 + $0x2cc] ss:$16 sps:$4 sm:$0xff]  }
 0x174   :  { %4126 = vmatpush1.bf16.msra.mxu1 %v7096_v49  ;;  %4051 = vmatprep.subr.bf16.mxu0 %v7101_v12  ;;  %v7153_v49 = vld [vmem:[#allocation5 + $0x128] ss:$16 sps:$4 sm:$0xff]  }
 0x175   :  { %4127 = vmatprep.subr.bf16.mxu1 %v7104_v13  ;;  %v7156_v12 = vld [vmem:[#allocation5 + $0x2c8] ss:$16 sps:$4 sm:$0xff]  }
 0x177   :  { %4052 = vmatpush2.bf16.msra.mxu0 %v7099_v14 }
 0x178   :  { %4128 = vmatpush1.bf16.msra.mxu1 %v7102_v15  ;;  %4053 = vmatprep.subr.bf16.mxu0 %v7107_v17 }
 0x179   :  { %4129 = vmatprep.subr.bf16.mxu1 %v7110_v18 }
 0x17b   :  { %4054 = vmatpush2.bf16.msra.mxu0 %v7105_v19  ;;  %v7161_v19 = vld [vmem:[#allocation5 + $0x10c] ss:$16 sps:$4 sm:$0xff]  }
 0x17c   :  { %4130 = vmatpush1.bf16.msra.mxu1 %v7108_v22  ;;  %4055 = vmatprep.subr.bf16.mxu0 %v7113_v23  ;;  %v7164_v22 = vld [vmem:[#allocation5 + $0x2ac] ss:$16 sps:$4 sm:$0xff]  }
 0x17d   :  { %4131 = vmatprep.subr.bf16.mxu1 %v7116_v24 }
 0x17f   :  { %4056 = vmatpush2.bf16.msra.mxu0 %v7111_v25  ;;  %v7159_v25 = vld [vmem:[#allocation5 + $0x108] ss:$16 sps:$4 sm:$0xff]  }
 0x180   :  { %4132 = vmatpush1.bf16.msra.mxu1 %v7114_v26  ;;  %4057 = vmatprep.subr.bf16.mxu0 %v7119_v27  ;;  %v7162_v26 = vld [vmem:[#allocation5 + $0x2a8] ss:$16 sps:$4 sm:$0xff]  }
 0x181   :  { %4133 = vmatprep.subr.bf16.mxu1 %v7122_v30 }
 0x183   :  { %4058 = vmatpush2.bf16.msra.mxu0 %v7117_v31 }
 0x184   :  { %4134 = vmatpush2.bf16.msra.mxu1 %v7120_v34  ;;  %4059 = vmatprep.subr.bf16.mxu0 %v7125_v35  ;;  %v7167_v35 = vld [vmem:[#allocation5 + $0x28c] ss:$16 sps:$4 sm:$0xff]  }
 0x185   :  { %4135 = vmatprep.subr.bf16.mxu1 %v7128_v36  ;;  %v7170_v36 = vld [vmem:[#allocation5 + $0x4ec] ss:$16 sps:$4 sm:$0xff]  }
 0x187   :  { %4060 = vmatpush2.bf16.msra.mxu0 %v7123_v38  ;;  %v7165_v38 = vld [vmem:[#allocation5 + $0x288] ss:$16 sps:$4 sm:$0xff]  }
 0x188   :  { %4136 = vmatpush2.bf16.msra.mxu1 %v7126_v43  ;;  %4061 = vmatprep.subr.bf16.mxu0 %v7131_v44  ;;  %v7168_v43 = vld [vmem:[#allocation5 + $0x4e8] ss:$16 sps:$4 sm:$0xff]  }
 0x189   :  { %4137 = vmatprep.subr.bf16.mxu1 %v7134_v45  ;;  %v7171_v44 = vld [vmem:[#allocation5 + $0x268] ss:$16 sps:$4 sm:$0xff]  }
 0x18a   :  { %v7174_v45 = vld [vmem:[#allocation5 + $0x4c8] ss:$16 sps:$4 sm:$0xff]  }
 0x18b   :  { %4062 = vmatpush2.bf16.msra.mxu0 %v7129_v46  ;;  %v7179_v46 = vld [vmem:[#allocation5 + $0x24c] ss:$16 sps:$4 sm:$0xff]  }
 0x18c   :  { %4138 = vmatpush2.bf16.msra.mxu1 %v7132_v47  ;;  %4063 = vmatprep.subr.bf16.mxu0 %v7137_v53  ;;  %v7182_v47 = vld [vmem:[#allocation5 + $0x4ac] ss:$16 sps:$4 sm:$0xff]   ;;  %v7177_v53 = vld [vmem:[#allocation5 + $0x248] ss:$16 sps:$4 sm:$0xff]  }
 0x18d   :  { %4139 = vmatprep.subr.bf16.mxu1 %v7140_v54  ;;  %v7180_v54 = vld [vmem:[#allocation5 + $0x4a8] ss:$16 sps:$4 sm:$0xff]  }
 0x18f   :  { %4064 = vmatpush2.bf16.msra.mxu0 %v7135_v55  ;;  %v7185_v55 = vld [vmem:[#allocation5 + $0x22c] ss:$16 sps:$4 sm:$0xff]  }
 0x190   :  { %4140 = vmatpush2.bf16.msra.mxu1 %v7138_v56  ;;  %4065 = vmatprep.subr.bf16.mxu0 %v7143_v57  ;;  %v7188_v56 = vld [vmem:[#allocation5 + $0x48c] ss:$16 sps:$4 sm:$0xff]   ;;  %v7183_v57 = vld [vmem:[#allocation5 + $0x228] ss:$16 sps:$4 sm:$0xff]  }
 0x191   :  { %4141 = vmatprep.subr.bf16.mxu1 %v7146_v59  ;;  %v7191_v59 = vld [vmem:[#allocation5 + $0x20c] ss:$16 sps:$4 sm:$0xff]  }
 0x193   :  { %4066 = vmatpush2.bf16.msra.mxu0 %v7141_v60  ;;  %v7194_v60 = vld [vmem:[#allocation5 + $0x46c] ss:$16 sps:$4 sm:$0xff]  }
 0x194   :  { %4142 = vmatpush2.bf16.msra.mxu1 %v7144_v61  ;;  %4158 = vmatprep.subr.bf16.mxu0 %v7152_v0  ;;  %v7189_v61 = vld [vmem:[#allocation5 + $0x208] ss:$16 sps:$4 sm:$0xff]  }
 0x195   :  { %4143 = vmatprep.subr.bf16.mxu1 %v7149_v63  ;;  %v7200_v63 = vld [vmem:[#allocation5 + $0x44c] ss:$16 sps:$4 sm:$0xff]   ;;  %v7195_v0 = vld [vmem:[#allocation5 + $0x3e8] ss:$16 sps:$4 sm:$0xff]  }
 0x196   :  { %v3823_v13 = vpop.f32.mrf.mxu0  ;;  %4068 = vmatmul.mubr.bf16.vlgmr.msra.gmra.mxu0 %v8087_v4 }
 0x197   :  { %v3864_v14 = vpop.f32.mrf.mxu1  ;;  %v3824_v15 = vadd.f32 %v3823_v13, %v8076_v28  ;;  %4159 = vmatpush1.bf16.msra.mxu0 %v7150_v3  ;;  %4190 = vmatprep.mubr.bf16.mxu0 %v8020_v52  ;;  %v7176_v52 = vld [vmem:[#allocation5 + $0x4cc] ss:$16 sps:$4 sm:$0xff]  }
 0x198   :  { %4144 = vmatpush2.bf16.msra.mxu1 %v7147_v2  ;;  %v3825_v17 = vpop.f32.mrf.mxu0  ;;  %4160 = vmatprep.subr.bf16.mxu0 %v7158_v11  ;;  %v7198_v2 = vld [vmem:[#allocation5 + $0x448] ss:$16 sps:$4 sm:$0xff]   ;;  %v7203_v3 = vld [vmem:[#allocation5 + $0x3cc] ss:$16 sps:$4 sm:$0xff]  }
 0x199   :  { %v3866_v18 = vpop.f32.mrf.mxu1  ;;  %4145 = vmatprep.subr.bf16.mxu1 %v7155_v10  ;;  %v8091_v23 = vadd.f32 %v3864_v14, %v3824_v15  ;;  %v3826_v24 = vadd.f32 %v3825_v17, %v8080_v39  ;;  %v7173_v39 = vld [vmem:[#allocation5 + $0x26c] ss:$16 sps:$4 sm:$0xff]   ;;  %v7201_v11 = vld [vmem:[#allocation5 + $0x3c8] ss:$16 sps:$4 sm:$0xff]  }
 0x19a   :  { %v3827_v27 = vpop.f32.mrf.mxu0  ;;  %v7206_v10 = vld [vmem:[#allocation5 + $0x42c] ss:$16 sps:$4 sm:$0xff]   ;;  %v7207_v14 = vld [vmem:[#allocation5 + $0x3a8] ss:$16 sps:$4 sm:$0xff]  }
 0x19b   :  { %v3868_v30 = vpop.f32.mrf.mxu1  ;;  %v8095_v31 = vadd.f32 %v3866_v18, %v3826_v24  ;;  %4161 = vmatpush1.bf16.msra.mxu0 %v7156_v12  ;;  %v7209_v12 = vld [vmem:[#allocation5 + $0x3ac] ss:$16 sps:$4 sm:$0xff]   ;;  %v7210_v15 = vld [vmem:[#allocation5 + $0x408] ss:$16 sps:$4 sm:$0xff]  }
 0x19c   :  { %4146 = vmatpush2.bf16.msra.mxu1 %v7153_v49  ;;  %v3828_v28 = vpop.f32.mrf.mxu0  ;;  %4162 = vmatprep.subr.bf16.mxu0 %v7164_v22  ;;  %v7204_v49 = vld [vmem:[#allocation5 + $0x428] ss:$16 sps:$4 sm:$0xff]   ;;  %v7212_v13 = vld [vmem:[#allocation5 + $0x40c] ss:$16 sps:$4 sm:$0xff]  }
 0x19d   :  { %v3869_v34 = vpop.f32.mrf.mxu1  ;;  %4147 = vmatprep.subr.bf16.mxu1 %v7161_v19  ;;  %v7215_v17 = vld [vmem:[#allocation5 + $0x38c] ss:$16 sps:$4 sm:$0xff]   ;;  %v7213_v19 = vld [vmem:[#allocation5 + $0x388] ss:$16 sps:$4 sm:$0xff]  }
 0x19e   :  { %v7218_v18 = vld [vmem:[#allocation5 + $0x5ec] ss:$16 sps:$4 sm:$0xff]   ;;  %v7216_v22 = vld [vmem:[#allocation5 + $0x5e8] ss:$16 sps:$4 sm:$0xff]  }
 0x19f   :  { %4163 = vmatpush1.bf16.msra.mxu0 %v7162_v26  ;;  %v7221_v24 = vld [vmem:[#allocation5 + $0x36c] ss:$16 sps:$4 sm:$0xff]   ;;  %v7219_v26 = vld [vmem:[#allocation5 + $0x368] ss:$16 sps:$4 sm:$0xff]  }
 0x1a0   :  { %4148 = vmatpush2.bf16.msra.mxu1 %v7159_v25  ;;  %4164 = vmatprep.subr.bf16.mxu0 %v7167_v35  ;;  %v7224_v25 = vld [vmem:[#allocation5 + $0x5cc] ss:$16 sps:$4 sm:$0xff]   ;;  %v7222_v27 = vld [vmem:[#allocation5 + $0x5c8] ss:$16 sps:$4 sm:$0xff]  }
 0x1a1   :  { %4199 = vmatprep.subr.bf16.mxu1 %v7170_v36  ;;  %v7227_v30 = vld [vmem:[#allocation5 + $0x34c] ss:$16 sps:$4 sm:$0xff]   ;;  %v7225_v34 = vld [vmem:[#allocation5 + $0x348] ss:$16 sps:$4 sm:$0xff]  }
 0x1a2   :  { %v7230_v28 = vld [vmem:[#allocation5 + $0x5ac] ss:$16 sps:$4 sm:$0xff]   ;;  %v7228_v35 = vld [vmem:[#allocation5 + $0x5a8] ss:$16 sps:$4 sm:$0xff]  }
 0x1a3   :  { %4150 = vmatmul.mubr.bf16.vlgmr.msra.gmra.mxu1 %v8024_v8  ;;  %4165 = vmatpush1.bf16.msra.mxu0 %v7165_v38  ;;  %v7186_v8 = vld [vmem:[#allocation5 + $0x488] ss:$16 sps:$4 sm:$0xff]   ;;  %v7233_v36 = vld [vmem:[#allocation5 + $0x32c] ss:$16 sps:$4 sm:$0xff]  }
 0x1a4   :  { %4200 = vmatpush1.bf16.msra.mxu1 %v7168_v43  ;;  %4166 = vmatprep.subr.bf16.mxu0 %v7173_v39  ;;  %v7236_v38 = vld [vmem:[#allocation5 + $0x58c] ss:$16 sps:$4 sm:$0xff]   ;;  %v7231_v43 = vld [vmem:[#allocation5 + $0x328] ss:$16 sps:$4 sm:$0xff]  }
 0x1a5   :  { %4201 = vmatprep.subr.bf16.mxu1 %v7176_v52  ;;  %4231 = vmatprep.mubr.bf16.mxu1 %v8030_v37  ;;  %v7197_v37 = vld [vmem:[#allocation5 + $0x3ec] ss:$16 sps:$4 sm:$0xff]   ;;  %v7234_v39 = vld [vmem:[#allocation5 + $0x588] ss:$16 sps:$4 sm:$0xff]  }
 0x1a6   :  { %v7239_v52 = vld [vmem:[#allocation5 + $0x30c] ss:$16 sps:$4 sm:$0xff]  }
 0x1a7   :  { %4167 = vmatpush1.bf16.msra.mxu0 %v7171_v44  ;;  %v7242_v44 = vld [vmem:[#allocation5 + $0x56c] ss:$16 sps:$4 sm:$0xff]  }
 0x1a8   :  { %4202 = vmatpush1.bf16.msra.mxu1 %v7174_v45  ;;  %4168 = vmatprep.subr.bf16.mxu0 %v7179_v46  ;;  %v7237_v45 = vld [vmem:[#allocation5 + $0x308] ss:$16 sps:$4 sm:$0xff]  }
 0x1a9   :  { %4203 = vmatprep.subr.bf16.mxu1 %v7182_v47  ;;  %v7240_v46 = vld [vmem:[#allocation5 + $0x568] ss:$16 sps:$4 sm:$0xff]   ;;  %v7245_v47 = vld [vmem:[#allocation5 + $0x54c] ss:$16 sps:$4 sm:$0xff]  }
 0x1ab   :  { %4169 = vmatpush1.bf16.msra.mxu0 %v7177_v53  ;;  %v7248_v53 = vld [vmem:[#allocation5 + $0x6ec] ss:$16 sps:$4 sm:$0xff]  }
 0x1ac   :  { %4204 = vmatpush1.bf16.msra.mxu1 %v7180_v54  ;;  %4170 = vmatprep.subr.bf16.mxu0 %v7185_v55  ;;  %v7243_v54 = vld [vmem:[#allocation5 + $0x548] ss:$16 sps:$4 sm:$0xff]  }
 0x1ad   :  { %4205 = vmatprep.subr.bf16.mxu1 %v7188_v56  ;;  %v7246_v55 = vld [vmem:[#allocation5 + $0x6e8] ss:$16 sps:$4 sm:$0xff]   ;;  %v7251_v56 = vld [vmem:[#allocation5 + $0x52c] ss:$16 sps:$4 sm:$0xff]  }
 0x1af   :  { %4171 = vmatpush1.bf16.msra.mxu0 %v7183_v57  ;;  %v7254_v57 = vld [vmem:[#allocation5 + $0x6cc] ss:$16 sps:$4 sm:$0xff]  }
 0x1b0   :  { %4206 = vmatpush1.bf16.msra.mxu1 %v7186_v8  ;;  %4172 = vmatprep.subr.bf16.mxu0 %v7191_v59  ;;  %v7249_v8 = vld [vmem:[#allocation5 + $0x528] ss:$16 sps:$4 sm:$0xff]  }
 0x1b1   :  { %4207 = vmatprep.subr.bf16.mxu1 %v7194_v60  ;;  %v7252_v59 = vld [vmem:[#allocation5 + $0x6c8] ss:$16 sps:$4 sm:$0xff]  }
 0x1b3   :  { %4173 = vmatpush1.bf16.msra.mxu0 %v7189_v61 }
 0x1b4   :  { %4208 = vmatpush1.bf16.msra.mxu1 %v7192_v62  ;;  %4174 = vmatprep.subr.bf16.mxu0 %v7197_v37 }
 0x1b5   :  { %4209 = vmatprep.subr.bf16.mxu1 %v7200_v63 }
 0x1b7   :  { %4175 = vmatpush2.bf16.msra.mxu0 %v7195_v0  ;;  %v7257_v0 = vld [vmem:[#allocation5 + $0x50c] ss:$16 sps:$4 sm:$0xff]  }
 0x1b8   :  { %4210 = vmatpush1.bf16.msra.mxu1 %v7198_v2  ;;  %4176 = vmatprep.subr.bf16.mxu0 %v7203_v3  ;;  %v7260_v2 = vld [vmem:[#allocation5 + $0x6ac] ss:$16 sps:$4 sm:$0xff]  }
 0x1b9   :  { %4211 = vmatprep.subr.bf16.mxu1 %v7206_v10 }
 0x1bb   :  { %4177 = vmatpush2.bf16.msra.mxu0 %v7201_v11  ;;  %v7255_v11 = vld [vmem:[#allocation5 + $0x508] ss:$16 sps:$4 sm:$0xff]  }
 0x1bc   :  { %4212 = vmatpush1.bf16.msra.mxu1 %v7204_v49  ;;  %4178 = vmatprep.subr.bf16.mxu0 %v7209_v12  ;;  %v7258_v49 = vld [vmem:[#allocation5 + $0x6a8] ss:$16 sps:$4 sm:$0xff]  }
 0x1bd   :  { %4213 = vmatprep.subr.bf16.mxu1 %v7212_v13 }
 0x1bf   :  { %4179 = vmatpush2.bf16.msra.mxu0 %v7207_v14 }
 0x1c0   :  { %4214 = vmatpush1.bf16.msra.mxu1 %v7210_v15  ;;  %4180 = vmatprep.subr.bf16.mxu0 %v7215_v17  ;;  %v7263_v15 = vld [vmem:[#allocation5 + $0x68c] ss:$16 sps:$4 sm:$0xff]  }
 0x1c1   :  { %4215 = vmatprep.subr.bf16.mxu1 %v7218_v18  ;;  %v7266_v17 = vld [vmem:[#allocation5 + $0x8ec] ss:$16 sps:$4 sm:$0xff]   ;;  %v7261_v18 = vld [vmem:[#allocation5 + $0x688] ss:$16 sps:$4 sm:$0xff]  }
 0x1c3   :  { %4181 = vmatpush2.bf16.msra.mxu0 %v7213_v19  ;;  %v7264_v19 = vld [vmem:[#allocation5 + $0x8e8] ss:$16 sps:$4 sm:$0xff]  }
 0x1c4   :  { %4216 = vmatpush2.bf16.msra.mxu1 %v7216_v22  ;;  %4182 = vmatprep.subr.bf16.mxu0 %v7221_v24  ;;  %v7267_v22 = vld [vmem:[#allocation5 + $0x668] ss:$16 sps:$4 sm:$0xff]  }
 0x1c5   :  { %4217 = vmatprep.subr.bf16.mxu1 %v7224_v25  ;;  %v7270_v24 = vld [vmem:[#allocation5 + $0x8c8] ss:$16 sps:$4 sm:$0xff]   ;;  %v7275_v25 = vld [vmem:[#allocation5 + $0x64c] ss:$16 sps:$4 sm:$0xff]  }
 0x1c7   :  { %4183 = vmatpush2.bf16.msra.mxu0 %v7219_v26  ;;  %v7278_v26 = vld [vmem:[#allocation5 + $0x8ac] ss:$16 sps:$4 sm:$0xff]  }
 0x1c8   :  { %4218 = vmatpush2.bf16.msra.mxu1 %v7222_v27  ;;  %4184 = vmatprep.subr.bf16.mxu0 %v7227_v30  ;;  %v7273_v27 = vld [vmem:[#allocation5 + $0x648] ss:$16 sps:$4 sm:$0xff]  }
 0x1c9   :  { %4219 = vmatprep.subr.bf16.mxu1 %v7230_v28  ;;  %v7276_v30 = vld [vmem:[#allocation5 + $0x8a8] ss:$16 sps:$4 sm:$0xff]   ;;  %v7281_v28 = vld [vmem:[#allocation5 + $0x62c] ss:$16 sps:$4 sm:$0xff]  }
 0x1cb   :  { %4185 = vmatpush2.bf16.msra.mxu0 %v7225_v34  ;;  %v7284_v34 = vld [vmem:[#allocation5 + $0x88c] ss:$16 sps:$4 sm:$0xff]  }
 0x1cc   :  { %4220 = vmatpush2.bf16.msra.mxu1 %v7228_v35  ;;  %4186 = vmatprep.subr.bf16.mxu0 %v7233_v36  ;;  %v7279_v35 = vld [vmem:[#allocation5 + $0x628] ss:$16 sps:$4 sm:$0xff]   ;;  %v7287_v36 = vld [vmem:[#allocation5 + $0x60c] ss:$16 sps:$4 sm:$0xff]  }
 0x1cd   :  { %4221 = vmatprep.subr.bf16.mxu1 %v7236_v38  ;;  %v7290_v38 = vld [vmem:[#allocation5 + $0x86c] ss:$16 sps:$4 sm:$0xff]  }
 0x1cf   :  { %4187 = vmatpush2.bf16.msra.mxu0 %v7231_v43  ;;  %v7285_v43 = vld [vmem:[#allocation5 + $0x608] ss:$16 sps:$4 sm:$0xff]  }
 0x1d0   :  { %4222 = vmatpush2.bf16.msra.mxu1 %v7234_v39  ;;  %4188 = vmatprep.subr.bf16.mxu0 %v7239_v52  ;;  %v7288_v39 = vld [vmem:[#allocation5 + $0x868] ss:$16 sps:$4 sm:$0xff]   ;;  %v7296_v52 = vld [vmem:[#allocation5 + $0x84c] ss:$16 sps:$4 sm:$0xff]  }
 0x1d1   :  { %4223 = vmatprep.subr.bf16.mxu1 %v7242_v44  ;;  %v7291_v44 = vld [vmem:[#allocation5 + $0x7e8] ss:$16 sps:$4 sm:$0xff]  }
 0x1d3   :  { %4189 = vmatpush2.bf16.msra.mxu0 %v7237_v45  ;;  %v7294_v45 = vld [vmem:[#allocation5 + $0x848] ss:$16 sps:$4 sm:$0xff]  }
 0x1d4   :  { %4224 = vmatpush2.bf16.msra.mxu1 %v7240_v46  ;;  %4240 = vmatprep.subr.bf16.mxu0 %v7248_v53  ;;  %v7299_v46 = vld [vmem:[#allocation5 + $0x7cc] ss:$16 sps:$4 sm:$0xff]   ;;  %v7297_v53 = vld [vmem:[#allocation5 + $0x7c8] ss:$16 sps:$4 sm:$0xff]  }
 0x1d5   :  { %4225 = vmatprep.subr.bf16.mxu1 %v7245_v47  ;;  %v7302_v47 = vld [vmem:[#allocation5 + $0x82c] ss:$16 sps:$4 sm:$0xff]  }
 0x1d6   :  { %v3905_v60 = vpop.f32.mrf.mxu0  ;;  %4191 = vmatmul.mubr.bf16.vlgmr.msra.gmra.mxu0 %v8026_v9 }
 0x1d7   :  { %v3946_v61 = vpop.f32.mrf.mxu1  ;;  %v3906_v62 = vadd.f32 %v3905_v60, %v8091_v23  ;;  %4241 = vmatpush1.bf16.msra.mxu0 %v7246_v55  ;;  %4272 = vmatprep.mubr.bf16.mxu0 %v8032_v40  ;;  %v7272_v40 = vld [vmem:[#allocation5 + $0x8cc] ss:$16 sps:$4 sm:$0xff]  }
 0x1d8   :  { %4226 = vmatpush2.bf16.msra.mxu1 %v7243_v54  ;;  %v3907_v37 = vpop.f32.mrf.mxu0  ;;  %4242 = vmatprep.subr.bf16.mxu0 %v7254_v57  ;;  %v7300_v54 = vld [vmem:[#allocation5 + $0x828] ss:$16 sps:$4 sm:$0xff]   ;;  %v7305_v55 = vld [vmem:[#allocation5 + $0x7ac] ss:$16 sps:$4 sm:$0xff]  }
 0x1d9   :  { %v3948_v63 = vpop.f32.mrf.mxu1  ;;  %4227 = vmatprep.subr.bf16.mxu1 %v7251_v56  ;;  %v8101_v3 = vadd.f32 %v3946_v61, %v3906_v62  ;;  %v3908_v10 = vadd.f32 %v3907_v37, %v8095_v31  ;;  %v7269_v31 = vld [vmem:[#allocation5 + $0x66c] ss:$16 sps:$4 sm:$0xff]   ;;  %v7303_v57 = vld [vmem:[#allocation5 + $0x7a8] ss:$16 sps:$4 sm:$0xff]  }
 0x1da   :  { %v3909_v12 = vpop.f32.mrf.mxu0  ;;  %v7308_v56 = vld [vmem:[#allocation5 + $0x80c] ss:$16 sps:$4 sm:$0xff]   ;;  %v7309_v61 = vld [vmem:[#allocation5 + $0x788] ss:$16 sps:$4 sm:$0xff]  }
 0x1db   :  { %v3950_v9 = vpop.f32.mrf.mxu1  ;;  %v8105_v13 = vadd.f32 %v3948_v63, %v3908_v10  ;;  %4243 = vmatpush1.bf16.msra.mxu0 %v7252_v59  ;;  %v7311_v59 = vld [vmem:[#allocation5 + $0x78c] ss:$16 sps:$4 sm:$0xff]   ;;  %v7312_v62 = vld [vmem:[#allocation5 + $0x9e8] ss:$16 sps:$4 sm:$0xff]  }
 0x1dc   :  { %4228 = vmatpush2.bf16.msra.mxu1 %v7249_v8  ;;  %v3910_v23 = vpop.f32.mrf.mxu0  ;;  %4244 = vmatprep.subr.bf16.mxu0 %v7260_v2  ;;  %v7306_v8 = vld [vmem:[#allocation5 + $0x808] ss:$16 sps:$4 sm:$0xff]   ;;  %v7314_v60 = vld [vmem:[#allocation5 + $0x9ec] ss:$16 sps:$4 sm:$0xff]  }
 0x1dd   :  { %v3951_v14 = vpop.f32.mrf.mxu1  ;;  %4229 = vmatprep.subr.bf16.mxu1 %v7257_v0  ;;  %v7317_v37 = vld [vmem:[#allocation5 + $0x76c] ss:$16 sps:$4 sm:$0xff]   ;;  %v7315_v0 = vld [vmem:[#allocation5 + $0x768] ss:$16 sps:$4 sm:$0xff]  }
 0x1de   :  { %v7320_v63 = vld [vmem:[#allocation5 + $0x9cc] ss:$16 sps:$4 sm:$0xff]   ;;  %v7318_v2 = vld [vmem:[#allocation5 + $0x9c8] ss:$16 sps:$4 sm:$0xff]  }
 0x1df   :  { %4245 = vmatpush1.bf16.msra.mxu0 %v7258_v49  ;;  %v7323_v10 = vld [vmem:[#allocation5 + $0x74c] ss:$16 sps:$4 sm:$0xff]   ;;  %v7321_v49 = vld [vmem:[#allocation5 + $0x748] ss:$16 sps:$4 sm:$0xff]  }
 0x1e0   :  { %4230 = vmatpush2.bf16.msra.mxu1 %v7255_v11  ;;  %4246 = vmatprep.subr.bf16.mxu0 %v7263_v15  ;;  %v7326_v11 = vld [vmem:[#allocation5 + $0x9ac] ss:$16 sps:$4 sm:$0xff]   ;;  %v7324_v12 = vld [vmem:[#allocation5 + $0x9a8] ss:$16 sps:$4 sm:$0xff]  }
 0x1e1   :  { %4281 = vmatprep.subr.bf16.mxu1 %v7266_v17  ;;  %v7329_v9 = vld [vmem:[#allocation5 + $0x72c] ss:$16 sps:$4 sm:$0xff]   ;;  %v7327_v14 = vld [vmem:[#allocation5 + $0x728] ss:$16 sps:$4 sm:$0xff]  }
 0x1e2   :  { %v7332_v23 = vld [vmem:[#allocation5 + $0x98c] ss:$16 sps:$4 sm:$0xff]   ;;  %v7330_v15 = vld [vmem:[#allocation5 + $0x988] ss:$16 sps:$4 sm:$0xff]  }
 0x1e3   :  { %4232 = vmatmul.mubr.bf16.vlgmr.msra.gmra.mxu1 %v8036_v20  ;;  %4247 = vmatpush1.bf16.msra.mxu0 %v7261_v18  ;;  %v7282_v20 = vld [vmem:[#allocation5 + $0x888] ss:$16 sps:$4 sm:$0xff]   ;;  %v7335_v17 = vld [vmem:[#allocation5 + $0x70c] ss:$16 sps:$4 sm:$0xff]  }
 0x1e4   :  { %4282 = vmatpush1.bf16.msra.mxu1 %v7264_v19  ;;  %4248 = vmatprep.subr.bf16.mxu0 %v7269_v31  ;;  %v7338_v18 = vld [vmem:[#allocation5 + $0x96c] ss:$16 sps:$4 sm:$0xff]   ;;  %v7333_v19 = vld [vmem:[#allocation5 + $0x708] ss:$16 sps:$4 sm:$0xff]  }
 0x1e5   :  { %4283 = vmatprep.subr.bf16.mxu1 %v7272_v40  ;;  %4313 = vmatprep.mubr.bf16.mxu1 %v8042_v29  ;;  %v7293_v29 = vld [vmem:[#allocation5 + $0x7ec] ss:$16 sps:$4 sm:$0xff]   ;;  %v7336_v31 = vld [vmem:[#allocation5 + $0x968] ss:$16 sps:$4 sm:$0xff]  }
 0x1e6   :  { %v7341_v40 = vld [vmem:[#allocation5 + $0x94c] ss:$16 sps:$4 sm:$0xff]  }
 0x1e7   :  { %4249 = vmatpush1.bf16.msra.mxu0 %v7267_v22  ;;  %v7344_v22 = vld [vmem:[#allocation5 + $0xaec] ss:$16 sps:$4 sm:$0xff]  }
 0x1e8   :  { %4284 = vmatpush1.bf16.msra.mxu1 %v7270_v24  ;;  %4250 = vmatprep.subr.bf16.mxu0 %v7275_v25  ;;  %v7339_v24 = vld [vmem:[#allocation5 + $0x948] ss:$16 sps:$4 sm:$0xff]  }
 0x1e9   :  { %4285 = vmatprep.subr.bf16.mxu1 %v7278_v26  ;;  %v7342_v25 = vld [vmem:[#allocation5 + $0xae8] ss:$16 sps:$4 sm:$0xff]   ;;  %v7347_v26 = vld [vmem:[#allocation5 + $0x92c] ss:$16 sps:$4 sm:$0xff]  }
 0x1eb   :  { %4251 = vmatpush1.bf16.msra.mxu0 %v7273_v27  ;;  %v7350_v27 = vld [vmem:[#allocation5 + $0xacc] ss:$16 sps:$4 sm:$0xff]  }
 0x1ec   :  { %4286 = vmatpush1.bf16.msra.mxu1 %v7276_v30  ;;  %4252 = vmatprep.subr.bf16.mxu0 %v7281_v28  ;;  %v7345_v30 = vld [vmem:[#allocation5 + $0x928] ss:$16 sps:$4 sm:$0xff]  }
 0x1ed   :  { %4287 = vmatprep.subr.bf16.mxu1 %v7284_v34  ;;  %v7348_v28 = vld [vmem:[#allocation5 + $0xac8] ss:$16 sps:$4 sm:$0xff]  }
 0x1ef   :  { %4253 = vmatpush1.bf16.msra.mxu0 %v7279_v35 }
 0x1f0   :  { %4288 = vmatpush1.bf16.msra.mxu1 %v7282_v20  ;;  %4254 = vmatprep.subr.bf16.mxu0 %v7287_v36 }
 0x1f1   :  { %4289 = vmatprep.subr.bf16.mxu1 %v7290_v38 }
 0x1f3   :  { %4255 = vmatpush1.bf16.msra.mxu0 %v7285_v43  ;;  %v7353_v43 = vld [vmem:[#allocation5 + $0x90c] ss:$16 sps:$4 sm:$0xff]  }
 0x1f4   :  { %4290 = vmatpush1.bf16.msra.mxu1 %v7288_v39  ;;  %4256 = vmatprep.subr.bf16.mxu0 %v7293_v29  ;;  %v7356_v39 = vld [vmem:[#allocation5 + $0xaac] ss:$16 sps:$4 sm:$0xff]  }
 0x1f5   :  { %4291 = vmatprep.subr.bf16.mxu1 %v7296_v52 }
 0x1f7   :  { %4257 = vmatpush2.bf16.msra.mxu0 %v7291_v44  ;;  %v7351_v44 = vld [vmem:[#allocation5 + $0x908] ss:$16 sps:$4 sm:$0xff]  }
 0x1f8   :  { %4292 = vmatpush1.bf16.msra.mxu1 %v7294_v45  ;;  %4258 = vmatprep.subr.bf16.mxu0 %v7299_v46  ;;  %v7354_v45 = vld [vmem:[#allocation5 + $0xaa8] ss:$16 sps:$4 sm:$0xff]  }
 0x1f9   :  { %4293 = vmatprep.subr.bf16.mxu1 %v7302_v47 }
 0x1fb   :  { %4259 = vmatpush2.bf16.msra.mxu0 %v7297_v53 }
 0x1fc   :  { %4294 = vmatpush1.bf16.msra.mxu1 %v7300_v54  ;;  %4260 = vmatprep.subr.bf16.mxu0 %v7305_v55  ;;  %v7359_v54 = vld [vmem:[#allocation5 + $0xa8c] ss:$16 sps:$4 sm:$0xff]  }
 0x1fd   :  { %4295 = vmatprep.subr.bf16.mxu1 %v7308_v56  ;;  %v7362_v55 = vld [vmem:[#allocation5 + $0xcec] ss:$16 sps:$4 sm:$0xff]   ;;  %v7357_v56 = vld [vmem:[#allocation5 + $0xa88] ss:$16 sps:$4 sm:$0xff]  }
 0x1ff   :  { %4261 = vmatpush2.bf16.msra.mxu0 %v7303_v57  ;;  %v7360_v57 = vld [vmem:[#allocation5 + $0xce8] ss:$16 sps:$4 sm:$0xff]  }
 0x200   :  { %4296 = vmatpush1.bf16.msra.mxu1 %v7306_v8  ;;  %4262 = vmatprep.subr.bf16.mxu0 %v7311_v59  ;;  %v7365_v8 = vld [vmem:[#allocation5 + $0xa6c] ss:$16 sps:$4 sm:$0xff]   ;;  %v7363_v59 = vld [vmem:[#allocation5 + $0xa68] ss:$16 sps:$4 sm:$0xff]  }
 0x201   :  { %4297 = vmatprep.subr.bf16.mxu1 %v7314_v60  ;;  %v7366_v60 = vld [vmem:[#allocation5 + $0xcc8] ss:$16 sps:$4 sm:$0xff]  }
 0x203   :  { %4263 = vmatpush2.bf16.msra.mxu0 %v7309_v61 }
 0x204   :  { %4298 = vmatpush2.bf16.msra.mxu1 %v7312_v62  ;;  %4264 = vmatprep.subr.bf16.mxu0 %v7317_v37  ;;  %v7371_v62 = vld [vmem:[#allocation5 + $0xa4c] ss:$16 sps:$4 sm:$0xff]  }
 0x205   :  { %4299 = vmatprep.subr.bf16.mxu1 %v7320_v63  ;;  %v7374_v37 = vld [vmem:[#allocation5 + $0xcac] ss:$16 sps:$4 sm:$0xff]  }
 0x207   :  { %4265 = vmatpush2.bf16.msra.mxu0 %v7315_v0  ;;  %v7369_v0 = vld [vmem:[#allocation5 + $0xa48] ss:$16 sps:$4 sm:$0xff]  }
 0x208   :  { %4300 = vmatpush2.bf16.msra.mxu1 %v7318_v2  ;;  %4266 = vmatprep.subr.bf16.mxu0 %v7323_v10  ;;  %v7372_v2 = vld [vmem:[#allocation5 + $0xca8] ss:$16 sps:$4 sm:$0xff]  }
 0x209   :  { %4301 = vmatprep.subr.bf16.mxu1 %v7326_v11  ;;  %v7380_v11 = vld [vmem:[#allocation5 + $0xc8c] ss:$16 sps:$4 sm:$0xff]  }
 0x20b   :  { %4267 = vmatpush2.bf16.msra.mxu0 %v7321_v49  ;;  %v7375_v49 = vld [vmem:[#allocation5 + $0xa28] ss:$16 sps:$4 sm:$0xff]  }
 0x20c   :  { %4302 = vmatpush2.bf16.msra.mxu1 %v7324_v12  ;;  %4268 = vmatprep.subr.bf16.mxu0 %v7329_v9  ;;  %v7378_v12 = vld [vmem:[#allocation5 + $0xc88] ss:$16 sps:$4 sm:$0xff]   ;;  %v7383_v9 = vld [vmem:[#allocation5 + $0xa0c] ss:$16 sps:$4 sm:$0xff]  }
 0x20d   :  { %4303 = vmatprep.subr.bf16.mxu1 %v7332_v23  ;;  %v7386_v23 = vld [vmem:[#allocation5 + $0xc6c] ss:$16 sps:$4 sm:$0xff]  }
 0x20f   :  { %4269 = vmatpush2.bf16.msra.mxu0 %v7327_v14  ;;  %v7384_v14 = vld [vmem:[#allocation5 + $0xc68] ss:$16 sps:$4 sm:$0xff]  }
 0x210   :  { %4304 = vmatpush2.bf16.msra.mxu1 %v7330_v15  ;;  %4270 = vmatprep.subr.bf16.mxu0 %v7335_v17  ;;  %v7389_v15 = vld [vmem:[#allocation5 + $0xbec] ss:$16 sps:$4 sm:$0xff]  }
 0x211   :  { %4305 = vmatprep.subr.bf16.mxu1 %v7338_v18  ;;  %v7392_v17 = vld [vmem:[#allocation5 + $0xc4c] ss:$16 sps:$4 sm:$0xff]   ;;  %v7387_v18 = vld [vmem:[#allocation5 + $0xbe8] ss:$16 sps:$4 sm:$0xff]  }
 0x213   :  { %4271 = vmatpush2.bf16.msra.mxu0 %v7333_v19  ;;  %v7390_v19 = vld [vmem:[#allocation5 + $0xc48] ss:$16 sps:$4 sm:$0xff]  }
 0x214   :  { %4306 = vmatpush2.bf16.msra.mxu1 %v7336_v31  ;;  %4322 = vmatprep.subr.bf16.mxu0 %v7344_v22  ;;  %v7395_v31 = vld [vmem:[#allocation5 + $0xbcc] ss:$16 sps:$4 sm:$0xff]   ;;  %v7393_v22 = vld [vmem:[#allocation5 + $0xbc8] ss:$16 sps:$4 sm:$0xff]  }
 0x215   :  { %4307 = vmatprep.subr.bf16.mxu1 %v7341_v40  ;;  %v7398_v40 = vld [vmem:[#allocation5 + $0xc2c] ss:$16 sps:$4 sm:$0xff]  }
 0x216   :  { %v3987_v34 = vpop.f32.mrf.mxu0  ;;  %4273 = vmatmul.mubr.bf16.vlgmr.msra.gmra.mxu0 %v8038_v21 }
 0x217   :  { %v4028_v35 = vpop.f32.mrf.mxu1  ;;  %v3988_v20 = vadd.f32 %v3987_v34, %v8101_v3  ;;  %4323 = vmatpush1.bf16.msra.mxu0 %v7342_v25  ;;  %4354 = vmatprep.mubr.bf16.mxu0 %v8044_v32  ;;  %v7368_v32 = vld [vmem:[#allocation5 + $0xccc] ss:$16 sps:$4 sm:$0xff]  }
 0x218   :  { %4308 = vmatpush2.bf16.msra.mxu1 %v7339_v24  ;;  %v3989_v36 = vpop.f32.mrf.mxu0  ;;  %4324 = vmatprep.subr.bf16.mxu0 %v7350_v27  ;;  %v7396_v24 = vld [vmem:[#allocation5 + $0xc28] ss:$16 sps:$4 sm:$0xff]   ;;  %v7401_v25 = vld [vmem:[#allocation5 + $0xbac] ss:$16 sps:$4 sm:$0xff]  }
 0x219   :  { %v4030_v38 = vpop.f32.mrf.mxu1  ;;  %4309 = vmatprep.subr.bf16.mxu1 %v7347_v26  ;;  %v8111_v29 = vadd.f32 %v4028_v35, %v3988_v20  ;;  %v3990_v52 = vadd.f32 %v3989_v36, %v8105_v13  ;;  %v7404_v26 = vld [vmem:[#allocation5 + $0xc0c] ss:$16 sps:$4 sm:$0xff]   ;;  %v7399_v27 = vld [vmem:[#allocation5 + $0xba8] ss:$16 sps:$4 sm:$0xff]  }
 0x21a   :  { %v3991_v46 = vpop.f32.mrf.mxu0  ;;  %v7410_v34 = vld [vmem:[#allocation5 + $0xdec] ss:$16 sps:$4 sm:$0xff]   ;;  %v7405_v35 = vld [vmem:[#allocation5 + $0xb88] ss:$16 sps:$4 sm:$0xff]  }
 0x21b   :  { %v4032_v21 = vpop.f32.mrf.mxu1  ;;  %v8115_v47 = vadd.f32 %v4030_v38, %v3990_v52  ;;  %4325 = vmatpush1.bf16.msra.mxu0 %v7348_v28  ;;  %v7407_v28 = vld [vmem:[#allocation5 + $0xb8c] ss:$16 sps:$4 sm:$0xff]   ;;  %v7408_v20 = vld [vmem:[#allocation5 + $0xde8] ss:$16 sps:$4 sm:$0xff]  }
 0x21c   :  { %4310 = vmatpush2.bf16.msra.mxu1 %v7345_v30  ;;  %v3992_v3 = vpop.f32.mrf.mxu0  ;;  %4326 = vmatprep.subr.bf16.mxu0 %v7356_v39  ;;  %v7402_v30 = vld [vmem:[#allocation5 + $0xc08] ss:$16 sps:$4 sm:$0xff]   ;;  %v7413_v36 = vld [vmem:[#allocation5 + $0xb6c] ss:$16 sps:$4 sm:$0xff]  }
 0x21d   :  { %v4033_v53 = vpop.f32.mrf.mxu1  ;;  %4311 = vmatprep.subr.bf16.mxu1 %v7353_v43  ;;  %v7416_v38 = vld [vmem:[#allocation5 + $0xdcc] ss:$16 sps:$4 sm:$0xff]   ;;  %v7411_v43 = vld [vmem:[#allocation5 + $0xb68] ss:$16 sps:$4 sm:$0xff]  }
 0x21e   :  { %v7414_v39 = vld [vmem:[#allocation5 + $0xdc8] ss:$16 sps:$4 sm:$0xff]   ;;  %v7419_v52 = vld [vmem:[#allocation5 + $0xb4c] ss:$16 sps:$4 sm:$0xff]  }
 0x21f   :  { %4327 = vmatpush1.bf16.msra.mxu0 %v7354_v45  ;;  %v7417_v45 = vld [vmem:[#allocation5 + $0xb48] ss:$16 sps:$4 sm:$0xff]   ;;  %v7425_v21 = vld [vmem:[#allocation5 + $0xb2c] ss:$16 sps:$4 sm:$0xff]  }
 0x220   :  { %4312 = vmatpush2.bf16.msra.mxu1 %v7351_v44  ;;  %4328 = vmatprep.subr.bf16.mxu0 %v7359_v54  ;;  %v7422_v44 = vld [vmem:[#allocation5 + $0xdac] ss:$16 sps:$4 sm:$0xff]   ;;  %v7420_v46 = vld [vmem:[#allocation5 + $0xda8] ss:$16 sps:$4 sm:$0xff]  }
 0x221   :  { %4363 = vmatprep.subr.bf16.mxu1 %v7362_v55  ;;  %v7428_v3 = vld [vmem:[#allocation5 + $0xd8c] ss:$16 sps:$4 sm:$0xff]   ;;  %v7423_v53 = vld [vmem:[#allocation5 + $0xb28] ss:$16 sps:$4 sm:$0xff]  }
 0x222   :  { %v7426_v54 = vld [vmem:[#allocation5 + $0xd88] ss:$16 sps:$4 sm:$0xff]   ;;  %v7431_v55 = vld [vmem:[#allocation5 + $0xb0c] ss:$16 sps:$4 sm:$0xff]  }
 0x223   :  { %v8117_v13 = vpop.f32.mrf.mxu1  ;;  %4314 = vmatmul.mubr.bf16.vlgmr.msra.gmra.mxu1 %v8048_v41  ;;  %4329 = vmatpush1.bf16.msra.mxu0 %v7357_v56  ;;  %v7377_v41 = vld [vmem:[#allocation5 + $0xa2c] ss:$16 sps:$4 sm:$0xff]  }
 0x224   :  { %4364 = vmatpush1.bf16.msra.mxu1 %v7360_v57  ;;  %4330 = vmatprep.subr.bf16.mxu0 %v7365_v8  ;;  %v7434_v56 = vld [vmem:[#allocation5 + $0xd6c] ss:$16 sps:$4 sm:$0xff]   ;;  %v7429_v57 = vld [vmem:[#allocation5 + $0xb08] ss:$16 sps:$4 sm:$0xff]  }
 0x225   :  { %v8120_v61 = vpop.f32.mrf.mxu1  ;;  %4365 = vmatprep.subr.bf16.mxu1 %v7368_v32  ;;  %4395 = vmatprep.mubr.bf16.mxu1 %v8052_v48  ;;  %v7381_v48 = vld [vmem:[#allocation5 + $0xa08] ss:$16 sps:$4 sm:$0xff]   ;;  %v7437_v32 = vld [vmem:[#allocation5 + $0xd4c] ss:$16 sps:$4 sm:$0xff]  }
 0x226   :  { %v7432_v8 = vld [vmem:[#allocation5 + $0xd68] ss:$16 sps:$4 sm:$0xff]  }
 0x227   :  { %v4114_v63 = vpop.f32.mrf.mxu1  ;;  %4331 = vmatpush1.bf16.msra.mxu0 %v7363_v59  ;;  %v7440_v59 = vld [vmem:[#allocation5 + $0xeec] ss:$16 sps:$4 sm:$0xff]  }
 0x228   :  { %4366 = vmatpush1.bf16.msra.mxu1 %v7366_v60  ;;  %4332 = vmatprep.subr.bf16.mxu0 %v7371_v62  ;;  %v7435_v60 = vld [vmem:[#allocation5 + $0xd48] ss:$16 sps:$4 sm:$0xff]   ;;  %v7446_v63 = vld [vmem:[#allocation5 + $0xecc] ss:$16 sps:$4 sm:$0xff]  }
 0x229   :  { %v4115_v10 = vpop.f32.mrf.mxu1  ;;  %4367 = vmatprep.subr.bf16.mxu1 %v7374_v37  ;;  %v7438_v62 = vld [vmem:[#allocation5 + $0xee8] ss:$16 sps:$4 sm:$0xff]   ;;  %v7443_v37 = vld [vmem:[#allocation5 + $0xd2c] ss:$16 sps:$4 sm:$0xff]  }
 0x22a   :  { %v7441_v10 = vld [vmem:[#allocation5 + $0xd28] ss:$16 sps:$4 sm:$0xff]  }
 0x22b   :  { %4333 = vmatpush1.bf16.msra.mxu0 %v7369_v0 }
 0x22c   :  { %4368 = vmatpush1.bf16.msra.mxu1 %v7372_v2  ;;  %4334 = vmatprep.subr.bf16.mxu0 %v7377_v41  ;;  %v7444_v41 = vld [vmem:[#allocation5 + $0xec8] ss:$16 sps:$4 sm:$0xff]  }
 0x22d   :  { %4369 = vmatprep.subr.bf16.mxu1 %v7380_v11 }
 0x22f   :  { %4335 = vmatpush1.bf16.msra.mxu0 %v7375_v49  ;;  %v7449_v49 = vld [vmem:[#allocation5 + $0xd0c] ss:$16 sps:$4 sm:$0xff]  }
 0x230   :  { %4370 = vmatpush1.bf16.msra.mxu1 %v7378_v12  ;;  %4336 = vmatprep.subr.bf16.mxu0 %v7383_v9  ;;  %v7452_v12 = vld [vmem:[#allocation5 + $0xeac] ss:$16 sps:$4 sm:$0xff]  }
 0x231   :  { %4371 = vmatprep.subr.bf16.mxu1 %v7386_v23 }
 0x233   :  { %4337 = vmatpush1.bf16.msra.mxu0 %v7381_v48 }
 0x234   :  { %4372 = vmatpush1.bf16.msra.mxu1 %v7384_v14  ;;  %4338 = vmatprep.subr.bf16.mxu0 %v7389_v15  ;;  %v7450_v14 = vld [vmem:[#allocation5 + $0xea8] ss:$16 sps:$4 sm:$0xff]  }
 0x235   :  { %4373 = vmatprep.subr.bf16.mxu1 %v7392_v17  ;;  %v7455_v17 = vld [vmem:[#allocation5 + $0xe8c] ss:$16 sps:$4 sm:$0xff]  }
 0x237   :  { %4339 = vmatpush2.bf16.msra.mxu0 %v7387_v18  ;;  %v7458_v18 = vld [vmem:[#allocation5 + $0x10ec] ss:$16 sps:$4 sm:$0xff]  }
 0x238   :  { %4374 = vmatpush1.bf16.msra.mxu1 %v7390_v19  ;;  %4340 = vmatprep.subr.bf16.mxu0 %v7395_v31  ;;  %v7456_v19 = vld [vmem:[#allocation5 + $0x10e8] ss:$16 sps:$4 sm:$0xff]  }
 0x239   :  { %4375 = vmatprep.subr.bf16.mxu1 %v7398_v40  ;;  %v7462_v40 = vld [vmem:[#allocation5 + $0x10c8] ss:$16 sps:$4 sm:$0xff]  }
 0x23b   :  { %4341 = vmatpush2.bf16.msra.mxu0 %v7393_v22 }
 0x23c   :  { %4376 = vmatpush1.bf16.msra.mxu1 %v7396_v24  ;;  %4342 = vmatprep.subr.bf16.mxu0 %v7401_v25  ;;  %v7467_v24 = vld [vmem:[#allocation5 + $0xe4c] ss:$16 sps:$4 sm:$0xff]  }
 0x23d   :  { %4377 = vmatprep.subr.bf16.mxu1 %v7404_v26  ;;  %v7470_v25 = vld [vmem:[#allocation5 + $0x10ac] ss:$16 sps:$4 sm:$0xff]  }
 0x23f   :  { %4343 = vmatpush2.bf16.msra.mxu0 %v7399_v27  ;;  %v7465_v27 = vld [vmem:[#allocation5 + $0xe48] ss:$16 sps:$4 sm:$0xff]  }
 0x240   :  { %4378 = vmatpush1.bf16.msra.mxu1 %v7402_v30  ;;  %4344 = vmatprep.subr.bf16.mxu0 %v7407_v28  ;;  %v7468_v30 = vld [vmem:[#allocation5 + $0x10a8] ss:$16 sps:$4 sm:$0xff]  }
 0x241   :  { %4379 = vmatprep.subr.bf16.mxu1 %v7410_v34  ;;  %v7476_v34 = vld [vmem:[#allocation5 + $0x108c] ss:$16 sps:$4 sm:$0xff]  }
 0x243   :  { %4345 = vmatpush2.bf16.msra.mxu0 %v7405_v35  ;;  %v7471_v35 = vld [vmem:[#allocation5 + $0xe28] ss:$16 sps:$4 sm:$0xff]  }
 0x244   :  { %4380 = vmatpush2.bf16.msra.mxu1 %v7408_v20  ;;  %4346 = vmatprep.subr.bf16.mxu0 %v7413_v36  ;;  %v7474_v20 = vld [vmem:[#allocation5 + $0x1088] ss:$16 sps:$4 sm:$0xff]   ;;  %v7479_v36 = vld [vmem:[#allocation5 + $0xe0c] ss:$16 sps:$4 sm:$0xff]  }
 0x245   :  { %4381 = vmatprep.subr.bf16.mxu1 %v7416_v38  ;;  %v7482_v38 = vld [vmem:[#allocation5 + $0x106c] ss:$16 sps:$4 sm:$0xff]  }
 0x247   :  { %4347 = vmatpush2.bf16.msra.mxu0 %v7411_v43  ;;  %v7480_v43 = vld [vmem:[#allocation5 + $0x1068] ss:$16 sps:$4 sm:$0xff]  }
 0x248   :  { %4382 = vmatpush2.bf16.msra.mxu1 %v7414_v39  ;;  %4348 = vmatprep.subr.bf16.mxu0 %v7419_v52  ;;  %v7485_v39 = vld [vmem:[#allocation5 + $0xfec] ss:$16 sps:$4 sm:$0xff]  }
 0x249   :  { %4383 = vmatprep.subr.bf16.mxu1 %v7422_v44  ;;  %v7488_v52 = vld [vmem:[#allocation5 + $0x104c] ss:$16 sps:$4 sm:$0xff]   ;;  %v7483_v44 = vld [vmem:[#allocation5 + $0xfe8] ss:$16 sps:$4 sm:$0xff]  }
 0x24b   :  { %4349 = vmatpush2.bf16.msra.mxu0 %v7417_v45  ;;  %v7486_v45 = vld [vmem:[#allocation5 + $0x1048] ss:$16 sps:$4 sm:$0xff]  }
 0x24c   :  { %4384 = vmatpush2.bf16.msra.mxu1 %v7420_v46  ;;  %4350 = vmatprep.subr.bf16.mxu0 %v7425_v21  ;;  %v7491_v46 = vld [vmem:[#allocation5 + $0xfcc] ss:$16 sps:$4 sm:$0xff]  }
 0x24d   :  { %4385 = vmatprep.subr.bf16.mxu1 %v7428_v3  ;;  %v7494_v21 = vld [vmem:[#allocation5 + $0x102c] ss:$16 sps:$4 sm:$0xff]   ;;  %v7489_v3 = vld [vmem:[#allocation5 + $0xfc8] ss:$16 sps:$4 sm:$0xff]  }
 0x24f   :  { %4351 = vmatpush2.bf16.msra.mxu0 %v7423_v53  ;;  %v7492_v53 = vld [vmem:[#allocation5 + $0x1028] ss:$16 sps:$4 sm:$0xff]  }
 0x250   :  { %4386 = vmatpush2.bf16.msra.mxu1 %v7426_v54  ;;  %4352 = vmatprep.subr.bf16.mxu0 %v7431_v55  ;;  %v7497_v54 = vld [vmem:[#allocation5 + $0xfac] ss:$16 sps:$4 sm:$0xff]  }
 0x251   :  { %4387 = vmatprep.subr.bf16.mxu1 %v7434_v56  ;;  %v7500_v55 = vld [vmem:[#allocation5 + $0x100c] ss:$16 sps:$4 sm:$0xff]   ;;  %v7495_v56 = vld [vmem:[#allocation5 + $0xfa8] ss:$16 sps:$4 sm:$0xff]  }
 0x253   :  { %4353 = vmatpush2.bf16.msra.mxu0 %v7429_v57  ;;  %v7498_v57 = vld [vmem:[#allocation5 + $0x1008] ss:$16 sps:$4 sm:$0xff]  }
 0x254   :  { %4388 = vmatpush2.bf16.msra.mxu1 %v7432_v8  ;;  %4404 = vmatprep.subr.bf16.mxu0 %v7440_v59  ;;  %v7503_v8 = vld [vmem:[#allocation5 + $0xf8c] ss:$16 sps:$4 sm:$0xff]   ;;  %v7501_v59 = vld [vmem:[#allocation5 + $0xf88] ss:$16 sps:$4 sm:$0xff]  }
 0x255   :  { %4389 = vmatprep.subr.bf16.mxu1 %v7437_v32  ;;  %v7506_v32 = vld [vmem:[#allocation5 + $0x11ec] ss:$16 sps:$4 sm:$0xff]  }
 0x256   :  { %v4069_v0 = vpop.f32.mrf.mxu0  ;;  %4355 = vmatmul.mubr.bf16.vlgmr.msra.gmra.mxu0 %v8050_v42 }
 0x257   :  { %v4070_v2 = vadd.f32 %v4069_v0, %v8111_v29  ;;  %4405 = vmatpush1.bf16.msra.mxu0 %v7438_v62  ;;  %4436 = vmatprep.mubr.bf16.mxu0 %v8054_v50  ;;  %v7447_v29 = vld [vmem:[#allocation5 + $0xd08] ss:$16 sps:$4 sm:$0xff]   ;;  %v7461_v50 = vld [vmem:[#allocation5 + $0xe6c] ss:$16 sps:$4 sm:$0xff]  }
 0x258   :  { %4390 = vmatpush2.bf16.msra.mxu1 %v7435_v60  ;;  %v4071_v11 = vpop.f32.mrf.mxu0  ;;  %4406 = vmatprep.subr.bf16.mxu0 %v7446_v63  ;;  %v7504_v60 = vld [vmem:[#allocation5 + $0x11e8] ss:$16 sps:$4 sm:$0xff]   ;;  %v7509_v62 = vld [vmem:[#allocation5 + $0xf6c] ss:$16 sps:$4 sm:$0xff]  }
 0x259   :  { %4391 = vmatprep.subr.bf16.mxu1 %v7443_v37  ;;  %v8126_v9 = vadd.f32 %v8117_v13, %v4070_v2  ;;  %v4072_v23 = vadd.f32 %v4071_v11, %v8115_v47  ;;  %v7453_v13 = vld [vmem:[#allocation5 + $0xe88] ss:$16 sps:$4 sm:$0xff]   ;;  %v7464_v47 = vld [vmem:[#allocation5 + $0x10cc] ss:$16 sps:$4 sm:$0xff]  }
 0x25a   :  { %v4073_v48 = vpop.f32.mrf.mxu0  ;;  %v7512_v37 = vld [vmem:[#allocation5 + $0x11cc] ss:$16 sps:$4 sm:$0xff]   ;;  %v7507_v63 = vld [vmem:[#allocation5 + $0xf68] ss:$16 sps:$4 sm:$0xff]  }
 0x25b   :  { %v8131_v42 = vadd.f32 %v8120_v61, %v4072_v23  ;;  %4407 = vmatpush1.bf16.msra.mxu0 %v7444_v41  ;;  %v7459_v61 = vld [vmem:[#allocation5 + $0xe68] ss:$16 sps:$4 sm:$0xff]   ;;  %v7515_v2 = vld [vmem:[#allocation5 + $0xf4c] ss:$16 sps:$4 sm:$0xff]  }
 0x25c   :  { %4392 = vmatpush2.bf16.msra.mxu1 %v7441_v10  ;;  %v4074_v15 = vpop.f32.mrf.mxu0  ;;  %4408 = vmatprep.subr.bf16.mxu0 %v7452_v12  ;;  %v7510_v0 = vld [vmem:[#allocation5 + $0x11c8] ss:$16 sps:$4 sm:$0xff]   ;;  %v7518_v10 = vld [vmem:[#allocation5 + $0x11ac] ss:$16 sps:$4 sm:$0xff]  }
 0x25d   :  { %4393 = vmatprep.subr.bf16.mxu1 %v7449_v49  ;;  %v7513_v41 = vld [vmem:[#allocation5 + $0xf48] ss:$16 sps:$4 sm:$0xff]   ;;  %v7521_v49 = vld [vmem:[#allocation5 + $0xf2c] ss:$16 sps:$4 sm:$0xff]   ;;  %v753_v15 = vsub.s32 2, %v8060_v58 }
 0x25e   :  { %v7516_v11 = vld [vmem:[#allocation5 + $0x11a8] ss:$16 sps:$4 sm:$0xff]   ;;  %v7524_v12 = vld [vmem:[#allocation5 + $0x118c] ss:$16 sps:$4 sm:$0xff]  }
 0x25f   :  { %4409 = vmatpush1.bf16.msra.mxu0 %v7450_v14  ;;  %v7519_v23 = vld [vmem:[#allocation5 + $0xf28] ss:$16 sps:$4 sm:$0xff]   ;;  %v7530_v14 = vld [vmem:[#allocation5 + $0x116c] ss:$16 sps:$4 sm:$0xff]  }
 0x260   :  { %4394 = vmatpush2.bf16.msra.mxu1 %v7447_v29  ;;  %4410 = vmatprep.subr.bf16.mxu0 %v7455_v17  ;;  %v7522_v48 = vld [vmem:[#allocation5 + $0x1188] ss:$16 sps:$4 sm:$0xff]   ;;  %v7527_v29 = vld [vmem:[#allocation5 + $0xf0c] ss:$16 sps:$4 sm:$0xff]   ;;  %v757_v17 = vsub.s32 3, %v8060_v58 }
 0x261   :  { %4445 = vmatprep.subr.bf16.mxu1 %v7458_v18  ;;  %v7525_v18 = vld [vmem:[#allocation5 + $0xf08] ss:$16 sps:$4 sm:$0xff]  }
 0x263   :  { %v8133_v31 = vpop.f32.mrf.mxu1  ;;  %4396 = vmatmul.mubr.bf16.vlgmr.msra.gmra.mxu1 %v8064_v6  ;;  %4411 = vmatpush1.bf16.msra.mxu0 %v7453_v13  ;;  %v7473_v6 = vld [vmem:[#allocation5 + $0xe2c] ss:$16 sps:$4 sm:$0xff]   ;;  %v7528_v13 = vld [vmem:[#allocation5 + $0x1168] ss:$16 sps:$4 sm:$0xff]  }
 0x264   :  { %4446 = vmatpush1.bf16.msra.mxu1 %v7456_v19  ;;  %4412 = vmatprep.subr.bf16.mxu0 %v7461_v50  ;;  %v7533_v19 = vld [vmem:[#allocation5 + $0x114c] ss:$16 sps:$4 sm:$0xff]  }
 0x265   :  { %v8136_v22 = vpop.f32.mrf.mxu1  ;;  %4447 = vmatprep.subr.bf16.mxu1 %v7464_v47  ;;  %4477 = vmatprep.mubr.bf16.mxu1 %v8072_v16  ;;  %v7477_v16 = vld [vmem:[#allocation5 + $0xe08] ss:$16 sps:$4 sm:$0xff]   ;;  %v7536_v50 = vld [vmem:[#allocation5 + $0x124c] ss:$16 sps:$4 sm:$0xff]   ;;  %v7773_v47 = vld [vmem:[#allocation7] sm:$0xf] }
 0x267   :  { %v4155_v26 = vpop.f32.mrf.mxu1  ;;  %4413 = vmatpush1.bf16.msra.mxu0 %v7459_v61  ;;  %v754_v61 = vrot.slane %v7773_v47, %v753_v15 }
 0x268   :  { %4448 = vmatpush1.bf16.msra.mxu1 %v7462_v40  ;;  %4414 = vmatprep.subr.bf16.mxu0 %v7467_v24  ;;  %v758_v40 = vrot.slane %v7773_v47, %v757_v17  ;;  %v7531_v24 = vld [vmem:[#allocation5 + $0x1148] ss:$16 sps:$4 sm:$0xff]   ;;  %v7539_v26 = vld [vmem:[#allocation5 + $0x112c] ss:$16 sps:$4 sm:$0xff]  }
 0x269   :  { %v4156_v28 = vpop.f32.mrf.mxu1  ;;  %4449 = vmatprep.subr.bf16.mxu1 %v7470_v25  ;;  %v7534_v25 = vld [vmem:[#allocation5 + $0x1248] ss:$16 sps:$4 sm:$0xff]  }
 0x26a   :  { %v7665_v47 = vld [vmem:[#allocation8 + $0x224] ss:$16 sps:$4 sm:$0xff]  }
 0x26b   :  { %4415 = vmatpush1.bf16.msra.mxu0 %v7465_v27  ;;  %v7542_v27 = vld [vmem:[#allocation5 + $0x122c] ss:$16 sps:$4 sm:$0xff]  }
 0x26c   :  { %4450 = vmatpush1.bf16.msra.mxu1 %v7468_v30  ;;  %4416 = vmatprep.subr.bf16.mxu0 %v7473_v6  ;;  %v4152_v30 = vadd.f32 %v8133_v31, %v754_v61  ;;  %v4154_v6 = vadd.f32 %v8136_v22, %v758_v40  ;;  %v7543_v31 = vld [vmem:[#allocation5 + $0x1108] ss:$16 sps:$4 sm:$0xff]   ;;  %v7573_v61 = vld [vmem:[#allocation8 + $0x1e0] ss:$16 sps:$4 sm:$0xff]  }
 0x26d   :  { %4451 = vmatprep.subr.bf16.mxu1 %v7476_v34  ;;  %v7551_v22 = vld [vmem:[#allocation8 + $0xe4] ss:$16 sps:$4 sm:$0xff]   ;;  %v7663_v40 = vld [vmem:[#allocation8 + $0x220] ss:$16 sps:$4 sm:$0xff]  }
 0x26f   :  { %4417 = vmatpush1.bf16.msra.mxu0 %v7471_v35  ;;  %v7537_v35 = vld [vmem:[#allocation5 + $0x1128] ss:$16 sps:$4 sm:$0xff]  }
 0x270   :  { %4452 = vmatpush1.bf16.msra.mxu1 %v7474_v20  ;;  %4418 = vmatprep.subr.bf16.mxu0 %v7479_v36  ;;  %v7540_v20 = vld [vmem:[#allocation5 + $0x1228] ss:$16 sps:$4 sm:$0xff]  }
 0x271   :  { %4453 = vmatprep.subr.bf16.mxu1 %v7482_v38  ;;  %v7545_v38 = vld [vmem:[#allocation5 + $0x110c] ss:$16 sps:$4 sm:$0xff]  }
 0x273   :  { %4419 = vmatpush1.bf16.msra.mxu0 %v7477_v16  ;;  %v7548_v16 = vld [vmem:[#allocation5 + $0x120c] ss:$16 sps:$4 sm:$0xff]  }
 0x274   :  { %4454 = vmatpush1.bf16.msra.mxu1 %v7480_v43  ;;  %4420 = vmatprep.subr.bf16.mxu0 %v7485_v39 }
 0x275   :  { %4455 = vmatprep.subr.bf16.mxu1 %v7488_v52 }
 0x277   :  { %4421 = vmatpush2.bf16.msra.mxu0 %v7483_v44  ;;  %v4528_v44 = vmax.f32 %v8131_v42, 0.0 }
 0x278   :  { %4456 = vmatpush1.bf16.msra.mxu1 %v7486_v45  ;;  %4422 = vmatprep.subr.bf16.mxu0 %v7491_v46  ;;  %v7549_v45 = vld [vmem:[#allocation8 + $0xe0] ss:$16 sps:$4 sm:$0xff]   ;;  %v7554_v46 = vld [vmem:[#allocation8 + $0xc4] ss:$16 sps:$4 sm:$0xff]  }
 0x279   :  { %4457 = vmatprep.subr.bf16.mxu1 %v7494_v21  ;;  %v8150_v21 = vpack.c.bf16 %v4528_v44, %v4528_v44 }
 0x27b   :  { %4423 = vmatpush2.bf16.msra.mxu0 %v7489_v3 }
 0x27c   :  { %4458 = vmatpush1.bf16.msra.mxu1 %v7492_v53  ;;  %4424 = vmatprep.subr.bf16.mxu0 %v7497_v54  ;;  %v7552_v53 = vld [vmem:[#allocation8 + $0xc0] ss:$16 sps:$4 sm:$0xff]   ;;  %v7557_v54 = vld [vmem:[#allocation8 + $0xa4] ss:$16 sps:$4 sm:$0xff]  }
 0x27d   :  { %4459 = vmatprep.subr.bf16.mxu1 %v7500_v55 }
 0x27f   :  { %4425 = vmatpush2.bf16.msra.mxu0 %v7495_v56 }
 0x280   :  { %4460 = vmatpush1.bf16.msra.mxu1 %v7498_v57  ;;  %4426 = vmatprep.subr.bf16.mxu0 %v7503_v8  ;;  %v7555_v57 = vld [vmem:[#allocation8 + $0xa0] ss:$16 sps:$4 sm:$0xff]  }
 0x281   :  { %4461 = vmatprep.subr.bf16.mxu1 %v7506_v32  ;;  %v7645_v32 = vld [vmem:[#allocation8 + $0x2e0] ss:$16 sps:$4 sm:$0xff]  }
 0x283   :  { %4427 = vmatpush2.bf16.msra.mxu0 %v7501_v59  ;;  %v7647_v59 = vld [vmem:[#allocation8 + $0x2e4] ss:$16 sps:$4 sm:$0xff]  }
 0x284   :  { %4462 = vmatpush2.bf16.msra.mxu1 %v7504_v60  ;;  %4428 = vmatprep.subr.bf16.mxu0 %v7509_v62  ;;  %v7558_v60 = vld [vmem:[#allocation8 + $0x80] ss:$16 sps:$4 sm:$0xff]  }
 0x285   :  { %4463 = vmatprep.subr.bf16.mxu1 %v7512_v37  ;;  %v7648_v62 = vld [vmem:[#allocation8 + $0x2c0] ss:$16 sps:$4 sm:$0xff]   ;;  %v7563_v37 = vld [vmem:[#allocation8 + $0x64] ss:$16 sps:$4 sm:$0xff]  }
 0x287   :  { %4429 = vmatpush2.bf16.msra.mxu0 %v7507_v63  ;;  %v7653_v63 = vld [vmem:[#allocation8 + $0x2a4] ss:$16 sps:$4 sm:$0xff]  }
 0x288   :  { %4464 = vmatpush2.bf16.msra.mxu1 %v7510_v0  ;;  %4430 = vmatprep.subr.bf16.mxu0 %v7515_v2  ;;  %v7561_v0 = vld [vmem:[#allocation8 + $0x60] ss:$16 sps:$4 sm:$0xff]  }
 0x289   :  { %4465 = vmatprep.subr.bf16.mxu1 %v7518_v10  ;;  %v7651_v2 = vld [vmem:[#allocation8 + $0x2a0] ss:$16 sps:$4 sm:$0xff]   ;;  %v7566_v10 = vld [vmem:[#allocation8 + $0x44] ss:$16 sps:$4 sm:$0xff]  }
 0x28b   :  { %4431 = vmatpush2.bf16.msra.mxu0 %v7513_v41  ;;  %v7656_v41 = vld [vmem:[#allocation8 + $0x284] ss:$16 sps:$4 sm:$0xff]  }
 0x28c   :  { %4466 = vmatpush2.bf16.msra.mxu1 %v7516_v11  ;;  %4432 = vmatprep.subr.bf16.mxu0 %v7521_v49  ;;  %v7564_v11 = vld [vmem:[#allocation8 + $0x40] ss:$16 sps:$4 sm:$0xff]  }
 0x28d   :  { %4467 = vmatprep.subr.bf16.mxu1 %v7524_v12  ;;  %v7654_v49 = vld [vmem:[#allocation8 + $0x280] ss:$16 sps:$4 sm:$0xff]   ;;  %v7569_v12 = vld [vmem:[#allocation8 + $0x24] ss:$16 sps:$4 sm:$0xff]  }
 0x28f   :  { %4433 = vmatpush2.bf16.msra.mxu0 %v7519_v23  ;;  %v7659_v23 = vld [vmem:[#allocation8 + $0x264] ss:$16 sps:$4 sm:$0xff]  }
 0x290   :  { %4468 = vmatpush2.bf16.msra.mxu1 %v7522_v48  ;;  %4434 = vmatprep.subr.bf16.mxu0 %v7527_v29  ;;  %v7567_v48 = vld [vmem:[#allocation8 + $0x20] ss:$16 sps:$4 sm:$0xff]  }
 0x291   :  { %4469 = vmatprep.subr.bf16.mxu1 %v7530_v14  ;;  %v7657_v29 = vld [vmem:[#allocation8 + $0x260] ss:$16 sps:$4 sm:$0xff]   ;;  %v7572_v14 = vld [vmem:[#allocation8 + $0x4] ss:$16 sps:$4 sm:$0xff]  }
 0x293   :  { %4435 = vmatpush2.bf16.msra.mxu0 %v7525_v18  ;;  %v7662_v18 = vld [vmem:[#allocation8 + $0x244] ss:$16 sps:$4 sm:$0xff]  }
 0x294   :  { %4470 = vmatpush2.bf16.msra.mxu1 %v7528_v13  ;;  %4496 = vmatprep.subr.bf16.mxu0 %v7536_v50  ;;  %v7570_v13 = vld [vmem:[#allocation8] ss:$16 sps:$4 sm:$0xff]   ;;  %v7575_v50 = vld [vmem:[#allocation8 + $0x1e4] ss:$16 sps:$4 sm:$0xff]  }
 0x295   :  { %4471 = vmatprep.subr.bf16.mxu1 %v7533_v19  ;;  %v7660_v19 = vld [vmem:[#allocation8 + $0x240] ss:$16 sps:$4 sm:$0xff]  }
 0x296   :  { %v4192_v28 = vpop.f32.mrf.mxu0  ;;  %4437 = vmatmul.mubr.bf16.vlgmr.msra.gmra.mxu0 %v8066_v7  ;;  %v7546_v7 = vld [vmem:[#allocation5 + $0x1208] ss:$16 sps:$4 sm:$0xff]  }
 0x297   :  { %v4193_v34 = vadd.f32 %v4192_v28, %v4152_v30  ;;  %4497 = vmatpush1.bf16.msra.mxu0 %v7534_v25  ;;  %4518 = vmatprep.mubr.bf16.mxu0 %v7955_v33  ;;  %v7668_v25 = vld [vmem:[#allocation8 + $0x204] ss:$16 sps:$4 sm:$0xff]  }
 0x298   :  { %4472 = vmatpush2.bf16.msra.mxu1 %v7531_v24  ;;  %v4194_v36 = vpop.f32.mrf.mxu0  ;;  %4498 = vmatprep.subr.bf16.mxu0 %v7542_v27  ;;  %v7578_v24 = vld [vmem:[#allocation8 + $0x1c4] ss:$16 sps:$4 sm:$0xff]   ;;  %v7666_v27 = vld [vmem:[#allocation8 + $0x200] ss:$16 sps:$4 sm:$0xff]  }
 0x299   :  { %4473 = vmatprep.subr.bf16.mxu1 %v7539_v26  ;;  %v4195_v43 = vadd.f32 %v4194_v36, %v4154_v6  ;;  %v7576_v26 = vld [vmem:[#allocation8 + $0x1c0] ss:$16 sps:$4 sm:$0xff]   ;;  %v7581_v30 = vld [vmem:[#allocation8 + $0x1a4] ss:$16 sps:$4 sm:$0xff]  }
 0x29a   :  { %v4196_v39 = vpop.f32.mrf.mxu0  ;;  %v7671_v28 = vld [vmem:[#allocation8 + $0x3e4] ss:$16 sps:$4 sm:$0xff]   ;;  %v7579_v6 = vld [vmem:[#allocation8 + $0x1a0] ss:$16 sps:$4 sm:$0xff]  }
 0x29b   :  { %4499 = vmatpush1.bf16.msra.mxu0 %v7540_v20  ;;  %v7674_v20 = vld [vmem:[#allocation8 + $0x3c4] ss:$16 sps:$4 sm:$0xff]   ;;  %v7582_v36 = vld [vmem:[#allocation8 + $0x180] ss:$16 sps:$4 sm:$0xff]  }
 0x29c   :  { %4474 = vmatpush2.bf16.msra.mxu1 %v7537_v35  ;;  %v4197_v52 = vpop.f32.mrf.mxu0  ;;  %4500 = vmatprep.subr.bf16.mxu0 %v7548_v16  ;;  %v7584_v35 = vld [vmem:[#allocation8 + $0x184] ss:$16 sps:$4 sm:$0xff]   ;;  %v7585_v39 = vld [vmem:[#allocation8 + $0x160] ss:$16 sps:$4 sm:$0xff]  }
 0x29d   :  { %4475 = vmatprep.subr.bf16.mxu1 %v7545_v38  ;;  %v7672_v38 = vld [vmem:[#allocation8 + $0x3c0] ss:$16 sps:$4 sm:$0xff]   ;;  %v7587_v16 = vld [vmem:[#allocation8 + $0x164] ss:$16 sps:$4 sm:$0xff]  }
 0x29e   :  { %v7588_v52 = vld [vmem:[#allocation8 + $0x140] ss:$16 sps:$4 sm:$0xff]  }
 0x29f   :  { %4501 = vmatpush1.bf16.msra.mxu0 %v7546_v7  ;;  %v7590_v7 = vld [vmem:[#allocation8 + $0x144] ss:$16 sps:$4 sm:$0xff]  }
 0x2a0   :  { %4476 = vmatpush2.bf16.msra.mxu1 %v7543_v31  ;;  %5325 = vmatprep.subr.bf16.mxu0 %v7551_v22  ;;  %v7675_v31 = vld [vmem:[#allocation8 + $0x3a0] ss:$16 sps:$4 sm:$0xff]   ;;  %v7593_v22 = vld [vmem:[#allocation8 + $0x124] ss:$16 sps:$4 sm:$0xff]  }
 0x2a1   :  { %5366 = vmatprep.subr.bf16.mxu1 %v7647_v59 }
 0x2a2   :  { %6448 = vmatmul.mubr.msk.bf16.vlgmr.msra.gmra.mxu0 %vm3703_vm0, %v8082_v51  ;;  %v7650_v51 = vld [vmem:[#allocation8 + $0x2c4] ss:$16 sps:$4 sm:$0xff]  }
 0x2a3   :  { %v4233_v3 = vpop.f32.mrf.mxu1  ;;  %4478 = vmatmul.mubr.bf16.vlgmr.msra.gmra.mxu1 %v8087_v4  ;;  %5326 = vmatpush1.bf16.msra.mxu0 %v7549_v45  ;;  %v7560_v4 = vld [vmem:[#allocation8 + $0x84] ss:$16 sps:$4 sm:$0xff]  }
 0x2a4   :  { %v8155_v33 = vadd.f32 %v4233_v3, %v4193_v34  ;;  %5357 = vmatprep.mubr.bf16.mxu0 %v8150_v21  ;;  %5327 = vmatprep.subr.bf16.mxu0 %v7554_v46  ;;  %v7669_v34 = vld [vmem:[#allocation8 + $0x3e0] ss:$16 sps:$4 sm:$0xff]   ;;  %v7680_v3 = vld [vmem:[#allocation8 + $0x384] ss:$16 sps:$4 sm:$0xff]  }
 0x2a5   :  { %v4235_v42 = vpop.f32.mrf.mxu1  ;;  %5367 = vmatpush1.bf16.msra.mxu1 %v7645_v32  ;;  %v7591_v46 = vld [vmem:[#allocation8 + $0x120] ss:$16 sps:$4 sm:$0xff]   ;;  %v7683_v32 = vld [vmem:[#allocation8 + $0x364] ss:$16 sps:$4 sm:$0xff]  }
 0x2a6   :  { %v8158_v55 = vadd.f32 %v4235_v42, %v4195_v43  ;;  %5368 = vmatprep.subr.bf16.mxu1 %v7650_v51  ;;  %v7677_v43 = vld [vmem:[#allocation8 + $0x3a4] ss:$16 sps:$4 sm:$0xff]   ;;  %v7681_v51 = vld [vmem:[#allocation8 + $0x360] ss:$16 sps:$4 sm:$0xff]  }
 0x2a7   :  { %v4237_v56 = vpop.f32.mrf.mxu1  ;;  %5328 = vmatpush1.bf16.msra.mxu0 %v7552_v53  ;;  %v7596_v42 = vld [vmem:[#allocation8 + $0x104] ss:$16 sps:$4 sm:$0xff]  }
 0x2a8   :  { %5329 = vmatprep.subr.bf16.mxu0 %v7557_v54  ;;  %v7678_v54 = vld [vmem:[#allocation8 + $0x380] ss:$16 sps:$4 sm:$0xff]  }
 0x2a9   :  { %v4238_v8 = vpop.f32.mrf.mxu1  ;;  %5369 = vmatpush1.bf16.msra.mxu1 %v7648_v62  ;;  %v7684_v62 = vld [vmem:[#allocation8 + $0x340] ss:$16 sps:$4 sm:$0xff]  }
 0x2aa   :  { %5370 = vmatprep.subr.bf16.mxu1 %v7653_v63  ;;  %v4527_v8 = vmax.f32 %v8126_v9, 0.0  ;;  %v7602_v63 = vld [vmem:[#allocation8 + $0xcc] ss:$16 sps:$4 sm:$0xff]  }
 0x2ab   :  { %5330 = vmatpush1.bf16.msra.mxu0 %v7555_v57 }
 0x2ac   :  { %5331 = vmatprep.subr.bf16.mxu0 %v7560_v4  ;;  %v7594_v4 = vld [vmem:[#allocation8 + $0x100] ss:$16 sps:$4 sm:$0xff]  }
 0x2ad   :  { %5371 = vmatpush1.bf16.msra.mxu1 %v7651_v2  ;;  %v7600_v2 = vld [vmem:[#allocation8 + $0xc8] ss:$16 sps:$4 sm:$0xff]  }
 0x2ae   :  { %5372 = vmatprep.subr.bf16.mxu1 %v7656_v41 }
 0x2af   :  { %5332 = vmatpush1.bf16.msra.mxu0 %v7558_v60  ;;  %v7686_v60 = vld [vmem:[#allocation8 + $0x344] ss:$16 sps:$4 sm:$0xff]  }
 0x2b0   :  { %5333 = vmatprep.subr.bf16.mxu0 %v7563_v37  ;;  %v7597_v37 = vld [vmem:[#allocation8 + $0xe8] ss:$16 sps:$4 sm:$0xff]  }
 0x2b1   :  { %5373 = vmatpush1.bf16.msra.mxu1 %v7654_v49  ;;  %v7687_v49 = vld [vmem:[#allocation8 + $0x320] ss:$16 sps:$4 sm:$0xff]  }
 0x2b2   :  { %5374 = vmatprep.subr.bf16.mxu1 %v7659_v23 }
 0x2b3   :  { %5334 = vmatpush1.bf16.msra.mxu0 %v7561_v0 }
 0x2b4   :  { %5335 = vmatprep.subr.bf16.mxu0 %v7566_v10  ;;  %v7689_v10 = vld [vmem:[#allocation8 + $0x324] ss:$16 sps:$4 sm:$0xff]  }
 0x2b5   :  { %5375 = vmatpush1.bf16.msra.mxu1 %v7657_v29  ;;  %v7692_v29 = vld [vmem:[#allocation8 + $0x304] ss:$16 sps:$4 sm:$0xff]  }
 0x2b6   :  { %5376 = vmatprep.subr.bf16.mxu1 %v7662_v18  ;;  %v7608_v18 = vld [vmem:[#allocation8 + $0x8c] ss:$16 sps:$4 sm:$0xff]  }
 0x2b7   :  { %5336 = vmatpush1.bf16.msra.mxu0 %v7564_v11  ;;  %v7605_v11 = vld [vmem:[#allocation8 + $0xac] ss:$16 sps:$4 sm:$0xff]  }
 0x2b8   :  { %5337 = vmatprep.subr.bf16.mxu0 %v7569_v12 }
 0x2b9   :  { %5377 = vmatpush1.bf16.msra.mxu1 %v7660_v19  ;;  %v7695_v19 = vld [vmem:[#allocation8 + $0x2ec] ss:$16 sps:$4 sm:$0xff]  }
 0x2ba   :  { %5378 = vmatprep.subr.bf16.mxu1 %v7665_v47  ;;  %v7609_v47 = vld [vmem:[#allocation8 + $0x68] ss:$16 sps:$4 sm:$0xff]  }
 0x2bb   :  { %5338 = vmatpush1.bf16.msra.mxu0 %v7567_v48  ;;  %v7603_v48 = vld [vmem:[#allocation8 + $0xa8] ss:$16 sps:$4 sm:$0xff]  }
 0x2bc   :  { %5339 = vmatprep.subr.bf16.mxu0 %v7572_v14 }
 0x2bd   :  { %5379 = vmatpush1.bf16.msra.mxu1 %v7663_v40  ;;  %v7612_v40 = vld [vmem:[#allocation8 + $0x48] ss:$16 sps:$4 sm:$0xff]  }
 0x2be   :  { %5380 = vmatprep.subr.bf16.mxu1 %v7668_v25  ;;  %v7615_v25 = vld [vmem:[#allocation8 + $0x28] ss:$16 sps:$4 sm:$0xff]  }
 0x2bf   :  { %5340 = vmatpush1.bf16.msra.mxu0 %v7570_v13  ;;  %v7690_v13 = vld [vmem:[#allocation8 + $0x300] ss:$16 sps:$4 sm:$0xff]  }
 0x2c0   :  { %5341 = vmatprep.subr.bf16.mxu0 %v7575_v50  ;;  %v7611_v50 = vld [vmem:[#allocation8 + $0x6c] ss:$16 sps:$4 sm:$0xff]  }
 0x2c1   :  { %5381 = vmatpush1.bf16.msra.mxu1 %v7666_v27  ;;  %v7618_v27 = vld [vmem:[#allocation8 + $0x8] ss:$16 sps:$4 sm:$0xff]  }
 0x2c2   :  { %5382 = vmatprep.subr.bf16.mxu1 %v7671_v28  ;;  %v7621_v28 = vld [vmem:[#allocation8 + $0x1e8] ss:$16 sps:$4 sm:$0xff]  }
 0x2c3   :  { %5342 = vmatpush2.bf16.msra.mxu0 %v7573_v61  ;;  %v7614_v61 = vld [vmem:[#allocation8 + $0x4c] ss:$16 sps:$4 sm:$0xff]  }
 0x2c4   :  { %5343 = vmatprep.subr.bf16.mxu0 %v7578_v24  ;;  %v7617_v24 = vld [vmem:[#allocation8 + $0x2c] ss:$16 sps:$4 sm:$0xff]  }
 0x2c5   :  { %5383 = vmatpush2.bf16.msra.mxu1 %v7669_v34  ;;  %v7624_v34 = vld [vmem:[#allocation8 + $0x1c8] ss:$16 sps:$4 sm:$0xff]  }
 0x2c6   :  { %5384 = vmatprep.subr.bf16.mxu1 %v7674_v20  ;;  %v7627_v20 = vld [vmem:[#allocation8 + $0x1a8] ss:$16 sps:$4 sm:$0xff]  }
 0x2c7   :  { %5344 = vmatpush2.bf16.msra.mxu0 %v7576_v26  ;;  %v7620_v26 = vld [vmem:[#allocation8 + $0xc] ss:$16 sps:$4 sm:$0xff]  }
 0x2c8   :  { %5345 = vmatprep.subr.bf16.mxu0 %v7581_v30  ;;  %v7623_v30 = vld [vmem:[#allocation8 + $0x1ec] ss:$16 sps:$4 sm:$0xff]  }
 0x2c9   :  { %5385 = vmatpush2.bf16.msra.mxu1 %v7672_v38  ;;  %v7630_v38 = vld [vmem:[#allocation8 + $0x188] ss:$16 sps:$4 sm:$0xff]  }
 0x2ca   :  { %5386 = vmatprep.subr.bf16.mxu1 %v7677_v43  ;;  %v7633_v43 = vld [vmem:[#allocation8 + $0x168] ss:$16 sps:$4 sm:$0xff]  }
 0x2cb   :  { %5346 = vmatpush2.bf16.msra.mxu0 %v7579_v6  ;;  %v7626_v6 = vld [vmem:[#allocation8 + $0x1cc] ss:$16 sps:$4 sm:$0xff]  }
 0x2cc   :  { %5347 = vmatprep.subr.bf16.mxu0 %v7584_v35  ;;  %v7629_v35 = vld [vmem:[#allocation8 + $0x1ac] ss:$16 sps:$4 sm:$0xff]  }
 0x2cd   :  { %5387 = vmatpush2.bf16.msra.mxu1 %v7675_v31  ;;  %v7636_v31 = vld [vmem:[#allocation8 + $0x148] ss:$16 sps:$4 sm:$0xff]  }
 0x2ce   :  { %5388 = vmatprep.subr.bf16.mxu1 %v7680_v3 }
 0x2cf   :  { %5348 = vmatpush2.bf16.msra.mxu0 %v7582_v36  ;;  %v7632_v36 = vld [vmem:[#allocation8 + $0x18c] ss:$16 sps:$4 sm:$0xff]  }
 0x2d0   :  { %5349 = vmatprep.subr.bf16.mxu0 %v7587_v16  ;;  %v7635_v16 = vld [vmem:[#allocation8 + $0x16c] ss:$16 sps:$4 sm:$0xff]  }
 0x2d1   :  { %5389 = vmatpush2.bf16.msra.mxu1 %v7678_v54 }
 0x2d2   :  { %5390 = vmatprep.subr.bf16.mxu1 %v7683_v32 }
 0x2d3   :  { %5350 = vmatpush2.bf16.msra.mxu0 %v7585_v39  ;;  %v7638_v39 = vld [vmem:[#allocation8 + $0x14c] ss:$16 sps:$4 sm:$0xff]  }
 0x2d4   :  { %5351 = vmatprep.subr.bf16.mxu0 %v7590_v7  ;;  %v7641_v7 = vld [vmem:[#allocation8 + $0x12c] ss:$16 sps:$4 sm:$0xff]  }
 0x2d5   :  { %5391 = vmatpush2.bf16.msra.mxu1 %v7681_v51 }
 0x2d6   :  { %v4274_v44 = vpop.f32.mrf.mxu0  ;;  %5392 = vmatprep.subr.bf16.mxu1 %v7686_v60 }
 0x2d7   :  { %v4275_v45 = vadd.f32 %v4274_v44, %v8155_v33  ;;  %5352 = vmatpush2.bf16.msra.mxu0 %v7588_v52  ;;  %v7599_v33 = vld [vmem:[#allocation8 + $0xec] ss:$16 sps:$4 sm:$0xff]   ;;  %v7639_v44 = vld [vmem:[#allocation8 + $0x128] ss:$16 sps:$4 sm:$0xff]  }
 0x2d8   :  { %v4276_v53 = vpop.f32.mrf.mxu0  ;;  %5353 = vmatprep.subr.bf16.mxu0 %v7593_v22 }
 0x2d9   :  { %v4277_v56 = vadd.f32 %v4276_v53, %v8158_v55  ;;  %v8163_v55 = vpack.c.bf16 %v4527_v8, %v4527_v8  ;;  %5393 = vmatpush2.bf16.msra.mxu1 %v7684_v62 }
 0x2da   :  { %v4278_v57 = vpop.f32.mrf.mxu0  ;;  %5394 = vmatprep.subr.bf16.mxu1 %v7689_v10 }
 0x2db   :  { %5354 = vmatpush2.bf16.msra.mxu0 %v7591_v46  ;;  %v7644_v46 = vld [vmem:[#allocation8 + $0x10c] ss:$16 sps:$4 sm:$0xff]  }
 0x2dc   :  { %v4279_v59 = vpop.f32.mrf.mxu0  ;;  %5355 = vmatprep.subr.bf16.mxu0 %v7596_v42  ;;  %v7642_v42 = vld [vmem:[#allocation8 + $0x108] ss:$16 sps:$4 sm:$0xff]  }
 0x2dd   :  { %5395 = vmatpush2.bf16.msra.mxu1 %v7687_v49 }
 0x2de   :  { %5396 = vmatprep.subr.bf16.mxu1 %v7692_v29 }
 0x2df   :  { %5356 = vmatpush2.bf16.msra.mxu0 %v7594_v4 }
 0x2e0   :  { %5407 = vmatprep.subr.bf16.mxu0 %v7599_v33 }
 0x2e1   :  { %5397 = vmatpush2.bf16.msra.mxu1 %v7690_v13  ;;  %v7742_v13 = vld [vmem:[#allocation11 + $0x38] sm:$0xff]  }
 0x2e2   :  { %5358 = vmatmul.mubr.bf16.vlgmr.msra.gmra.mxu0 %v8163_v55  ;;  %5448 = vmatprep.subr.bf16.mxu1 %v7695_v19 }
 0x2e3   :  { %v4315_v0 = vpop.f32.mrf.mxu1  ;;  %5408 = vmatpush1.bf16.msra.mxu0 %v7597_v37  ;;  %5439 = vmatprep.mubr.bf16.mxu0 %v8150_v21  ;;  %v7606_v21 = vld [vmem:[#allocation8 + $0x88] ss:$16 sps:$4 sm:$0xff]  }
 0x2e4   :  { %v8166_v9 = vadd.f32 %v4315_v0, %v4275_v45  ;;  %5409 = vmatprep.subr.bf16.mxu0 %v7602_v63 }
 0x2e5   :  { %v4317_v41 = vpop.f32.mrf.mxu1 }
 0x2e6   :  { %v8169_v12 = vadd.f32 %v4317_v41, %v4277_v56 }
 0x2e7   :  { %v4319_v23 = vpop.f32.mrf.mxu1  ;;  %5410 = vmatpush1.bf16.msra.mxu0 %v7600_v2 }
 0x2e8   :  { %5411 = vmatprep.subr.bf16.mxu0 %v7605_v11 }
 0x2e9   :  { %v4320_v14 = vpop.f32.mrf.mxu1 }
 0x2eb   :  { %5412 = vmatpush1.bf16.msra.mxu0 %v7603_v48 }
 0x2ec   :  { %5413 = vmatprep.subr.bf16.mxu0 %v7608_v18  ;;  %v7741_v18 = vld [vmem:[#allocation11 + $0x78] sm:$0xff]  }
 0x2ef   :  { %5414 = vmatpush1.bf16.msra.mxu0 %v7606_v21  ;;  %v7743_v21 = vld [vmem:[#allocation11 + $0x70] sm:$0xff]  }
 0x2f0   :  { %5415 = vmatprep.subr.bf16.mxu0 %v7611_v50 }
 0x2f3   :  { %5416 = vmatpush1.bf16.msra.mxu0 %v7609_v47  ;;  %v7693_v47 = vld [vmem:[#allocation8 + $0x2e8] ss:$16 sps:$4 sm:$0xff]  }
 0x2f4   :  { %5417 = vmatprep.subr.bf16.mxu0 %v7614_v61 }
 0x2f7   :  { %5418 = vmatpush1.bf16.msra.mxu0 %v7612_v40  ;;  %v7698_v40 = vld [vmem:[#allocation8 + $0x2cc] ss:$16 sps:$4 sm:$0xff]  }
 0x2f8   :  { %5419 = vmatprep.subr.bf16.mxu0 %v7617_v24  ;;  %v7744_v24 = vld [vmem:[#allocation11 + $0x30] sm:$0xff]  }
 0x2fb   :  { %5420 = vmatpush1.bf16.msra.mxu0 %v7615_v25  ;;  %v7745_v25 = vld [vmem:[#allocation11 + $0x68] sm:$0xff]  }
 0x2fc   :  { %5421 = vmatprep.subr.bf16.mxu0 %v7620_v26  ;;  %v7696_v26 = vld [vmem:[#allocation8 + $0x2c8] ss:$16 sps:$4 sm:$0xff]  }
 0x2ff   :  { %5422 = vmatpush1.bf16.msra.mxu0 %v7618_v27  ;;  %v7701_v27 = vld [vmem:[#allocation8 + $0x2ac] ss:$16 sps:$4 sm:$0xff]  }
 0x300   :  { %5423 = vmatprep.subr.bf16.mxu0 %v7623_v30  ;;  %v7746_v30 = vld [vmem:[#allocation11 + $0x28] sm:$0xff]  }
 0x303   :  { %5424 = vmatpush2.bf16.msra.mxu0 %v7621_v28  ;;  %v7747_v28 = vld [vmem:[#allocation11 + $0x60] sm:$0xff]  }
 0x304   :  { %5425 = vmatprep.subr.bf16.mxu0 %v7626_v6  ;;  %v7699_v6 = vld [vmem:[#allocation8 + $0x2a8] ss:$16 sps:$4 sm:$0xff]  }
 0x307   :  { %5426 = vmatpush2.bf16.msra.mxu0 %v7624_v34  ;;  %v7704_v34 = vld [vmem:[#allocation8 + $0x28c] ss:$16 sps:$4 sm:$0xff]  }
 0x308   :  { %5427 = vmatprep.subr.bf16.mxu0 %v7629_v35  ;;  %v7748_v35 = vld [vmem:[#allocation11 + $0x20] sm:$0xff]  }
 0x30b   :  { %5428 = vmatpush2.bf16.msra.mxu0 %v7627_v20  ;;  %v7749_v20 = vld [vmem:[#allocation11 + $0x58] sm:$0xff]  }
 0x30c   :  { %5429 = vmatprep.subr.bf16.mxu0 %v7632_v36  ;;  %v7702_v36 = vld [vmem:[#allocation8 + $0x288] ss:$16 sps:$4 sm:$0xff]  }
 0x30f   :  { %5430 = vmatpush2.bf16.msra.mxu0 %v7630_v38  ;;  %v7707_v38 = vld [vmem:[#allocation8 + $0x26c] ss:$16 sps:$4 sm:$0xff]  }
 0x310   :  { %5431 = vmatprep.subr.bf16.mxu0 %v7635_v16  ;;  %v7750_v16 = vld [vmem:[#allocation11 + $0x18] sm:$0xff]  }
 0x313   :  { %5432 = vmatpush2.bf16.msra.mxu0 %v7633_v43  ;;  %v7751_v43 = vld [vmem:[#allocation11 + $0x50] sm:$0xff]  }
 0x314   :  { %5433 = vmatprep.subr.bf16.mxu0 %v7638_v39  ;;  %v7705_v39 = vld [vmem:[#allocation8 + $0x268] ss:$16 sps:$4 sm:$0xff]  }
 0x316   :  { %v4356_v52 = vpop.f32.mrf.mxu0 }
 0x317   :  { %v4357_v22 = vadd.f32 %v4356_v52, %v8166_v9  ;;  %5434 = vmatpush2.bf16.msra.mxu0 %v7636_v31  ;;  %v7710_v31 = vld [vmem:[#allocation8 + $0x24c] ss:$16 sps:$4 sm:$0xff]   ;;  %v7708_v52 = vld [vmem:[#allocation8 + $0x248] ss:$16 sps:$4 sm:$0xff]  }
 0x318   :  { %v4358_v45 = vpop.f32.mrf.mxu0  ;;  %5435 = vmatprep.subr.bf16.mxu0 %v7641_v7  ;;  %v7752_v7 = vld [vmem:[#allocation11 + $0x10] sm:$0xff]  }
 0x319   :  { %v4359_v3 = vadd.f32 %v4358_v45, %v8169_v12  ;;  %v7716_v45 = vld [vmem:[#allocation8 + $0x20c] ss:$16 sps:$4 sm:$0xff]  }
 0x31a   :  { %v4360_v53 = vpop.f32.mrf.mxu0 }
 0x31b   :  { %5436 = vmatpush2.bf16.msra.mxu0 %v7639_v44  ;;  %v7711_v44 = vld [vmem:[#allocation8 + $0x228] ss:$16 sps:$4 sm:$0xff]  }
 0x31c   :  { %v4361_v54 = vpop.f32.mrf.mxu0  ;;  %5437 = vmatprep.subr.bf16.mxu0 %v7644_v46  ;;  %v7714_v46 = vld [vmem:[#allocation8 + $0x208] ss:$16 sps:$4 sm:$0xff]  }
 0x31d   :  { %v7717_v53 = vld [vmem:[#allocation8 + $0x3e8] ss:$16 sps:$4 sm:$0xff]  }
 0x31e   :  { %v7720_v54 = vld [vmem:[#allocation8 + $0x3c8] ss:$16 sps:$4 sm:$0xff]  }
 0x31f   :  { %5438 = vmatpush2.bf16.msra.mxu0 %v7642_v42  ;;  %v7722_v42 = vld [vmem:[#allocation8 + $0x3cc] ss:$16 sps:$4 sm:$0xff]  }
 0x320   :  { %6610 = vmatprep.subr.bf16.mxu0 %v7741_v18  ;;  %v7762_v18 = vld [vmem:[#allocation11 + $0xa8] sm:$0xff]  }
 0x322   :  { %5440 = vmatmul.mubr.bf16.vlgmr.msra.gmra.mxu0 %v8163_v55 }
 0x323   :  { %v4397_v56 = vpop.f32.mrf.mxu1  ;;  %6611 = vmatpush3.bf16.msra.mxu0 %v7742_v13  ;;  %v7763_v13 = vld [vmem:[#allocation11 + $0xe0] sm:$0xff]  }
 0x324   :  { %v4398_v60 = vadd.f32 %v4397_v56, %v4357_v22  ;;  %6612 = vmatprep.subr.bf16.mxu0 %v7743_v21  ;;  %v7713_v22 = vld [vmem:[#allocation8 + $0x22c] ss:$16 sps:$4 sm:$0xff]   ;;  %v7764_v21 = vld [vmem:[#allocation11 + $0xa0] sm:$0xff]  }
 0x325   :  { %v4399_v57 = vpop.f32.mrf.mxu1  ;;  %v7725_v56 = vld [vmem:[#allocation8 + $0x3ac] ss:$16 sps:$4 sm:$0xff]  }
 0x326   :  { %v4400_v62 = vadd.f32 %v4399_v57, %v4359_v3  ;;  %v7719_v3 = vld [vmem:[#allocation8 + $0x3ec] ss:$16 sps:$4 sm:$0xff]   ;;  %v7723_v57 = vld [vmem:[#allocation8 + $0x3a8] ss:$16 sps:$4 sm:$0xff]  }
 0x327   :  { %v4401_v8 = vpop.f32.mrf.mxu1  ;;  %6613 = vmatpush3.bf16.msra.mxu0 %v7744_v24 }
 0x328   :  { %6614 = vmatprep.subr.bf16.mxu0 %v7745_v25  ;;  %v7728_v8 = vld [vmem:[#allocation8 + $0x38c] ss:$16 sps:$4 sm:$0xff]  }
 0x329   :  { %v4402_v4 = vpop.f32.mrf.mxu1 }
 0x32a   :  { %v7726_v4 = vld [vmem:[#allocation8 + $0x388] ss:$16 sps:$4 sm:$0xff]  }
 0x32b   :  { %6615 = vmatpush3.bf16.msra.mxu0 %v7746_v30  ;;  %v7770_v30 = vld [vmem:[#allocation11 + $0x88] sm:$0xff]  }
 0x32c   :  { %6616 = vmatprep.subr.bf16.mxu0 %v7747_v28  ;;  %v7771_v28 = vld [vmem:[#allocation11 + $0xc0] sm:$0xff]  }
 0x32f   :  { %6617 = vmatpush3.bf16.msra.mxu0 %v7748_v35 }
 0x330   :  { %6618 = vmatprep.subr.bf16.mxu0 %v7749_v20 }
 0x333   :  { %6619 = vmatpush3.bf16.msra.mxu0 %v7750_v16 }
 0x334   :  { %6620 = vmatprep.subr.bf16.mxu0 %v7751_v43 }
 0x337   :  { %6621 = vmatpush3.bf16.msra.mxu0 %v7752_v7 }
 0x356   :  { %v4438_v32 = vpop.f32.mrf.mxu0 }
 0x357   :  { %v4439_v37 = vadd.f32 %v4438_v32, %v4398_v60  ;;  %v7731_v32 = vld [vmem:[#allocation8 + $0x36c] ss:$16 sps:$4 sm:$0xff]  }
 0x358   :  { %v4440_v59 = vpop.f32.mrf.mxu0  ;;  %v7737_v60 = vld [vmem:[#allocation8 + $0x32c] ss:$16 sps:$4 sm:$0xff]  }
 0x359   :  { %v4441_v9 = vadd.f32 %v4440_v59, %v4400_v62  ;;  %v7729_v59 = vld [vmem:[#allocation8 + $0x368] ss:$16 sps:$4 sm:$0xff]  }
 0x35a   :  { %v4442_v33 = vpop.f32.mrf.mxu0 }
 0x35b   :  { %v7734_v33 = vld [vmem:[#allocation8 + $0x34c] ss:$16 sps:$4 sm:$0xff]  }
 0x35c   :  { %v4443_v51 = vpop.f32.mrf.mxu0 }
 0x35d   :  { %v7732_v51 = vld [vmem:[#allocation8 + $0x348] ss:$16 sps:$4 sm:$0xff]  }
 0x362   :  { %v4520_v0 = vpop.f32.mrf.mxu0 }
 0x363   :  { %v4479_v63 = vpop.f32.mrf.mxu1 }
 0x364   :  { %v4480_v2 = vadd.f32 %v4479_v63, %v4439_v37  ;;  %v4522_v41 = vpop.f32.mrf.mxu0  ;;  %v7735_v37 = vld [vmem:[#allocation8 + $0x328] ss:$16 sps:$4 sm:$0xff]  }
 0x365   :  { %v4481_v10 = vpop.f32.mrf.mxu1 }
 0x366   :  { %v4521_v11 = vadd.f32 %v4520_v0, %v4480_v2  ;;  %v4482_v49 = vadd.f32 %v4481_v10, %v4441_v9  ;;  %v4524_v55 = vpop.f32.mrf.mxu0  ;;  %v7740_v0 = vld [vmem:[#allocation8 + $0x30c] ss:$16 sps:$4 sm:$0xff]   ;;  %v7738_v2 = vld [vmem:[#allocation8 + $0x308] ss:$16 sps:$4 sm:$0xff]  }
 0x367   :  { %v4483_v12 = vpop.f32.mrf.mxu1  ;;  %v7757_v55 = vld [vmem:[#allocation11 + $0xf8] sm:$0xff]  }
 0x368   :  { %v4523_v23 = vadd.f32 %v4522_v41, %v4482_v49  ;;  %v4529_v48 = vmax.f32 %v4521_v11, 0.0  ;;  %v4525_v14 = vpop.f32.mrf.mxu0  ;;  %v7753_v41 = vld [vmem:[#allocation11 + $0x48] sm:$0xff]   ;;  %v7755_v49 = vld [vmem:[#allocation11 + $0x40] sm:$0xff]  }
 0x369   :  { %v4484_v29 = vpop.f32.mrf.mxu1  ;;  %v7754_v11 = vld [vmem:[#allocation11 + $0x8] sm:$0xff]   ;;  %6622 = vmatprep.subr.bf16.mxu0 %v7753_v41  ;;  %v7756_v12 = vld [vmem:[#allocation11] sm:$0xff]  }
 0x36a   :  { %v4530_v19 = vmax.f32 %v4523_v23, 0.0  ;;  %v8174_v61 = vpack.c.bf16 %v4529_v48, %v4529_v48  ;;  %6623 = vmatpush3.bf16.msra.mxu0 %v7754_v11  ;;  %v7758_v23 = vld [vmem:[#allocation11 + $0xb8] sm:$0xff]   ;;  %v7759_v48 = vld [vmem:[#allocation11 + $0xf0] sm:$0xff]   ;;  %v7761_v14 = vld [vmem:[#allocation11 + $0xe8] sm:$0xff]  }
 0x36b   :  { %6624 = vmatprep.subr.bf16.mxu0 %v7755_v49  ;;  %v7760_v29 = vld [vmem:[#allocation11 + $0xb0] sm:$0xff]  }
 0x36c   :  { %v4534_v50 = vpack.c.bf16 %v4530_v19, %v4530_v19  ;;  %v7765_v19 = vld [vmem:[#allocation11 + $0xd8] sm:$0xff]  }
 0x36e   :  { %5398 = vmatprep.mubr.bf16.mxu1 %v4534_v50  ;;  %6625 = vmatpush3.bf16.msra.mxu0 %v7756_v12 }
 0x36f   :  { %5399 = vmatmul.mubr.bf16.vlgmr.msra.gmra.mxu1 %v8174_v61 }
 0x370   :  { %5449 = vmatpush1.bf16.msra.mxu1 %v7693_v47  ;;  %5480 = vmatprep.mubr.bf16.mxu1 %v4534_v50  ;;  %v7766_v50 = vld [vmem:[#allocation11 + $0x98] sm:$0xff]   ;;  %v7767_v47 = vld [vmem:[#allocation11 + $0xd0] sm:$0xff]  }
 0x371   :  { %5450 = vmatprep.subr.bf16.mxu1 %v7698_v40 }
 0x374   :  { %5451 = vmatpush1.bf16.msra.mxu1 %v7696_v26 }
 0x375   :  { %5452 = vmatprep.subr.bf16.mxu1 %v7701_v27  ;;  %v7769_v27 = vld [vmem:[#allocation11 + $0xc8] sm:$0xff]  }
 0x378   :  { %5453 = vmatpush1.bf16.msra.mxu1 %v7699_v6  ;;  %v7772_v6 = vld [vmem:[#allocation11 + $0x80] sm:$0xff]  }
 0x379   :  { %5454 = vmatprep.subr.bf16.mxu1 %v7704_v34  ;;  %v4663_v34 = vld [vmem:[#allocation10] sm:$0xf] }
 0x37a   :  { %v4668_v35 = vrot.slane %v4663_v34, %v745_v1  ;;  %v4672_v20 = vrot.slane %v4663_v34, %v749_v5  ;;  %v4676_v1 = vrot.slane %v4663_v34, %v753_v15  ;;  %v4680_v5 = vrot.slane %v4663_v34, %v757_v17  ;;  %v6577_v17 = vld [vmem:[#allocation13] ss:$0 sm:$0xff] }
 0x37c   :  { %5455 = vmatpush1.bf16.msra.mxu1 %v7702_v36 }
 0x37d   :  { %5456 = vmatprep.subr.bf16.mxu1 %v7707_v38 }
 0x380   :  { %5457 = vmatpush1.bf16.msra.mxu1 %v7705_v39 }
 0x381   :  { %5458 = vmatprep.subr.bf16.mxu1 %v7710_v31 }
 0x384   :  { %5459 = vmatpush1.bf16.msra.mxu1 %v7708_v52 }
 0x385   :  { %5460 = vmatprep.subr.bf16.mxu1 %v7713_v22 }
 0x388   :  { %5461 = vmatpush1.bf16.msra.mxu1 %v7711_v44 }
 0x389   :  { %5462 = vmatprep.subr.bf16.mxu1 %v7716_v45 }
 0x38c   :  { %5463 = vmatpush1.bf16.msra.mxu1 %v7714_v46 }
 0x38d   :  { %5464 = vmatprep.subr.bf16.mxu1 %v7719_v3 }
 0x390   :  { %5465 = vmatpush2.bf16.msra.mxu1 %v7717_v53 }
 0x391   :  { %5466 = vmatprep.subr.bf16.mxu1 %v7722_v42 }
 0x394   :  { %5467 = vmatpush2.bf16.msra.mxu1 %v7720_v54 }
 0x395   :  { %5468 = vmatprep.subr.bf16.mxu1 %v7725_v56 }
 0x398   :  { %5469 = vmatpush2.bf16.msra.mxu1 %v7723_v57 }
 0x399   :  { %5470 = vmatprep.subr.bf16.mxu1 %v7728_v8 }
 0x39c   :  { %5471 = vmatpush2.bf16.msra.mxu1 %v7726_v4 }
 0x39d   :  { %5472 = vmatprep.subr.bf16.mxu1 %v7731_v32 }
 0x3a0   :  { %5473 = vmatpush2.bf16.msra.mxu1 %v7729_v59 }
 0x3a1   :  { %5474 = vmatprep.subr.bf16.mxu1 %v7734_v33 }
 0x3a2   :  { %v5359_v62 = vpop.f32.mrf.mxu0 }
 0x3a3   :  { %v5360_v36 = vadd.f32 %v5359_v62, %v4668_v35 }
 0x3a4   :  { %5475 = vmatpush2.bf16.msra.mxu1 %v7732_v51  ;;  %v5361_v63 = vpop.f32.mrf.mxu0 }
 0x3a5   :  { %5476 = vmatprep.subr.bf16.mxu1 %v7737_v60  ;;  %v5362_v16 = vadd.f32 %v5361_v63, %v4672_v20 }
 0x3a6   :  { %v5363_v9 = vpop.f32.mrf.mxu0 }
 0x3a8   :  { %5477 = vmatpush2.bf16.msra.mxu1 %v7735_v37  ;;  %v5364_v10 = vpop.f32.mrf.mxu0 }
 0x3a9   :  { %5478 = vmatprep.subr.bf16.mxu1 %v7740_v0 }
 0x3ac   :  { %5479 = vmatpush2.bf16.msra.mxu1 %v7738_v2 }
 0x3ad   :  { %6632 = vmatprep.subr.bf16.mxu1 %v7757_v55 }
 0x3af   :  { %5481 = vmatmul.mubr.bf16.vlgmr.msra.gmra.mxu1 %v8174_v61  ;;  %v7768_v61 = vld [vmem:[#allocation11 + $0x90] sm:$0xff]  }
 0x3b0   :  { %6633 = vmatpush3.bf16.msra.mxu1 %v7758_v23 }
 0x3b1   :  { %6634 = vmatprep.subr.bf16.mxu1 %v7759_v48 }
 0x3b4   :  { %6635 = vmatpush3.bf16.msra.mxu1 %v7760_v29 }
 0x3b5   :  { %6636 = vmatprep.subr.bf16.mxu1 %v7761_v14 }
 0x3b8   :  { %6637 = vmatpush3.bf16.msra.mxu1 %v7762_v18 }
 0x3b9   :  { %6638 = vmatprep.subr.bf16.mxu1 %v7763_v13 }
 0x3bc   :  { %6639 = vmatpush3.bf16.msra.mxu1 %v7764_v21 }
 0x3bd   :  { %6640 = vmatprep.subr.bf16.mxu1 %v7765_v19 }
 0x3c0   :  { %6641 = vmatpush3.bf16.msra.mxu1 %v7766_v50 }
 0x3c1   :  { %6642 = vmatprep.subr.bf16.mxu1 %v7767_v47 }
 0x3c4   :  { %6643 = vmatpush3.bf16.msra.mxu1 %v7768_v61 }
 0x3c5   :  { %6644 = vmatprep.subr.bf16.mxu1 %v7769_v27 }
 0x3c8   :  { %6645 = vmatpush3.bf16.msra.mxu1 %v7770_v30 }
 0x3c9   :  { %6646 = vmatprep.subr.bf16.mxu1 %v7771_v28 }
 0x3cc   :  { %6647 = vmatpush3.bf16.msra.mxu1 %v7772_v6 }
 0x3e2   :  { %v5441_v40 = vpop.f32.mrf.mxu0 }
 0x3e3   :  { %v5442_v3 = vadd.f32 %v5441_v40, %v4676_v1 }
 0x3e4   :  { %v5443_v24 = vpop.f32.mrf.mxu0 }
 0x3e5   :  { %v5444_v42 = vadd.f32 %v5443_v24, %v4680_v5 }
 0x3e6   :  { %v5445_v25 = vpop.f32.mrf.mxu0 }
 0x3e8   :  { %v5446_v26 = vpop.f32.mrf.mxu0 }
 0x42f   :  { %v5400_v38 = vpop.f32.mrf.mxu1 }
 0x430   :  { %v5401_v43 = vadd.f32 %v5400_v38, %v5360_v36 }
 0x431   :  { %v5402_v39 = vpop.f32.mrf.mxu1 }
 0x432   :  { %v5403_v31 = vadd.f32 %v5402_v39, %v5362_v16  ;;  %v5489_v7 = vmax.f32 %v5401_v43, 0.0 }
 0x433   :  { %v5404_v52 = vpop.f32.mrf.mxu1 }
 0x434   :  { %v5490_v22 = vmax.f32 %v5403_v31, 0.0  ;;  %v5493_v46 = vpack.c.bf16 %v5489_v7, %v5489_v7 }
 0x435   :  { %v5405_v44 = vpop.f32.mrf.mxu1 }
 0x436   :  { %v5494_v45 = vpack.c.bf16 %v5490_v22, %v5490_v22 }
 0x438   :  { %5792 = vmatprep.mubr.bf16.mxu0 %v5494_v45 }
 0x439   :  { %5793 = vmatmul.mubr.bf16.vlgmr.msra.gmra.mxu0 %v5493_v46 }
 0x46f   :  { %v5482_v53 = vpop.f32.mrf.mxu1 }
 0x470   :  { %v5483_v54 = vadd.f32 %v5482_v53, %v5442_v3 }
 0x471   :  { %v5484_v56 = vpop.f32.mrf.mxu1 }
 0x472   :  { %v5485_v57 = vadd.f32 %v5484_v56, %v5444_v42  ;;  %v5491_v8 = vmax.f32 %v5483_v54, 0.0 }
 0x473   :  { %v5486_v4 = vpop.f32.mrf.mxu1 }
 0x474   :  { %v5492_v32 = vmax.f32 %v5485_v57, 0.0  ;;  %v5495_v51 = vpack.c.bf16 %v5491_v8, %v5491_v8 }
 0x475   :  { %v5487_v59 = vpop.f32.mrf.mxu1 }
 0x476   :  { %v5496_v33 = vpack.c.bf16 %v5492_v32, %v5492_v32 }
 0x478   :  { %5832 = vmatprep.mubr.bf16.mxu1 %v5496_v33 }
 0x479   :  { %5833 = vmatmul.mubr.bf16.vlgmr.msra.gmra.mxu1 %v5495_v51 }
 0x4f9   :  { %v6626_v60 = vpop.f32.mrf.mxu0 }
 0x4fb   :  { %v6627_v62 = vpop.f32.mrf.mxu0 }
 0x4fc   :  { %v6628_v58 = vadd.f32 %v6627_v62, %v6626_v60 }
 0x4fd   :  { %v6629_v15 = vpop.f32.mrf.mxu0 }
 0x4fe   :  { %v5795_v9 = vadd.f32 %v6628_v58, %v6577_v17 }
 0x4ff   :  { %v6630_v37 = vpop.f32.mrf.mxu0 }
 0x539   :  { %v6648_v63 = vpop.f32.mrf.mxu1 }
 0x53b   :  { %v6649_v0 = vpop.f32.mrf.mxu1 }
 0x53c   :  { %v6650_v2 = vadd.f32 %v6649_v0, %v6648_v63 }
 0x53d   :  { %v6651_v10 = vpop.f32.mrf.mxu1 }
 0x53e   :  { %v5835_v41 = vadd.f32 %v6650_v2, %v5795_v9 }
 0x53f   :  { %v6652_v11 = vpop.f32.mrf.mxu1 }
 0x540   :  { %5840 = vst [vmem:[#allocation14] sm:$0xff] %v5835_v41 }
 0x541   :  { %7925 = shalt.err (!%p7922_p11)
}
 0x542   :  { %5850 = dma.vmem_to_hbm [thread:$0]  %s5848_s6, 128, %s8196_s7, [#allocation4]  }
 0x543   :  { %7942 = dma.done.wait [#allocation4], 128  }
 0x544   :  { %7943 = vsyncadd [#allocation4], 4294967168 }
 0x545   :  { %5854 = vsyncpa [#allocation3], 1 }
 0x546   :  { %5855 = vsyncpa [#allocation6], 1 }
 0x547   :  { %5856 = vsyncpa [#allocation9], 1 }
 0x548   :  { %5857 = vsyncpa [#allocation12], 1 }
 0x549   :  { %5858 = vsyncpa [#allocation4], 1 }

</bundles_post_ra>
